<compile_context>
chip_gen: v5e
topology: v5e:2x2
jax: 0.10.0
libtpu: 0.0.40
codegen_flags: <defaults>
</compile_context>

<pallas_src>
import numpy as np
import jax
import jax.numpy as jnp
from jax.experimental import pallas as pl
from jax.experimental.pallas import tpu as pltpu

NUM_GROUPS = 8
GN_EPS = 1e-5


# ------------------------------ Pallas kernel ------------------------------ #
def _upblock_kernel(x1_ref, x2_ref, w1t_ref, w2at_ref, w2bs_ref,
                    b1_ref, g1_ref, be1_ref, gm1_ref,
                    b2_ref, g2_ref, be2_ref, gm2_ref,
                    up_ref, o_ref):
    """Whole UpBlock for one batch element; everything stays in VMEM.

    x1_ref : (1, H1+2, W1+2, Cin1) bf16  zero-padded NHWC deconv input
    x2_ref : (1, H2+2, W2+2, Cin2) bf16  zero-padded NHWC skip input
    w1t_ref: (Ch,   9*Cin1)        bf16  conv1 weight, transposed, tap-major cols
    w2at_ref:(Cout, 9*Cin2)        bf16  conv2 weight rows acting on x2, transposed
    w2bs_ref:(9*Cout, Ch)          bf16  conv2 weight rows acting on h, per-tap W^T stacked
    b*/g*/be*: (C, 1)              f32   bias / gamma / beta columns
    gm*     : (C, C)               f32   group-average matrix, 1/(cpg*H*W)
    up_ref  : (9, H1*W1, H2*W2)    bf16  upT[k]: zero-padded bilinear upsample, tap k, transposed
    o_ref   : (1, Cout, H2*W2)     f32   lane-dense NCHW output
    """
    hh1, ww1 = x1_ref.shape[1] - 2, x1_ref.shape[2] - 2
    hh2, ww2 = x2_ref.shape[1] - 2, x2_ref.shape[2] - 2
    c_out = w2at_ref.shape[0]

    # contract the last dim of both operands: A @ patches^T  (q @ k^T pattern)
    dn_last = (((1,), (1,)), ((), ()))

    def im2col(x_ref, hh, ww):
        # bf16 end to end: no f32 round trip.
        xpad = x_ref[0]                                        # (hh+2, ww+2, C)
        cols = [xpad[dy:dy + hh, dx:dx + ww, :]
                for dy in range(3) for dx in range(3)]
        patches = jnp.concatenate(cols, axis=-1)               # (hh, ww, 9*C)
        return patches.reshape(hh * ww, patches.shape[-1])     # (hh*ww, 9*C) bf16

    def elu_groupnorm_t(acc_t, b_r, g_r, be_r, gm_r):
        # acc_t: (C, HW) f32, lane-dense; all epilogue math in f32.
        a = acc_t + b_r[...]
        a = jnp.where(a > 0, a, jnp.exp(a) - 1.0)              # ELU, alpha=1
        s = jnp.concatenate([jnp.sum(a, axis=1, keepdims=True),
                             jnp.sum(a * a, axis=1, keepdims=True)], axis=1)
        g = jnp.dot(gm_r[...], s, preferred_element_type=jnp.float32)   # (C, 2)
        g_mean, g_ex2 = g[:, 0:1], g[:, 1:2]
        g_var = jnp.maximum(g_ex2 - g_mean * g_mean, 0.0)      # clamp -> no NaN
        inv = jax.lax.rsqrt(g_var + GN_EPS)
        scale = inv * g_r[...]                                 # folded affine
        shift = be_r[...] - g_mean * scale
        return a * scale + shift

    # ---- deconv = Conv3x3 + ELU + GroupNorm on x1 (result kept as (Ch, H1W1)) ----
    p1 = im2col(x1_ref, hh1, ww1)                              # (H1W1, 9*Cin1) bf16
    acc1_t = jax.lax.dot_general(w1t_ref[...], p1, dn_last,
                                 preferred_element_type=jnp.float32)     # (Ch, H1W1)
    h_t = elu_groupnorm_t(acc1_t, b1_ref, g1_ref, be1_ref, gm1_ref)
    h_bf = h_t.astype(jnp.bfloat16)

    # ---- out_conv on concat([x2, upsample(h)]): concat + upsample fused away ----
    p2 = im2col(x2_ref, hh2, ww2)                              # (H2W2, 9*Cin2) bf16
    acc2 = jax.lax.dot_general(w2at_ref[...], p2, dn_last,
                               preferred_element_type=jnp.float32)       # (Cout, H2W2)

    # reassociated h-branch: m1 = W2b^T @ h^T once, then 9 accumulating matmuls
    m1 = jnp.dot(w2bs_ref[...], h_bf,
                 preferred_element_type=jnp.float32).astype(jnp.bfloat16)  # (9*Cout, H1W1)
    for k in range(9):
        acc2 = acc2 + jnp.dot(m1[k * c_out:(k + 1) * c_out, :], up_ref[k],
                              preferred_element_type=jnp.float32)

    out = elu_groupnorm_t(acc2, b2_ref, g2_ref, be2_ref, gm2_ref)        # (Cout, H2W2)
    o_ref[0] = out.astype(o_ref.dtype)                         # lane-dense NCHW store


# ---------------------- host-side constants (numpy only) -------------------- #
def _interp_matrix_1d_np(in_size, out_size):
    """F.interpolate(mode='bilinear', align_corners=False) weights, (out, in)."""
    i = np.arange(out_size, dtype=np.float64)
    src = (i + 0.5) * (in_size / out_size) - 0.5
    src = np.maximum(src, 0.0)                    # PyTorch clamps negative coords
    i0 = np.clip(np.floor(src).astype(np.int64), 0, in_size - 1)
    i1 = np.minimum(i0 + 1, in_size - 1)
    frac = src - i0
    m = np.zeros((out_size, in_size), dtype=np.float64)
    np.add.at(m, (np.arange(out_size), i0), 1.0 - frac)
    np.add.at(m, (np.arange(out_size), i1), frac)
    return m


def _shifted_upsample_taps_t_np(in_h, in_w, out_h, out_w):
    """(9, in_h*in_w, out_h*out_w): upT[k] s.t. h^T @ upT[k] is the k-th
    3x3-shifted view of the zero-padded bilinear-upsampled map, transposed."""
    mh = _interp_matrix_1d_np(in_h, out_h)        # (out_h, in_h)
    mw = _interp_matrix_1d_np(in_w, out_w)        # (out_w, in_w)
    m = np.kron(mh, mw)                           # (out_h*out_w, in_h*in_w)
    mp = np.pad(m.reshape(out_h, out_w, in_h * in_w), ((1, 1), (1, 1), (0, 0)))
    taps = [mp[dy:dy + out_h, dx:dx + out_w, :].reshape(out_h * out_w, in_h * in_w)
            for dy in range(3) for dx in range(3)]
    up = np.stack(taps, axis=0)                   # (9, out_hw, in_hw)
    return np.ascontiguousarray(np.transpose(up, (0, 2, 1))).astype(np.float32)


def _group_avg_matrix_np(channels, hw):
    cpg = channels // NUM_GROUPS
    gid = np.arange(channels) // cpg
    m = (gid[:, None] == gid[None, :]).astype(np.float64) / float(cpg * hw)
    return m.astype(np.float32)


def _pad_nhwc_bf16(x_nchw):
    x = jnp.transpose(x_nchw, (0, 2, 3, 1))
    return jnp.pad(x, ((0, 0), (1, 1), (1, 1), (0, 0))).astype(jnp.bfloat16)


# ------------------------------ JAX wrapper --------------------------------- #
def upblock_forward(x1_nchw, x2_nchw, params):
    """UpBlock.forward; inputs/outputs NCHW (PyTorch convention)."""
    n_b, cin1, hh1, ww1 = x1_nchw.shape
    _nb2, cin2, hh2, ww2 = x2_nchw.shape
    ch = params["w1"].shape[-1]
    cout = params["w2"].shape[-1]
    assert ch % NUM_GROUPS == 0 and cout % NUM_GROUPS == 0
    h1w1, h2w2 = hh1 * ww1, hh2 * ww2

    # activations: NHWC, zero-padded, bf16
    x1p = _pad_nhwc_bf16(x1_nchw)                 # (N, H1+2, W1+2, Cin1)
    x2p = _pad_nhwc_bf16(x2_nchw)                 # (N, H2+2, W2+2, Cin2)

    # weights (HWIO) -> tap-major matrices, pre-transposed for (C, HW) matmuls
    w1t = params["w1"].reshape(9 * cin1, ch).T.astype(jnp.bfloat16)        # (Ch, 9*Cin1)
    w2_hwio = params["w2"]                                                  # (3,3,Cin2+Ch,Cout)
    w2at = w2_hwio[:, :, :cin2, :].reshape(9 * cin2, cout).T.astype(jnp.bfloat16)   # (Cout, 9*Cin2)
    w2bs = jnp.transpose(w2_hwio[:, :, cin2:, :], (0, 1, 3, 2)
                         ).reshape(9 * cout, ch).astype(jnp.bfloat16)       # (9*Cout, Ch)

    # per-channel affine params as (C, 1) f32 columns
    b1c = params["b1"].reshape(ch, 1).astype(jnp.float32)
    g1c = params["gamma1"].reshape(ch, 1).astype(jnp.float32)
    be1c = params["beta1"].reshape(ch, 1).astype(jnp.float32)
    b2c = params["b2"].reshape(cout, 1).astype(jnp.float32)
    g2c = params["gamma2"].reshape(cout, 1).astype(jnp.float32)
    be2c = params["beta2"].reshape(cout, 1).astype(jnp.float32)

    # static constants (numpy, Python ints only)
    gm1 = jnp.asarray(_group_avg_matrix_np(ch, h1w1))
    gm2 = jnp.asarray(_group_avg_matrix_np(cout, h2w2))
    up_t = jnp.asarray(_shifted_upsample_taps_t_np(hh1, ww1, hh2, ww2), jnp.bfloat16)

    flops = 2 * n_b * (h1w1 * 9 * cin1 * ch + h2w2 * 9 * cin2 * cout
                       + 9 * cout * ch * h1w1 + 9 * cout * h1w1 * h2w2)
    transcendentals = n_b * (h1w1 * ch + h2w2 * cout)
    bytes_accessed = (2 * (x1p.size + x2p.size + w1t.size + w2at.size
                           + w2bs.size + up_t.size)
                      + 4 * (gm1.size + gm2.size + 3 * ch + 3 * cout)
                      + 4 * n_b * cout * h2w2)

    out = pl.pallas_call(
        _upblock_kernel,
        out_shape=jax.ShapeDtypeStruct((n_b, cout, h2w2), jnp.float32),
        grid=(n_b,),
        in_specs=[
            pl.BlockSpec((1, hh1 + 2, ww1 + 2, cin1), lambda i: (i, 0, 0, 0)),
            pl.BlockSpec((1, hh2 + 2, ww2 + 2, cin2), lambda i: (i, 0, 0, 0)),
            pl.BlockSpec((ch, 9 * cin1), lambda i: (0, 0)),
            pl.BlockSpec((cout, 9 * cin2), lambda i: (0, 0)),
            pl.BlockSpec((9 * cout, ch), lambda i: (0, 0)),
            pl.BlockSpec((ch, 1), lambda i: (0, 0)),
            pl.BlockSpec((ch, 1), lambda i: (0, 0)),
            pl.BlockSpec((ch, 1), lambda i: (0, 0)),
            pl.BlockSpec((ch, ch), lambda i: (0, 0)),
            pl.BlockSpec((cout, 1), lambda i: (0, 0)),
            pl.BlockSpec((cout, 1), lambda i: (0, 0)),
            pl.BlockSpec((cout, 1), lambda i: (0, 0)),
            pl.BlockSpec((cout, cout), lambda i: (0, 0)),
            pl.BlockSpec((9, h1w1, h2w2), lambda i: (0, 0, 0)),
        ],
        out_specs=pl.BlockSpec((1, cout, h2w2), lambda i: (i, 0, 0)),
        compiler_params=pltpu.CompilerParams(
            dimension_semantics=("parallel",),
            vmem_limit_bytes=32 * 1024 * 1024),
        cost_estimate=pl.CostEstimate(flops=flops,
                                      transcendentals=transcendentals,
                                      bytes_accessed=bytes_accessed),
    )(x1p, x2p, w1t, w2at, w2bs,
      b1c, g1c, be1c, gm1, b2c, g2c, be2c, gm2, up_t)

    return out.reshape(n_b, cout, hh2, ww2)       # already NCHW


# --------------------------- pure-JAX f32 reference ------------------------- #
def _ref_conv3x3_block(x_nchw, w_hwio, b, gamma, beta):
    x = jnp.transpose(x_nchw, (0, 2, 3, 1)).astype(jnp.float32)
    y = jax.lax.conv_general_dilated(
        x, w_hwio.astype(jnp.float32), window_strides=(1, 1), padding="SAME",
        dimension_numbers=("NHWC", "HWIO", "NHWC"),
        precision=jax.lax.Precision.HIGHEST)
    y = y + b
    y = jnp.where(y > 0, y, jnp.expm1(y))
    nb, hh, ww, c = y.shape
    yg = y.reshape(nb, hh, ww, NUM_GROUPS, c // NUM_GROUPS)
    mean = jnp.mean(yg, axis=(1, 2, 4), keepdims=True)
    var = jnp.mean(jnp.square(yg - mean), axis=(1, 2, 4), keepdims=True)
    yn = ((yg - mean) * jax.lax.rsqrt(var + GN_EPS)).reshape(nb, hh, ww, c)
    yn = yn * gamma + beta
    return jnp.transpose(yn, (0, 3, 1, 2))


def _ref_bilinear_nchw(x_nchw, out_h, out_w):
    _, _, in_h, in_w = x_nchw.shape
    mh = jnp.asarray(_interp_matrix_1d_np(in_h, out_h), jnp.float32)
    mw = jnp.asarray(_interp_matrix_1d_np(in_w, out_w), jnp.float32)
    return jnp.einsum("Hh,nchw,Ww->ncHW", mh, x_nchw, mw,
                      precision=jax.lax.Precision.HIGHEST)


def upblock_reference(x1_nchw, x2_nchw, params):
    h = _ref_conv3x3_block(x1_nchw, params["w1"], params["b1"],
                           params["gamma1"], params["beta1"])
    hu = _ref_bilinear_nchw(h, x2_nchw.shape[2], x2_nchw.shape[3])
    xcat = jnp.concatenate([x2_nchw, hu], axis=1)
    return _ref_conv3x3_block(xcat, params["w2"], params["b2"],
                              params["gamma2"], params["beta2"])


# ---------------------------------- main ------------------------------------ #
def init_params(key, in_size, in_size_2, h_size, out_size):
    ks = jax.random.split(key, 8)
    cat_size = h_size + in_size_2
    return {
        # HWIO conv weights (PyTorch OIHW transposed)
        "w1": 0.1 * jax.random.normal(ks[0], (3, 3, in_size, h_size), jnp.float32),
        "b1": 0.1 * jax.random.normal(ks[1], (h_size,), jnp.float32),
        "gamma1": 1.0 + 0.05 * jax.random.normal(ks[2], (h_size,), jnp.float32),
        "beta1": 0.05 * jax.random.normal(ks[3], (h_size,), jnp.float32),
        "w2": 0.1 * jax.random.normal(ks[4], (3, 3, cat_size, out_size), jnp.float32),
        "b2": 0.1 * jax.random.normal(ks[5], (out_size,), jnp.float32),
        "gamma2": 1.0 + 0.05 * jax.random.normal(ks[6], (out_size,), jnp.float32),
        "beta2": 0.05 * jax.random.normal(ks[7], (out_size,), jnp.float32),
    }


if __name__ == "__main__":
    key = jax.random.PRNGKey(0)
    k_x1, k_x2, k_p = jax.random.split(key, 3)

    # UpBlock(in_size=4, in_size_2=8, h_size=16, out_size=16)
    in_size, in_size_2, h_size, out_size = 4, 8, 16, 16
    n_batch, sp_h1, sp_w1, sp_h2, sp_w2 = 2, 8, 8, 16, 16

    x1 = jax.random.normal(k_x1, (n_batch, in_size, sp_h1, sp_w1), jnp.float32)
    x2 = jax.random.normal(k_x2, (n_batch, in_size_2, sp_h2, sp_w2), jnp.float32)
    params = init_params(k_p, in_size, in_size_2, h_size, out_size)

    fwd = jax.jit(upblock_forward)
    out = jax.block_until_ready(fwd(x1, x2, params))

    assert out.shape == (n_batch, out_size, sp_h2, sp_w2), out.shape
    assert bool(jnp.all(jnp.isfinite(out)))

    # sanity check vs a pure-JAX f32 reference (bf16 MXU => loose tolerance)
    ref = jax.block_until_ready(jax.jit(upblock_reference)(x1, x2, params))
    max_err = float(jnp.max(jnp.abs(out - ref)))
    assert max_err < 1e-1, f"max abs err vs f32 reference: {max_err}"

    print("KERNEL_OK")
</pallas_src>

<mosaic_0001>
module attributes {stable_mosaic.version = 11 : i64} {
  func.func @_upblock_kernel(%arg0: i32, %arg1: memref<1x10x10x4xbf16, #tpu.memory_space<vmem>>, %arg2: memref<1x18x18x8xbf16, #tpu.memory_space<vmem>>, %arg3: memref<16x36xbf16, #tpu.memory_space<vmem>>, %arg4: memref<16x72xbf16, #tpu.memory_space<vmem>>, %arg5: memref<144x16xbf16, #tpu.memory_space<vmem>>, %arg6: memref<16x1xf32, #tpu.memory_space<vmem>>, %arg7: memref<16x1xf32, #tpu.memory_space<vmem>>, %arg8: memref<16x1xf32, #tpu.memory_space<vmem>>, %arg9: memref<16x16xf32, #tpu.memory_space<vmem>>, %arg10: memref<16x1xf32, #tpu.memory_space<vmem>>, %arg11: memref<16x1xf32, #tpu.memory_space<vmem>>, %arg12: memref<16x1xf32, #tpu.memory_space<vmem>>, %arg13: memref<16x16xf32, #tpu.memory_space<vmem>>, %arg14: memref<9x64x256xbf16, #tpu.memory_space<vmem>>, %arg15: memref<1x16x256xf32, #tpu.memory_space<vmem>>) attributes {dimension_semantics = [#tpu.dimension_semantics<parallel>], iteration_bounds = array<i64: 2>, scalar_prefetch = 0 : i64, scratch_operands = 0 : i64, tpu.core_type = #tpu.core_type<tc>, window_params = [{transform_indices = @transform_0, window_bounds = array<i64: 1, 10, 10, 4>}, {transform_indices = @transform_1, window_bounds = array<i64: 1, 18, 18, 8>}, {pipeline_mode = #tpu.pipeline_mode<synchronous>, transform_indices = @transform_2, window_bounds = array<i64: 16, 36>}, {pipeline_mode = #tpu.pipeline_mode<synchronous>, transform_indices = @transform_3, window_bounds = array<i64: 16, 72>}, {pipeline_mode = #tpu.pipeline_mode<synchronous>, transform_indices = @transform_4, window_bounds = array<i64: 144, 16>}, {pipeline_mode = #tpu.pipeline_mode<synchronous>, transform_indices = @transform_5, window_bounds = array<i64: 16, 1>}, {pipeline_mode = #tpu.pipeline_mode<synchronous>, transform_indices = @transform_6, window_bounds = array<i64: 16, 1>}, {pipeline_mode = #tpu.pipeline_mode<synchronous>, transform_indices = @transform_7, window_bounds = array<i64: 16, 1>}, {pipeline_mode = #tpu.pipeline_mode<synchronous>, transform_indices = @transform_8, window_bounds = array<i64: 16, 16>}, {pipeline_mode = #tpu.pipeline_mode<synchronous>, transform_indices = @transform_9, window_bounds = array<i64: 16, 1>}, {pipeline_mode = #tpu.pipeline_mode<synchronous>, transform_indices = @transform_10, window_bounds = array<i64: 16, 1>}, {pipeline_mode = #tpu.pipeline_mode<synchronous>, transform_indices = @transform_11, window_bounds = array<i64: 16, 1>}, {pipeline_mode = #tpu.pipeline_mode<synchronous>, transform_indices = @transform_12, window_bounds = array<i64: 16, 16>}, {pipeline_mode = #tpu.pipeline_mode<synchronous>, transform_indices = @transform_13, window_bounds = array<i64: 9, 64, 256>}, {transform_indices = @transform_14, window_bounds = array<i64: 1, 16, 256>}]} {
    %c0 = arith.constant 0 : index
    %c0_0 = arith.constant 0 : index
    %c0_1 = arith.constant 0 : index
    %c0_2 = arith.constant 0 : index
    %0 = vector.load %arg1[%c0, %c0_0, %c0_1, %c0_2] : memref<1x10x10x4xbf16, #tpu.memory_space<vmem>>, vector<1x10x10x4xbf16>
    %1 = vector.shape_cast %0 : vector<1x10x10x4xbf16> to vector<10x10x4xbf16>
    %2 = vector.extract_strided_slice %1 {offsets = [0, 0, 0], sizes = [8, 8, 4], strides = [1, 1, 1]} : vector<10x10x4xbf16> to vector<8x8x4xbf16>
    %3 = vector.extract_strided_slice %1 {offsets = [0, 1, 0], sizes = [8, 8, 4], strides = [1, 1, 1]} : vector<10x10x4xbf16> to vector<8x8x4xbf16>
    %4 = vector.extract_strided_slice %1 {offsets = [0, 2, 0], sizes = [8, 8, 4], strides = [1, 1, 1]} : vector<10x10x4xbf16> to vector<8x8x4xbf16>
    %5 = vector.extract_strided_slice %1 {offsets = [1, 0, 0], sizes = [8, 8, 4], strides = [1, 1, 1]} : vector<10x10x4xbf16> to vector<8x8x4xbf16>
    %6 = vector.extract_strided_slice %1 {offsets = [1, 1, 0], sizes = [8, 8, 4], strides = [1, 1, 1]} : vector<10x10x4xbf16> to vector<8x8x4xbf16>
    %7 = vector.extract_strided_slice %1 {offsets = [1, 2, 0], sizes = [8, 8, 4], strides = [1, 1, 1]} : vector<10x10x4xbf16> to vector<8x8x4xbf16>
    %8 = vector.extract_strided_slice %1 {offsets = [2, 0, 0], sizes = [8, 8, 4], strides = [1, 1, 1]} : vector<10x10x4xbf16> to vector<8x8x4xbf16>
    %9 = vector.extract_strided_slice %1 {offsets = [2, 1, 0], sizes = [8, 8, 4], strides = [1, 1, 1]} : vector<10x10x4xbf16> to vector<8x8x4xbf16>
    %10 = vector.extract_strided_slice %1 {offsets = [2, 2, 0], sizes = [8, 8, 4], strides = [1, 1, 1]} : vector<10x10x4xbf16> to vector<8x8x4xbf16>
    %11 = tpu.concatenate %2, %3, %4, %5, %6, %7, %8, %9, %10 in 2 : vector<8x8x4xbf16>, vector<8x8x4xbf16>, vector<8x8x4xbf16>, vector<8x8x4xbf16>, vector<8x8x4xbf16>, vector<8x8x4xbf16>, vector<8x8x4xbf16>, vector<8x8x4xbf16>, vector<8x8x4xbf16> -> vector<8x8x36xbf16>
    %12 = vector.shape_cast %11 : vector<8x8x36xbf16> to vector<64x36xbf16>
    %c0_3 = arith.constant 0 : index
    %c0_4 = arith.constant 0 : index
    %13 = vector.load %arg3[%c0_3, %c0_4] : memref<16x36xbf16, #tpu.memory_space<vmem>>, vector<16x36xbf16>
    %cst = arith.constant dense<0.000000e+00> : vector<16x64xf32>
    %14 = tpu.matmul %13, %12, %cst {dimension_numbers = #tpu.dot_dimension_numbers<[1], [1], [0], [0], [0, 0, 1, 0], [], []>} : vector<16x36xbf16>, vector<64x36xbf16>, vector<16x64xf32> -> vector<16x64xf32>
    %c0_5 = arith.constant 0 : index
    %c0_6 = arith.constant 0 : index
    %15 = vector.load %arg6[%c0_5, %c0_6] : memref<16x1xf32, #tpu.memory_space<vmem>>, vector<16x1xf32>
    %16 = vector.broadcast %15 : vector<16x1xf32> to vector<16x64xf32>
    %17 = arith.addf %14, %16 : vector<16x64xf32>
    %cst_7 = arith.constant 0.000000e+00 : f32
    %18 = vector.broadcast %cst_7 : f32 to vector<16x64xf32>
    %19 = arith.cmpf ogt, %17, %18 : vector<16x64xf32>
    %20 = math.exp %17 : vector<16x64xf32>
    %cst_8 = arith.constant 1.000000e+00 : f32
    %21 = vector.broadcast %cst_8 : f32 to vector<16x64xf32>
    %22 = arith.subf %20, %21 : vector<16x64xf32>
    %23 = arith.select %19, %17, %22 : vector<16x64xi1>, vector<16x64xf32>
    %cst_9 = arith.constant dense<0.000000e+00> : vector<16xf32>
    %24 = vector.multi_reduction <add>, %23, %cst_9 [1] : vector<16x64xf32> to vector<16xf32>
    %25 = vector.shape_cast %24 : vector<16xf32> to vector<16x1xf32>
    %26 = arith.mulf %23, %23 : vector<16x64xf32>
    %cst_10 = arith.constant dense<0.000000e+00> : vector<16xf32>
    %27 = vector.multi_reduction <add>, %26, %cst_10 [1] : vector<16x64xf32> to vector<16xf32>
    %28 = vector.shape_cast %27 : vector<16xf32> to vector<16x1xf32>
    %29 = tpu.concatenate %25, %28 in 1 : vector<16x1xf32>, vector<16x1xf32> -> vector<16x2xf32>
    %c0_11 = arith.constant 0 : index
    %c0_12 = arith.constant 0 : index
    %30 = vector.load %arg9[%c0_11, %c0_12] : memref<16x16xf32, #tpu.memory_space<vmem>>, vector<16x16xf32>
    %cst_13 = arith.constant dense<0.000000e+00> : vector<16x2xf32>
    %31 = tpu.matmul %30, %29, %cst_13 {dimension_numbers = #tpu.dot_dimension_numbers<[1], [0], [0], [1], [0, 0, 1, 1], [], []>} : vector<16x16xf32>, vector<16x2xf32>, vector<16x2xf32> -> vector<16x2xf32>
    %32 = vector.extract_strided_slice %31 {offsets = [0, 0], sizes = [16, 1], strides = [1, 1]} : vector<16x2xf32> to vector<16x1xf32>
    %33 = vector.extract_strided_slice %31 {offsets = [0, 1], sizes = [16, 1], strides = [1, 1]} : vector<16x2xf32> to vector<16x1xf32>
    %34 = arith.mulf %32, %32 : vector<16x1xf32>
    %35 = arith.subf %33, %34 : vector<16x1xf32>
    %cst_14 = arith.constant 0.000000e+00 : f32
    %36 = vector.broadcast %cst_14 : f32 to vector<16x1xf32>
    %37 = arith.maximumf %35, %36 : vector<16x1xf32>
    %cst_15 = arith.constant 9.99999974E-6 : f32
    %38 = vector.broadcast %cst_15 : f32 to vector<16x1xf32>
    %39 = arith.addf %37, %38 : vector<16x1xf32>
    %40 = math.rsqrt %39 : vector<16x1xf32>
    %c0_16 = arith.constant 0 : index
    %c0_17 = arith.constant 0 : index
    %41 = vector.load %arg7[%c0_16, %c0_17] : memref<16x1xf32, #tpu.memory_space<vmem>>, vector<16x1xf32>
    %42 = arith.mulf %40, %41 : vector<16x1xf32>
    %c0_18 = arith.constant 0 : index
    %c0_19 = arith.constant 0 : index
    %43 = vector.load %arg8[%c0_18, %c0_19] : memref<16x1xf32, #tpu.memory_space<vmem>>, vector<16x1xf32>
    %44 = arith.mulf %32, %42 : vector<16x1xf32>
    %45 = arith.subf %43, %44 : vector<16x1xf32>
    %46 = vector.broadcast %42 : vector<16x1xf32> to vector<16x64xf32>
    %47 = arith.mulf %23, %46 : vector<16x64xf32>
    %48 = vector.broadcast %45 : vector<16x1xf32> to vector<16x64xf32>
    %49 = arith.addf %47, %48 : vector<16x64xf32>
    %50 = arith.truncf %49 : vector<16x64xf32> to vector<16x64xbf16>
    %c0_20 = arith.constant 0 : index
    %c0_21 = arith.constant 0 : index
    %c0_22 = arith.constant 0 : index
    %c0_23 = arith.constant 0 : index
    %51 = vector.load %arg2[%c0_20, %c0_21, %c0_22, %c0_23] : memref<1x18x18x8xbf16, #tpu.memory_space<vmem>>, vector<1x18x18x8xbf16>
    %52 = vector.shape_cast %51 : vector<1x18x18x8xbf16> to vector<18x18x8xbf16>
    %53 = vector.extract_strided_slice %52 {offsets = [0, 0, 0], sizes = [16, 16, 8], strides = [1, 1, 1]} : vector<18x18x8xbf16> to vector<16x16x8xbf16>
    %54 = vector.extract_strided_slice %52 {offsets = [0, 1, 0], sizes = [16, 16, 8], strides = [1, 1, 1]} : vector<18x18x8xbf16> to vector<16x16x8xbf16>
    %55 = vector.extract_strided_slice %52 {offsets = [0, 2, 0], sizes = [16, 16, 8], strides = [1, 1, 1]} : vector<18x18x8xbf16> to vector<16x16x8xbf16>
    %56 = vector.extract_strided_slice %52 {offsets = [1, 0, 0], sizes = [16, 16, 8], strides = [1, 1, 1]} : vector<18x18x8xbf16> to vector<16x16x8xbf16>
    %57 = vector.extract_strided_slice %52 {offsets = [1, 1, 0], sizes = [16, 16, 8], strides = [1, 1, 1]} : vector<18x18x8xbf16> to vector<16x16x8xbf16>
    %58 = vector.extract_strided_slice %52 {offsets = [1, 2, 0], sizes = [16, 16, 8], strides = [1, 1, 1]} : vector<18x18x8xbf16> to vector<16x16x8xbf16>
    %59 = vector.extract_strided_slice %52 {offsets = [2, 0, 0], sizes = [16, 16, 8], strides = [1, 1, 1]} : vector<18x18x8xbf16> to vector<16x16x8xbf16>
    %60 = vector.extract_strided_slice %52 {offsets = [2, 1, 0], sizes = [16, 16, 8], strides = [1, 1, 1]} : vector<18x18x8xbf16> to vector<16x16x8xbf16>
    %61 = vector.extract_strided_slice %52 {offsets = [2, 2, 0], sizes = [16, 16, 8], strides = [1, 1, 1]} : vector<18x18x8xbf16> to vector<16x16x8xbf16>
    %62 = tpu.concatenate %53, %54, %55, %56, %57, %58, %59, %60, %61 in 2 : vector<16x16x8xbf16>, vector<16x16x8xbf16>, vector<16x16x8xbf16>, vector<16x16x8xbf16>, vector<16x16x8xbf16>, vector<16x16x8xbf16>, vector<16x16x8xbf16>, vector<16x16x8xbf16>, vector<16x16x8xbf16> -> vector<16x16x72xbf16>
    %63 = vector.shape_cast %62 : vector<16x16x72xbf16> to vector<256x72xbf16>
    %c0_24 = arith.constant 0 : index
    %c0_25 = arith.constant 0 : index
    %64 = vector.load %arg4[%c0_24, %c0_25] : memref<16x72xbf16, #tpu.memory_space<vmem>>, vector<16x72xbf16>
    %cst_26 = arith.constant dense<0.000000e+00> : vector<16x256xf32>
    %65 = tpu.matmul %64, %63, %cst_26 {dimension_numbers = #tpu.dot_dimension_numbers<[1], [1], [0], [0], [0, 0, 1, 0], [], []>} : vector<16x72xbf16>, vector<256x72xbf16>, vector<16x256xf32> -> vector<16x256xf32>
    %c0_27 = arith.constant 0 : index
    %c0_28 = arith.constant 0 : index
    %66 = vector.load %arg5[%c0_27, %c0_28] : memref<144x16xbf16, #tpu.memory_space<vmem>>, vector<144x16xbf16>
    %cst_29 = arith.constant dense<0.000000e+00> : vector<144x64xf32>
    %67 = tpu.matmul %66, %50, %cst_29 {dimension_numbers = #tpu.dot_dimension_numbers<[1], [0], [0], [1], [0, 0, 1, 1], [], []>} : vector<144x16xbf16>, vector<16x64xbf16>, vector<144x64xf32> -> vector<144x64xf32>
    %68 = arith.truncf %67 : vector<144x64xf32> to vector<144x64xbf16>
    %69 = vector.extract_strided_slice %68 {offsets = [0, 0], sizes = [16, 64], strides = [1, 1]} : vector<144x64xbf16> to vector<16x64xbf16>
    %c0_30 = arith.constant 0 : index
    %c0_31 = arith.constant 0 : index
    %c0_32 = arith.constant 0 : index
    %70 = vector.load %arg14[%c0_30, %c0_31, %c0_32] : memref<9x64x256xbf16, #tpu.memory_space<vmem>>, vector<1x64x256xbf16>
    %71 = vector.shape_cast %70 : vector<1x64x256xbf16> to vector<64x256xbf16>
    %cst_33 = arith.constant dense<0.000000e+00> : vector<16x256xf32>
    %72 = tpu.matmul %69, %71, %cst_33 {dimension_numbers = #tpu.dot_dimension_numbers<[1], [0], [0], [1], [0, 0, 1, 1], [], []>} : vector<16x64xbf16>, vector<64x256xbf16>, vector<16x256xf32> -> vector<16x256xf32>
    %73 = arith.addf %65, %72 : vector<16x256xf32>
    %74 = vector.extract_strided_slice %68 {offsets = [16, 0], sizes = [16, 64], strides = [1, 1]} : vector<144x64xbf16> to vector<16x64xbf16>
    %c1 = arith.constant 1 : index
    %c0_34 = arith.constant 0 : index
    %c0_35 = arith.constant 0 : index
    %75 = vector.load %arg14[%c1, %c0_34, %c0_35] : memref<9x64x256xbf16, #tpu.memory_space<vmem>>, vector<1x64x256xbf16>
    %76 = vector.shape_cast %75 : vector<1x64x256xbf16> to vector<64x256xbf16>
    %cst_36 = arith.constant dense<0.000000e+00> : vector<16x256xf32>
    %77 = tpu.matmul %74, %76, %cst_36 {dimension_numbers = #tpu.dot_dimension_numbers<[1], [0], [0], [1], [0, 0, 1, 1], [], []>} : vector<16x64xbf16>, vector<64x256xbf16>, vector<16x256xf32> -> vector<16x256xf32>
    %78 = arith.addf %73, %77 : vector<16x256xf32>
    %79 = vector.extract_strided_slice %68 {offsets = [32, 0], sizes = [16, 64], strides = [1, 1]} : vector<144x64xbf16> to vector<16x64xbf16>
    %c2 = arith.constant 2 : index
    %c0_37 = arith.constant 0 : index
    %c0_38 = arith.constant 0 : index
    %80 = vector.load %arg14[%c2, %c0_37, %c0_38] : memref<9x64x256xbf16, #tpu.memory_space<vmem>>, vector<1x64x256xbf16>
    %81 = vector.shape_cast %80 : vector<1x64x256xbf16> to vector<64x256xbf16>
    %cst_39 = arith.constant dense<0.000000e+00> : vector<16x256xf32>
    %82 = tpu.matmul %79, %81, %cst_39 {dimension_numbers = #tpu.dot_dimension_numbers<[1], [0], [0], [1], [0, 0, 1, 1], [], []>} : vector<16x64xbf16>, vector<64x256xbf16>, vector<16x256xf32> -> vector<16x256xf32>
    %83 = arith.addf %78, %82 : vector<16x256xf32>
    %84 = vector.extract_strided_slice %68 {offsets = [48, 0], sizes = [16, 64], strides = [1, 1]} : vector<144x64xbf16> to vector<16x64xbf16>
    %c3 = arith.constant 3 : index
    %c0_40 = arith.constant 0 : index
    %c0_41 = arith.constant 0 : index
    %85 = vector.load %arg14[%c3, %c0_40, %c0_41] : memref<9x64x256xbf16, #tpu.memory_space<vmem>>, vector<1x64x256xbf16>
    %86 = vector.shape_cast %85 : vector<1x64x256xbf16> to vector<64x256xbf16>
    %cst_42 = arith.constant dense<0.000000e+00> : vector<16x256xf32>
    %87 = tpu.matmul %84, %86, %cst_42 {dimension_numbers = #tpu.dot_dimension_numbers<[1], [0], [0], [1], [0, 0, 1, 1], [], []>} : vector<16x64xbf16>, vector<64x256xbf16>, vector<16x256xf32> -> vector<16x256xf32>
    %88 = arith.addf %83, %87 : vector<16x256xf32>
    %89 = vector.extract_strided_slice %68 {offsets = [64, 0], sizes = [16, 64], strides = [1, 1]} : vector<144x64xbf16> to vector<16x64xbf16>
    %c4 = arith.constant 4 : index
    %c0_43 = arith.constant 0 : index
    %c0_44 = arith.constant 0 : index
    %90 = vector.load %arg14[%c4, %c0_43, %c0_44] : memref<9x64x256xbf16, #tpu.memory_space<vmem>>, vector<1x64x256xbf16>
    %91 = vector.shape_cast %90 : vector<1x64x256xbf16> to vector<64x256xbf16>
    %cst_45 = arith.constant dense<0.000000e+00> : vector<16x256xf32>
    %92 = tpu.matmul %89, %91, %cst_45 {dimension_numbers = #tpu.dot_dimension_numbers<[1], [0], [0], [1], [0, 0, 1, 1], [], []>} : vector<16x64xbf16>, vector<64x256xbf16>, vector<16x256xf32> -> vector<16x256xf32>
    %93 = arith.addf %88, %92 : vector<16x256xf32>
    %94 = vector.extract_strided_slice %68 {offsets = [80, 0], sizes = [16, 64], strides = [1, 1]} : vector<144x64xbf16> to vector<16x64xbf16>
    %c5 = arith.constant 5 : index
    %c0_46 = arith.constant 0 : index
    %c0_47 = arith.constant 0 : index
    %95 = vector.load %arg14[%c5, %c0_46, %c0_47] : memref<9x64x256xbf16, #tpu.memory_space<vmem>>, vector<1x64x256xbf16>
    %96 = vector.shape_cast %95 : vector<1x64x256xbf16> to vector<64x256xbf16>
    %cst_48 = arith.constant dense<0.000000e+00> : vector<16x256xf32>
    %97 = tpu.matmul %94, %96, %cst_48 {dimension_numbers = #tpu.dot_dimension_numbers<[1], [0], [0], [1], [0, 0, 1, 1], [], []>} : vector<16x64xbf16>, vector<64x256xbf16>, vector<16x256xf32> -> vector<16x256xf32>
    %98 = arith.addf %93, %97 : vector<16x256xf32>
    %99 = vector.extract_strided_slice %68 {offsets = [96, 0], sizes = [16, 64], strides = [1, 1]} : vector<144x64xbf16> to vector<16x64xbf16>
    %c6 = arith.constant 6 : index
    %c0_49 = arith.constant 0 : index
    %c0_50 = arith.constant 0 : index
    %100 = vector.load %arg14[%c6, %c0_49, %c0_50] : memref<9x64x256xbf16, #tpu.memory_space<vmem>>, vector<1x64x256xbf16>
    %101 = vector.shape_cast %100 : vector<1x64x256xbf16> to vector<64x256xbf16>
    %cst_51 = arith.constant dense<0.000000e+00> : vector<16x256xf32>
    %102 = tpu.matmul %99, %101, %cst_51 {dimension_numbers = #tpu.dot_dimension_numbers<[1], [0], [0], [1], [0, 0, 1, 1], [], []>} : vector<16x64xbf16>, vector<64x256xbf16>, vector<16x256xf32> -> vector<16x256xf32>
    %103 = arith.addf %98, %102 : vector<16x256xf32>
    %104 = vector.extract_strided_slice %68 {offsets = [112, 0], sizes = [16, 64], strides = [1, 1]} : vector<144x64xbf16> to vector<16x64xbf16>
    %c7 = arith.constant 7 : index
    %c0_52 = arith.constant 0 : index
    %c0_53 = arith.constant 0 : index
    %105 = vector.load %arg14[%c7, %c0_52, %c0_53] : memref<9x64x256xbf16, #tpu.memory_space<vmem>>, vector<1x64x256xbf16>
    %106 = vector.shape_cast %105 : vector<1x64x256xbf16> to vector<64x256xbf16>
    %cst_54 = arith.constant dense<0.000000e+00> : vector<16x256xf32>
    %107 = tpu.matmul %104, %106, %cst_54 {dimension_numbers = #tpu.dot_dimension_numbers<[1], [0], [0], [1], [0, 0, 1, 1], [], []>} : vector<16x64xbf16>, vector<64x256xbf16>, vector<16x256xf32> -> vector<16x256xf32>
    %108 = arith.addf %103, %107 : vector<16x256xf32>
    %109 = vector.extract_strided_slice %68 {offsets = [128, 0], sizes = [16, 64], strides = [1, 1]} : vector<144x64xbf16> to vector<16x64xbf16>
    %c8 = arith.constant 8 : index
    %c0_55 = arith.constant 0 : index
    %c0_56 = arith.constant 0 : index
    %110 = vector.load %arg14[%c8, %c0_55, %c0_56] : memref<9x64x256xbf16, #tpu.memory_space<vmem>>, vector<1x64x256xbf16>
    %111 = vector.shape_cast %110 : vector<1x64x256xbf16> to vector<64x256xbf16>
    %cst_57 = arith.constant dense<0.000000e+00> : vector<16x256xf32>
    %112 = tpu.matmul %109, %111, %cst_57 {dimension_numbers = #tpu.dot_dimension_numbers<[1], [0], [0], [1], [0, 0, 1, 1], [], []>} : vector<16x64xbf16>, vector<64x256xbf16>, vector<16x256xf32> -> vector<16x256xf32>
    %113 = arith.addf %108, %112 : vector<16x256xf32>
    %c0_58 = arith.constant 0 : index
    %c0_59 = arith.constant 0 : index
    %114 = vector.load %arg10[%c0_58, %c0_59] : memref<16x1xf32, #tpu.memory_space<vmem>>, vector<16x1xf32>
    %115 = vector.broadcast %114 : vector<16x1xf32> to vector<16x256xf32>
    %116 = arith.addf %113, %115 : vector<16x256xf32>
    %cst_60 = arith.constant 0.000000e+00 : f32
    %117 = vector.broadcast %cst_60 : f32 to vector<16x256xf32>
    %118 = arith.cmpf ogt, %116, %117 : vector<16x256xf32>
    %119 = math.exp %116 : vector<16x256xf32>
    %cst_61 = arith.constant 1.000000e+00 : f32
    %120 = vector.broadcast %cst_61 : f32 to vector<16x256xf32>
    %121 = arith.subf %119, %120 : vector<16x256xf32>
    %122 = arith.select %118, %116, %121 : vector<16x256xi1>, vector<16x256xf32>
    %cst_62 = arith.constant dense<0.000000e+00> : vector<16xf32>
    %123 = vector.multi_reduction <add>, %122, %cst_62 [1] : vector<16x256xf32> to vector<16xf32>
    %124 = vector.shape_cast %123 : vector<16xf32> to vector<16x1xf32>
    %125 = arith.mulf %122, %122 : vector<16x256xf32>
    %cst_63 = arith.constant dense<0.000000e+00> : vector<16xf32>
    %126 = vector.multi_reduction <add>, %125, %cst_63 [1] : vector<16x256xf32> to vector<16xf32>
    %127 = vector.shape_cast %126 : vector<16xf32> to vector<16x1xf32>
    %128 = tpu.concatenate %124, %127 in 1 : vector<16x1xf32>, vector<16x1xf32> -> vector<16x2xf32>
    %c0_64 = arith.constant 0 : index
    %c0_65 = arith.constant 0 : index
    %129 = vector.load %arg13[%c0_64, %c0_65] : memref<16x16xf32, #tpu.memory_space<vmem>>, vector<16x16xf32>
    %cst_66 = arith.constant dense<0.000000e+00> : vector<16x2xf32>
    %130 = tpu.matmul %129, %128, %cst_66 {dimension_numbers = #tpu.dot_dimension_numbers<[1], [0], [0], [1], [0, 0, 1, 1], [], []>} : vector<16x16xf32>, vector<16x2xf32>, vector<16x2xf32> -> vector<16x2xf32>
    %131 = vector.extract_strided_slice %130 {offsets = [0, 0], sizes = [16, 1], strides = [1, 1]} : vector<16x2xf32> to vector<16x1xf32>
    %132 = vector.extract_strided_slice %130 {offsets = [0, 1], sizes = [16, 1], strides = [1, 1]} : vector<16x2xf32> to vector<16x1xf32>
    %133 = arith.mulf %131, %131 : vector<16x1xf32>
    %134 = arith.subf %132, %133 : vector<16x1xf32>
    %cst_67 = arith.constant 0.000000e+00 : f32
    %135 = vector.broadcast %cst_67 : f32 to vector<16x1xf32>
    %136 = arith.maximumf %134, %135 : vector<16x1xf32>
    %cst_68 = arith.constant 9.99999974E-6 : f32
    %137 = vector.broadcast %cst_68 : f32 to vector<16x1xf32>
    %138 = arith.addf %136, %137 : vector<16x1xf32>
    %139 = math.rsqrt %138 : vector<16x1xf32>
    %c0_69 = arith.constant 0 : index
    %c0_70 = arith.constant 0 : index
    %140 = vector.load %arg11[%c0_69, %c0_70] : memref<16x1xf32, #tpu.memory_space<vmem>>, vector<16x1xf32>
    %141 = arith.mulf %139, %140 : vector<16x1xf32>
    %c0_71 = arith.constant 0 : index
    %c0_72 = arith.constant 0 : index
    %142 = vector.load %arg12[%c0_71, %c0_72] : memref<16x1xf32, #tpu.memory_space<vmem>>, vector<16x1xf32>
    %143 = arith.mulf %131, %141 : vector<16x1xf32>
    %144 = arith.subf %142, %143 : vector<16x1xf32>
    %145 = vector.broadcast %141 : vector<16x1xf32> to vector<16x256xf32>
    %146 = arith.mulf %122, %145 : vector<16x256xf32>
    %147 = vector.broadcast %144 : vector<16x1xf32> to vector<16x256xf32>
    %148 = arith.addf %146, %147 : vector<16x256xf32>
    %c0_73 = arith.constant 0 : index
    %c0_74 = arith.constant 0 : index
    %c0_75 = arith.constant 0 : index
    %149 = vector.load %arg15[%c0_73, %c0_74, %c0_75] : memref<1x16x256xf32, #tpu.memory_space<vmem>>, vector<1x16x256xf32>
    %150 = vector.shape_cast %149 : vector<1x16x256xf32> to vector<16x256xf32>
    %151 = vector.shape_cast %148 : vector<16x256xf32> to vector<1x16x256xf32>
    tpu.vector_store %arg15[%c0_73, %c0_74, %c0_75], %151 {strides = array<i32>} : memref<1x16x256xf32, #tpu.memory_space<vmem>>, vector<1x16x256xf32>,
    return
  }
  func.func @transform_0(%arg0: i32) -> (i32, i32, i32, i32) {
    %c0_i32 = arith.constant 0 : i32
    %c0_i32_0 = arith.constant 0 : i32
    %c0_i32_1 = arith.constant 0 : i32
    %c0_i32_2 = arith.constant 0 : i32
    return %arg0, %c0_i32, %c0_i32_0, %c0_i32_1 : i32, i32, i32, i32
  }
  func.func @transform_1(%arg0: i32) -> (i32, i32, i32, i32) {
    %c0_i32 = arith.constant 0 : i32
    %c0_i32_0 = arith.constant 0 : i32
    %c0_i32_1 = arith.constant 0 : i32
    %c0_i32_2 = arith.constant 0 : i32
    return %arg0, %c0_i32, %c0_i32_0, %c0_i32_1 : i32, i32, i32, i32
  }
  func.func @transform_2(%arg0: i32) -> (i32, i32) {
    %c0_i32 = arith.constant 0 : i32
    %c0_i32_0 = arith.constant 0 : i32
    %c0_i32_1 = arith.constant 0 : i32
    return %c0_i32, %c0_i32_0 : i32, i32
  }
  func.func @transform_3(%arg0: i32) -> (i32, i32) {
    %c0_i32 = arith.constant 0 : i32
    %c0_i32_0 = arith.constant 0 : i32
    %c0_i32_1 = arith.constant 0 : i32
    return %c0_i32, %c0_i32_0 : i32, i32
  }
  func.func @transform_4(%arg0: i32) -> (i32, i32) {
    %c0_i32 = arith.constant 0 : i32
    %c0_i32_0 = arith.constant 0 : i32
    %c0_i32_1 = arith.constant 0 : i32
    return %c0_i32, %c0_i32_0 : i32, i32
  }
  func.func @transform_5(%arg0: i32) -> (i32, i32) {
    %c0_i32 = arith.constant 0 : i32
    %c0_i32_0 = arith.constant 0 : i32
    %c0_i32_1 = arith.constant 0 : i32
    return %c0_i32, %c0_i32_0 : i32, i32
  }
  func.func @transform_6(%arg0: i32) -> (i32, i32) {
    %c0_i32 = arith.constant 0 : i32
    %c0_i32_0 = arith.constant 0 : i32
    %c0_i32_1 = arith.constant 0 : i32
    return %c0_i32, %c0_i32_0 : i32, i32
  }
  func.func @transform_7(%arg0: i32) -> (i32, i32) {
    %c0_i32 = arith.constant 0 : i32
    %c0_i32_0 = arith.constant 0 : i32
    %c0_i32_1 = arith.constant 0 : i32
    return %c0_i32, %c0_i32_0 : i32, i32
  }
  func.func @transform_8(%arg0: i32) -> (i32, i32) {
    %c0_i32 = arith.constant 0 : i32
    %c0_i32_0 = arith.constant 0 : i32
    %c0_i32_1 = arith.constant 0 : i32
    return %c0_i32, %c0_i32_0 : i32, i32
  }
  func.func @transform_9(%arg0: i32) -> (i32, i32) {
    %c0_i32 = arith.constant 0 : i32
    %c0_i32_0 = arith.constant 0 : i32
    %c0_i32_1 = arith.constant 0 : i32
    return %c0_i32, %c0_i32_0 : i32, i32
  }
  func.func @transform_10(%arg0: i32) -> (i32, i32) {
    %c0_i32 = arith.constant 0 : i32
    %c0_i32_0 = arith.constant 0 : i32
    %c0_i32_1 = arith.constant 0 : i32
    return %c0_i32, %c0_i32_0 : i32, i32
  }
  func.func @transform_11(%arg0: i32) -> (i32, i32) {
    %c0_i32 = arith.constant 0 : i32
    %c0_i32_0 = arith.constant 0 : i32
    %c0_i32_1 = arith.constant 0 : i32
    return %c0_i32, %c0_i32_0 : i32, i32
  }
  func.func @transform_12(%arg0: i32) -> (i32, i32) {
    %c0_i32 = arith.constant 0 : i32
    %c0_i32_0 = arith.constant 0 : i32
    %c0_i32_1 = arith.constant 0 : i32
    return %c0_i32, %c0_i32_0 : i32, i32
  }
  func.func @transform_13(%arg0: i32) -> (i32, i32, i32) {
    %c0_i32 = arith.constant 0 : i32
    %c0_i32_0 = arith.constant 0 : i32
    %c0_i32_1 = arith.constant 0 : i32
    %c0_i32_2 = arith.constant 0 : i32
    return %c0_i32, %c0_i32_0, %c0_i32_1 : i32, i32, i32
  }
  func.func @transform_14(%arg0: i32) -> (i32, i32, i32) {
    %c0_i32 = arith.constant 0 : i32
    %c0_i32_0 = arith.constant 0 : i32
    %c0_i32_1 = arith.constant 0 : i32
    return %arg0, %c0_i32, %c0_i32_0 : i32, i32, i32
  }
}

</mosaic_0001>

<bundles_post_ra>
// kernel: upblock_forward.1
= control target key start
LH: loop header
LB: loop body
LE: loop exit
PB: predicated region body
PF: predicated region fallthrough
CT: control target
= control target key end

     0   :  { %s4177_s29 = smov 0   ;;  %s5851_s0 = inlined_call_operand.vmem [shape: bf16[2,10,10,4], index: 0, kind: input, shape index: {}]   ;;  %s5852_s1 = inlined_call_operand.vmem [shape: bf16[2,18,18,8], index: 1, kind: input, shape index: {}]   ;;  %s5853_s2 = inlined_call_operand.vmem [shape: bf16[16,36], index: 2, kind: input, shape index: {}]   ;;  %s5854_s3 = inlined_call_operand.vmem [shape: bf16[16,72], index: 3, kind: input, shape index: {}]   ;;  %s5855_s4 = inlined_call_operand.vmem [shape: bf16[144,16], index: 4, kind: input, shape index: {}]   ;;  %s5856_s5 = inlined_call_operand.vmem [shape: f32[16,1], index: 5, kind: input, shape index: {}]   ;;  %s5857_s6 = inlined_call_operand.vmem [shape: f32[16,1], index: 6, kind: input, shape index: {}]   ;;  %s5858_s7 = inlined_call_operand.vmem [shape: f32[16,1], index: 7, kind: input, shape index: {}]   ;;  %s5859_s8 = inlined_call_operand.vmem [shape: f32[16,16], index: 8, kind: input, shape index: {}]   ;;  %s5860_s9 = inlined_call_operand.vmem [shape: f32[16,1], index: 9, kind: input, shape index: {}]   ;;  %s5861_s10 = inlined_call_operand.vmem [shape: f32[16,1], index: 10, kind: input, shape index: {}]   ;;  %s5862_s11 = inlined_call_operand.vmem [shape: f32[16,1], index: 11, kind: input, shape index: {}]   ;;  %s5863_s12 = inlined_call_operand.vmem [shape: f32[16,16], index: 12, kind: input, shape index: {}]   ;;  %s5864_s13 = inlined_call_operand.vmem [shape: bf16[9,64,256], index: 13, kind: input, shape index: {}]   ;;  %s5865_s14 = inlined_call_operand.vmem [shape: f32[2,16,256], index: 14, kind: output, shape index: {}]  }
   0x1 LB: > { %s3391_s30 = sadd.s32 4294967295, %s4084_s29   ;;  %p3395_p0 = scmp.ge.s32.totalorder %s4084_s29, 1  ;;  %s4084_s29 = sphi %s4177_s29, %s24_s29  }
   0x2   : > { %p422_p1 = scmp.lt.s32.totalorder %s4084_s29, 3 }
   0x4   : > { %p423_p2 = pnand %p3395_p0, %p422_p1 }
   0x5   : > { %p473_p3 = scmp.lt.s32.totalorder (!%p423_p2), %s3391_s30, 1  ;;  %s4086_s19 = smov (!%p423_p2), 12  }
   0x6   : > { %426 = sbr.rel (%p423_p2) target bundleno = 2153 (0x869), region = 76  ;;  %s5868_s20 = smov (!%p423_p2), 8  }
   0x7   : > { %s4088_s21 = smov (!%p423_p2), 4   ;;  %s4089_s22 = smov (!%p423_p2), 20  }
   0x8   : > { %s5866_s23 = smov (!%p423_p2), 16   ;;  %s5878_s24 = smov (!%p423_p2), 24  }
   0x9   : > { %s5876_s25 = smov (!%p423_p2), 32   ;;  %s4093_s26 = smov (!%p423_p2), 28  }
   0xa   : > { %s4098_s27 = smov (!%p423_p2), 48   ;;  %s5880_s17 = smov (!%p423_p2), 64  }
   0xb   : > { %s5891_s30 = smov (!%p473_p3, %s3391_s30), 1  ;;  %vm776_vm0 = vcmask 31744   ;;  %vm801_vm1 = vcmask 64512   ;;  %vm818_vm2 = vcmask 97280   ;;  %vm835_vm3 = vcmask 130048   ;;  %s5884_s28 = smov 8  }
   0xc   : > { %s4019_s15 = smul.u32 80, %s5891_s30  ;;  %vm852_vm4 = vcmask 162816   ;;  %vm869_vm5 = vcmask 195584   ;;  %vm886_vm6 = vcmask 228352   ;;  %vm903_vm7 = vcmask 261120   ;;  %s5885_s16 = smov 16  }
   0xd   : > { %vm959_vm8 = vcmask 293888   ;;  %vm999_vm9 = vcmask 523264   ;;  %vm1315_vm12 = vsmask.f32 7424  ;;  %vm1540_vm13 = vcmask 1046528  }
   0xe   : > { %s4191_s18 = scalar_lea.vmem %s5851_s0, %s4019_s15  ;;  %s5874_s15 = smov 1   ;;  %vm1014_vm14 = vcmask 7168   ;;  %vm1987_vm15 = vcmask 326656  }
   0xf   : > { %v4194_v0 = vld [vmem:[%s4191_s18 + $0x30] sm:$0xf]  ;;  %v502_v1 = vld [vmem:[%s4191_s18 + $0x34] sm:$0x1]  ;;  %v4198_v2 = vld [vmem:[%s4191_s18 + $0x38] sm:$0xf] }
  0x10   : > { %v4201_v3 = vunpack.c.l.b16 %v4194_v0  ;;  %v538_v4 = vunpack.c.l.b16 %v502_v1  ;;  %v504_v5 = vld [vmem:[%s4191_s18 + $0x3c] sm:$0x1]  ;;  %v539_v6 = vunpack.c.l.b16 %v4198_v2  ;;  %v505_v7 = vld [vmem:[%s4191_s18 + $0x40] sm:$0xf]  ;;  %v506_v8 = vld [vmem:[%s4191_s18 + $0x44] sm:$0x1] }
  0x11   : > { %v540_v9 = vunpack.c.l.b16 %v504_v5  ;;  %v646_v11 = vunpack.c.l.b16 %v505_v7  ;;  %v672_v12 = vunpack.c.l.b16 %v506_v8  ;;  %v507_v30 = vld [vmem:[%s4191_s18 + $0x48] sm:$0xf]  ;;  %v508_v31 = vld [vmem:[%s4191_s18 + $0x4c] sm:$0x1]  ;;  %v4235_v36 = vld [vmem:[%s4191_s18 + $0x20] sm:$0xf] }
  0x12   : > { %v547_v10 = vpack.c.b16 %v538_v4, %v4201_v3  ;;  %v4208_v13 = vpack.c.b16 %v539_v6, %v539_v6  ;;  %v715_v33 = vunpack.c.l.b16 %v507_v30  ;;  %v734_v34 = vunpack.c.l.b16 %v508_v31  ;;  %v498_v37 = vld [vmem:[%s4191_s18 + $0x24] sm:$0x1]  ;;  %v4239_v38 = vld [vmem:[%s4191_s18 + $0x28] sm:$0xf]  ;;  %v500_v39 = vld [vmem:[%s4191_s18 + $0x2c] sm:$0x1] }
  0x13   : > { %v548_v14 = vpack.c.b16 %v540_v9, %v539_v6  ;;  %v673_v20 = vpack.c.b16 %v672_v12, %v646_v11  ;;  %v654_v22 = vpack.c.b16 %v646_v11, %v646_v11  ;;  %v4245_v42 = vunpack.c.l.b16 %v4235_v36  ;;  %v4278_v4 = vld [vmem:[%s4191_s18 + $0x10] sm:$0xf]  ;;  %v494_v5 = vld [vmem:[%s4191_s18 + $0x14] sm:$0x1]  ;;  %v496_v9 = vld [vmem:[%s4191_s18 + $0x1c] sm:$0x1] }
  0x14   : > { %v4210_v15 = vrot.slane %v547_v10, 1  ;;  %v592_v16 = vshrl.u32 %v547_v10, 16  ;;  %v594_v17 = vshll.u32 %v547_v10, 16  ;;  %667 = vrot.lane.b32.xlu2 %v4208_v13, %s4086_s19  ;;  %v735_v35 = vpack.c.b16 %v734_v34, %v715_v33  ;;  %v3402_v34 = vld [vmem:[%s4191_s18] sm:$0xf] }
  0x15   : > { %v601_v19 = vshll.u32 %v548_v14, 16  ;;  %v4220_v23 = vrot.slane %v548_v14, 1  ;;  %v599_v24 = vshrl.u32 %v548_v14, 16  ;;  %v677_v26 = vshll.u32 %v673_v20, 16 }
  0x16   : > { %641 = vrot.lane.b32.xlu1 %v4210_v15, %s5868_s20  ;;  %v596_v18 = vrot.slane %v594_v17, 1  ;;  %v675_v28 = vshrl.u32 %v673_v20, 16  ;;  %v716_v40 = vpack.c.b16 %v715_v33, %v715_v33  ;;  %v739_v41 = vshll.u32 %v735_v35, 16 }
  0x17   : > { %v603_v25 = vrot.slane %v601_v19, 1  ;;  %v679_v29 = vrot.slane %v677_v26, 1  ;;  %v534_v43 = vunpack.c.l.b16 %v498_v37  ;;  %v535_v44 = vunpack.c.l.b16 %v4239_v38 }
  0x18   : > { %v4216_v21 = vor.u32 %v596_v18, %v592_v16  ;;  %v536_v45 = vunpack.c.l.b16 %v500_v39  ;;  %v697_v46 = vrot.slane %v673_v20, 1  ;;  %v737_v47 = vshrl.u32 %v735_v35, 16 }
  0x19   : > { %v4225_v27 = vor.u32 %v603_v25, %v599_v24  ;;  %v680_v32 = vor.u32 %v679_v29, %v675_v28  ;;  %v741_v48 = vrot.slane %v739_v41, 1  ;;  %v545_v49 = vpack.c.b16 %v534_v43, %v4245_v42  ;;  %v4341_v28 = vld [vmem:[%s4191_s18 + $0x8] sm:$0xf]  ;;  %v492_v29 = vld [vmem:[%s4191_s18 + $0xc] sm:$0x1] }
  0x1a   : > { %617 = vrot.lane.b32.xlu0 %v4216_v21, %s4088_s21  ;;  %v546_v50 = vpack.c.b16 %v536_v45, %v535_v44  ;;  %v759_v60 = vrot.slane %v735_v35, 1  ;;  %v651_v61 = vpack.c.b16 %v535_v44, %v535_v44  ;;  %v652_v1 = vpack.c.b16 %v4201_v3, %v4201_v3  ;;  %v4291_v3 = vld [vmem:[%s4191_s18 + $0x18] sm:$0xf]  ;;  %v3915_v35 = vld [vmem:[%s4191_s18] sm:$0x10] }
  0x1b   : > { %v742_v51 = vor.u32 %v741_v48, %v737_v47  ;;  %v580_v52 = vshll.u32 %v545_v49, 16  ;;  %v578_v54 = vshrl.u32 %v545_v49, 16  ;;  %v4266_v63 = vrot.slane %v545_v49, 1 }
  0x1c   : > { %669 = vrot.lane.b32.xlu2 %v654_v22, %s4086_s19  ;;  %v587_v53 = vshll.u32 %v546_v50, 16  ;;  %v585_v56 = vshrl.u32 %v546_v50, 16  ;;  %v4261_v62 = vrot.slane %v546_v50, 1  ;;  %v4285_v6 = vunpack.c.l.b16 %v4278_v4 }
  0x1d   : > { %v582_v55 = vrot.slane %v580_v52, 1  ;;  %v530_v7 = vunpack.c.l.b16 %v494_v5  ;;  %v531_v11 = vunpack.c.l.b16 %v4291_v3  ;;  %v532_v12 = vunpack.c.l.b16 %v496_v9 }
  0x1e   : > { %643 = vrot.lane.b32.xlu1 %v4220_v23, %s5868_s20  ;;  %v589_v57 = vrot.slane %v587_v53, 1  ;;  %v527_v30 = vunpack.c.l.b16 %v4341_v28  ;;  %v528_v31 = vunpack.c.l.b16 %v492_v29 }
  0x1f   : > { %v583_v58 = vor.u32 %v582_v55, %v578_v54  ;;  %v543_v8 = vpack.c.b16 %v530_v7, %v4285_v6  ;;  %v544_v18 = vpack.c.b16 %v532_v12, %v531_v11  ;;  %v4328_v25 = vpack.c.b16 %v531_v11, %v531_v11 }
  0x20   : > { %v4255_v59 = vor.u32 %v589_v57, %v585_v56  ;;  %v647_v54 = vpack.c.b16 %v527_v30, %v527_v30  ;;  %v648_v55 = vpack.c.b16 %v4285_v6, %v4285_v6 }
  0x21   : > { %v566_v10 = vshll.u32 %v543_v8, 16  ;;  %v564_v14 = vshrl.u32 %v543_v8, 16  ;;  %v573_v19 = vshll.u32 %v544_v18, 16  ;;  %v4309_v20 = vrot.slane %v543_v8, 1 }
  0x22   : > { %619 = vrot.lane.b32.xlu0 %v4225_v27, %s4088_s21  ;;  %v4311_v24 = vrot.slane %v544_v18, 1 }
  0x23   : > { %v568_v16 = vrot.slane %v566_v10, 1 }
  0x24   : > { %710 = vrot.lane.b32.xlu2 %v4220_v23, %s4089_s22 }
  0x25   : > { %v4299_v17 = vor.u32 %v568_v16, %v564_v14 }
  0x26   : > { %695 = vrot.lane.b32.xlu1 %v680_v32, %s5866_s23 }
  0x2a   : > { %693 = vrot.lane.b32.xlu0 %v4225_v27, %s5866_s23 }
  0x2c   : > { %731 = vrot.lane.b32.xlu2 %v716_v40, %s5878_s24  ;;  %v3403_v40 = vor.u32 %v3915_v35, %v3402_v34 }
  0x2e   : > { %729 = vrot.lane.b32.xlu1 %v654_v22, %s5878_s24  ;;  %v575_v22 = vrot.slane %v573_v19, 1  ;;  %v552_v44 = vshll.u32 %v3403_v40, 16  ;;  %v621_v47 = vrot.slane %v3403_v40, 1  ;;  %v550_v49 = vshrl.u32 %v3403_v40, 16 }
  0x30   : > { %v554_v50 = vrot.slane %v552_v44, 1 }
  0x32   : > { %712 = vrot.lane.b32.xlu0 %v697_v46, %s4089_s22  ;;  %v555_v52 = vor.u32 %v554_v50, %v550_v49 }
  0x34   : > { %772 = vrot.lane.b32.xlu2 %v697_v46, %s5876_s25 }
  0x36   : > { %757 = vrot.lane.b32.xlu1 %v742_v51, %s4093_s26 }
  0x3a   : > { %755 = vrot.lane.b32.xlu0 %v680_v32, %s4093_s26  ;;  %v542_v32 = vpack.c.b16 %v528_v31, %v527_v30 }
  0x3c   : > { %615 = vrot.lane.b32.xlu2 %v4255_v59, %s4088_s21  ;;  %v559_v39 = vshll.u32 %v542_v32, 16 }
  0x3e   : > { %613 = vrot.lane.b32.xlu1 %v583_v58, %s4088_s21  ;;  %v561_v43 = vrot.slane %v559_v39, 1 }
  0x42   : > { %774 = vrot.lane.b32.xlu0 %v759_v60, %s5876_s25 }
  0x44   : > { %663 = vrot.lane.b32.xlu2 %v651_v61, %s4086_s19 }
  0x46   : > { %639 = vrot.lane.b32.xlu1 %v4261_v62, %s5868_s20 }
  0x4a   : > { %637 = vrot.lane.b32.xlu0 %v4266_v63, %s5868_s20 }
  0x4c   : > { %691 = vrot.lane.b32.xlu2 %v4216_v21, %s5866_s23 }
  0x4e   : > { %689 = vrot.lane.b32.xlu1 %v4255_v59, %s5866_s23 }
  0x52   : > { %665 = vrot.lane.b32.xlu0 %v652_v1, %s4086_s19 }
  0x54   : > { %725 = vrot.lane.b32.xlu2 %v652_v1, %s5878_s24 }
  0x56   : > { %708 = vrot.lane.b32.xlu1 %v4210_v15, %s4089_s22 }
  0x5a   : > { %706 = vrot.lane.b32.xlu0 %v4261_v62, %s4089_s22 }
  0x5c   : > { %753 = vrot.lane.b32.xlu2 %v4225_v27, %s4093_s26 }
  0x5e   : > { %751 = vrot.lane.b32.xlu1 %v4216_v21, %s4093_s26  ;;  %v571_v21 = vshrl.u32 %v544_v18, 16 }
  0x62   : > { %727 = vrot.lane.b32.xlu0 %v4208_v13, %s5878_s24  ;;  %v4317_v13 = vor.u32 %v575_v22, %v571_v21 }
  0x64   : > { %609 = vrot.lane.b32.xlu2 %v4299_v17, %s4088_s21 }
  0x66   : > { %770 = vrot.lane.b32.xlu1 %v4220_v23, %s5876_s25 }
  0x6a   : > { %768 = vrot.lane.b32.xlu0 %v4210_v15, %s5876_s25  ;;  %v650_v15 = vpack.c.b16 %v4245_v42, %v4245_v42  ;;  %v557_v42 = vshrl.u32 %v542_v32, 16 }
  0x6c   : > { %635 = vrot.lane.b32.xlu2 %v4311_v24, %s5868_s20  ;;  %v562_v48 = vor.u32 %v561_v43, %v557_v42 }
  0x6e   : > { %633 = vrot.lane.b32.xlu1 %v4309_v20, %s5868_s20  ;;  %v4319_v23 = vpop.permute.xlu2 %667 }
  0x72   : > { %611 = vrot.lane.b32.xlu0 %v4317_v13, %s4088_s21 }
  0x74   : > { %685 = vrot.lane.b32.xlu2 %v4317_v13, %s5866_s23 }
  0x76   : > { %661 = vrot.lane.b32.xlu1 %v650_v15, %s4086_s19  ;;  %v4330_v26 = vpop.permute.xlu2 %669 }
  0x7a   : > { %659 = vrot.lane.b32.xlu0 %v4328_v25, %s4086_s19 }
  0x7c   : > { %704 = vrot.lane.b32.xlu2 %v4266_v63, %s4089_s22 }
  0x7e   : > { %702 = vrot.lane.b32.xlu1 %v4311_v24, %s4089_s22  ;;  %v4338_v27 = vpop.permute.xlu2 %710 }
  0x82   : > { %687 = vrot.lane.b32.xlu0 %v583_v58, %s5866_s23 }
  0x84   : > { %747 = vrot.lane.b32.xlu2 %v583_v58, %s4093_s26  ;;  %v622_v58 = vrot.slane %v542_v32, 1 }
  0x86   : > { %723 = vrot.lane.b32.xlu1 %v651_v61, %s5878_s24  ;;  %v4348_v33 = vpop.permute.xlu2 %731 }
  0x88   : > { %v642_v37 = vpop.permute.xlu1 %641 }
  0x8a   : > { %721 = vrot.lane.b32.xlu0 %v650_v15, %s5878_s24 }
  0x8c   : > { %v618_v41 = vpop.permute.xlu0 %617  ;;  %766 = vrot.lane.b32.xlu2 %v4261_v62, %s5876_s25 }
  0x8d   : > { %v797_v60 = vsel %vm776_vm0, %v4194_v0, %v618_v41 }
  0x8e   : > { %764 = vrot.lane.b32.xlu1 %v4266_v63, %s5876_s25  ;;  %v773_v46 = vpop.permute.xlu2 %772  ;;  %v815_v1 = vsel %vm801_vm1, %v797_v60, %v642_v37 }
  0x8f   : > { %v832_v0 = vsel %vm818_vm2, %v815_v1, %v4319_v23 }
  0x90   : > { %v644_v45 = vpop.permute.xlu1 %643 }
  0x92   : > { %749 = vrot.lane.b32.xlu0 %v4255_v59, %s4093_s26 }
  0x94   : > { %v620_v51 = vpop.permute.xlu0 %619  ;;  %629 = vrot.lane.b32.xlu2 %v621_v47, %s5868_s20 }
  0x95   : > { %v800_v63 = vsel %vm776_vm0, %v4198_v2, %v620_v51 }
  0x96   : > { %607 = vrot.lane.b32.xlu1 %v562_v48, %s4088_s21  ;;  %v4364_v56 = vpop.permute.xlu2 %615  ;;  %v817_v6 = vsel %vm801_vm1, %v800_v63, %v644_v45 }
  0x97   : > { %v834_v2 = vsel %vm818_vm2, %v817_v6, %v4330_v26  ;;  %v794_v39 = vsel %vm776_vm0, %v4239_v38, %v4364_v56 }
  0x98   : > { %v696_v53 = vpop.permute.xlu1 %695 }
  0x99   : > { %v851_v11 = vsel %vm835_vm3, %v834_v2, %v696_v53 }
  0x9a   : > { %605 = vrot.lane.b32.xlu0 %v555_v52, %s4088_s21  ;;  %s5883_s21 = smov 56  }
  0x9c   : > { %v694_v57 = vpop.permute.xlu0 %693  ;;  %657 = vrot.lane.b32.xlu2 %v648_v55, %s4086_s19 }
  0x9d   : > { %v849_v7 = vsel %vm835_vm3, %v832_v0, %v694_v57 }
  0x9e   : > { %655 = vrot.lane.b32.xlu1 %v647_v54, %s4086_s19  ;;  %v664_v62 = vpop.permute.xlu2 %663  ;;  %v866_v9 = vsel %vm852_vm4, %v849_v7, %v4338_v27  ;;  %s4020_s19 = smul.u32 216, %s5891_s30 }
  0xa0   : > { %v730_v59 = vpop.permute.xlu1 %729 }
  0xa1   : > { %v883_v12 = vsel %vm869_vm5, %v866_v9, %v730_v59 }
  0xa2   : > { %631 = vrot.lane.b32.xlu0 %v622_v58, %s5868_s20 }
  0xa4   : > { %v713_v61 = vpop.permute.xlu0 %712  ;;  %698 = vrot.lane.b32.xlu2 %v622_v58, %s4089_s22 }
  0xa5   : > { %v868_v14 = vsel %vm852_vm4, %v851_v11, %v713_v61 }
  0xa6   : > { %683 = vrot.lane.b32.xlu1 %v4299_v17, %s5866_s23  ;;  %v692_v10 = vpop.permute.xlu2 %691  ;;  %v885_v19 = vsel %vm869_vm5, %v868_v14, %v4348_v33 }
  0xa8   : > { %v758_v5 = vpop.permute.xlu1 %757 }
  0xa9   : > { %v902_v22 = vsel %vm886_vm6, %v885_v19, %v758_v5 }
  0xaa   : > { %681 = vrot.lane.b32.xlu0 %v562_v48, %s5866_s23 }
  0xac   : > { %v756_v8 = vpop.permute.xlu0 %755  ;;  %719 = vrot.lane.b32.xlu2 %v4328_v25, %s5878_s24 }
  0xad   : > { %v900_v16 = vsel %vm886_vm6, %v883_v12, %v756_v8 }
  0xae   : > { %717 = vrot.lane.b32.xlu1 %v648_v55, %s5878_s24  ;;  %v917_v21 = vsel %vm903_vm7, %v900_v16, %v773_v46  ;;  %v726_v30 = vpop.permute.xlu2 %725 }
  0xaf   : > { %v953_v25 = vunpack.c.l.b16 %v917_v21 }
  0xb0   : > { %v614_v18 = vpop.permute.xlu1 %613 }
  0xb2   : > { %700 = vrot.lane.b32.xlu0 %v4309_v20, %s4089_s22  ;;  %s5872_s22 = smov 40  }
  0xb4   : > { %v775_v23 = vpop.permute.xlu0 %774  ;;  %760 = vrot.lane.b32.xlu2 %v4309_v20, %s5876_s25 }
  0xb5   : > { %v919_v15 = vsel %vm903_vm7, %v902_v22, %v775_v23 }
  0xb6   : > { %v954_v26 = vunpack.c.l.b16 %v919_v15  ;;  %745 = vrot.lane.b32.xlu1 %v4317_v13, %s4093_s26  ;;  %v754_v20 = vpop.permute.xlu2 %753 }
  0xb8   : > { %v640_v27 = vpop.permute.xlu1 %639  ;;  %v958_v29 = vpack.c.b16 %v954_v26, %v953_v25 }
  0xb9   : > { %v813_v41 = vsel %vm801_vm1, %v794_v39, %v640_v27 }
  0xba   : > { %743 = vrot.lane.b32.xlu0 %v4299_v17, %s4093_s26  ;;  %v973_v31 = vsel %vm959_vm8, %v958_v29, 0  ;;  %v791_v17 = vsel %vm776_vm0, %v4235_v36, %v614_v18  ;;  %s4498_s26 = scalar_lea.vmem %s5852_s1, %s4020_s19 }
  0xbb   : > { %979 = vmatpush.bf16.xpose.msra.mxu0 %v973_v31 }
  0xbc   : > { %v638_v32 = vpop.permute.xlu0 %637 }
  0xbd   : > { %v811_v43 = vsel %vm801_vm1, %v791_v17, %v638_v32 }
  0xbe   : > { %v610_v13 = vpop.permute.xlu2 %609  ;;  %v828_v45 = vsel %vm818_vm2, %v811_v43, %v664_v62  ;;  %v923_v43 = vld [vmem:[%s5856_s5 + $0x8] sm:$0xff] }
  0xbf   : > { %v785_v2 = vsel %vm776_vm0, %v4278_v4, %v610_v13 }
  0xc0   : > { %v690_v33 = vpop.permute.xlu1 %689 }
  0xc1   : > { %v845_v38 = vsel %vm835_vm3, %v828_v45, %v690_v33  ;;  %v4094_v45 = vmov 0  }
  0xc2   : > { %762 = vrot.lane.b32.xlu0 %v4311_v24, %s5876_s25  ;;  %4045 = vset.pattern.permute.xlu1 %v4094_v45 }
  0xc3   : > { %4046 = vset.pattern.permute.xlu2 %v4094_v45  ;;  %931 = vperm.xlu1 %4045, %v923_v43  }
  0xc4   : > { %v666_v34 = vpop.permute.xlu0 %665  ;;  %4049 = vset.pattern.permute.xlu0 %v4094_v45 }
  0xc5   : > { %v830_v42 = vsel %vm818_vm2, %v813_v41, %v666_v34 }
  0xc6   : > { %v847_v44 = vsel %vm835_vm3, %v830_v42, %v692_v10  ;;  %v636_v47 = vpop.permute.xlu2 %635 }
  0xc8   : > { %v709_v35 = vpop.permute.xlu1 %708 }
  0xc9   : > { %v864_v46 = vsel %vm852_vm4, %v847_v44, %v709_v35  ;;  %v489_v44 = vld [vmem:[%s4191_s18] sm:$0xf]  ;;  %s5870_s18 = smov 56  }
  0xcc   : > { %v707_v37 = vpop.permute.xlu0 %706 }
  0xcd   : > { %v862_v36 = vsel %vm852_vm4, %v845_v38, %v707_v37 }
  0xce   : > { %v879_v51 = vsel %vm869_vm5, %v862_v36, %v726_v30  ;;  %v686_v60 = vpop.permute.xlu2 %685 }
  0xd0   : > { %v752_v40 = vpop.permute.xlu1 %751 }
  0xd1   : > { %v896_v53 = vsel %vm886_vm6, %v879_v51, %v752_v40 }
  0xd4   : > { %v728_v24 = vpop.permute.xlu0 %727 }
  0xd5   : > { %v881_v48 = vsel %vm869_vm5, %v864_v46, %v728_v24  ;;  %v922_v24 = vld [vmem:[%s5856_s5] sm:$0xff] }
  0xd6   : > { %v898_v50 = vsel %vm886_vm6, %v881_v48, %v754_v20  ;;  %v705_v1 = vpop.permute.xlu2 %704  ;;  %926 = vperm.xlu2 %4046, %v922_v24  }
  0xd8   : > { %v771_v49 = vpop.permute.xlu1 %770 }
  0xd9   : > { %v915_v52 = vsel %vm903_vm7, %v898_v50, %v771_v49 }
  0xda   : > { %v952_v56 = vunpack.c.l.b16 %v915_v52 }
  0xdc   : > { %v769_v54 = vpop.permute.xlu0 %768 }
  0xdd   : > { %v913_v55 = vsel %vm903_vm7, %v896_v53, %v769_v54 }
  0xde   : > { %v951_v57 = vunpack.c.l.b16 %v913_v55  ;;  %v748_v7 = vpop.permute.xlu2 %747 }
  0xe0   : > { %v634_v58 = vpop.permute.xlu1 %633  ;;  %v957_v59 = vpack.c.b16 %v952_v56, %v951_v57 }
  0xe1   : > { %v807_v9 = vsel %vm801_vm1, %v785_v2, %v634_v58 }
  0xe2   : > { %v970_v61 = vsel %vm959_vm8, %v957_v59, 0 }
  0xe3   : > { %980 = vmatpush.bf16.xpose.msra.mxu0 %v970_v61 }
  0xe4   : > { %v612_v62 = vpop.permute.xlu0 %611 }
  0xe5   : > { %v788_v10 = vsel %vm776_vm0, %v4291_v3, %v612_v62 }
  0xe6   : > { %v809_v14 = vsel %vm801_vm1, %v788_v10, %v636_v47  ;;  %v767_v18 = vpop.permute.xlu2 %766 }
  0xe8   : > { %v662_v63 = vpop.permute.xlu1 %661 }
  0xe9   : > { %v826_v19 = vsel %vm818_vm2, %v809_v14, %v662_v63 }
  0xec   : > { %v660_v5 = vpop.permute.xlu0 %659 }
  0xed   : > { %v824_v11 = vsel %vm818_vm2, %v807_v9, %v660_v5 }
  0xee   : > { %v841_v16 = vsel %vm835_vm3, %v824_v11, %v686_v60  ;;  %v630_v33 = vpop.permute.xlu2 %629 }
  0xf0   : > { %v703_v6 = vpop.permute.xlu1 %702 }
  0xf1   : > { %v858_v21 = vsel %vm852_vm4, %v841_v16, %v703_v6 }
  0xf4   : > { %v688_v0 = vpop.permute.xlu0 %687 }
  0xf5   : > { %v843_v4 = vsel %vm835_vm3, %v826_v19, %v688_v0 }
  0xf6   : > { %v860_v15 = vsel %vm852_vm4, %v843_v4, %v705_v1  ;;  %v658_v13 = vpop.permute.xlu2 %657 }
  0xf8   : > { %v724_v8 = vpop.permute.xlu1 %723 }
  0xf9   : > { %v877_v25 = vsel %vm869_vm5, %v860_v15, %v724_v8  ;;  %v3916_v8 = vld [vmem:[%s5853_s2] sm:$0xff] }
  0xfc   : > { %v722_v12 = vpop.permute.xlu0 %721 }
  0xfd   : > { %v875_v22 = vsel %vm869_vm5, %v858_v21, %v722_v12 }
  0xfe   : > { %v892_v3 = vsel %vm886_vm6, %v875_v22, %v748_v7  ;;  %v699_v41 = vpop.permute.xlu2 %698 }
 0x100   : > { %v765_v23 = vpop.permute.xlu1 %764 }
 0x101   : > { %v909_v26 = vsel %vm903_vm7, %v892_v3, %v765_v23 }
 0x102   : > { %v949_v31 = vunpack.c.l.b16 %v909_v26 }
 0x104   : > { %v750_v27 = vpop.permute.xlu0 %749 }
 0x105   : > { %v894_v29 = vsel %vm886_vm6, %v877_v25, %v750_v27 }
 0x106   : > { %v911_v30 = vsel %vm903_vm7, %v894_v29, %v767_v18  ;;  %v720_v38 = vpop.permute.xlu2 %719 }
 0x107   : > { %v950_v32 = vunpack.c.l.b16 %v911_v30 }
 0x108   : > { %v608_v20 = vpop.permute.xlu1 %607 }
 0x109   : > { %v956_v34 = vpack.c.b16 %v950_v32, %v949_v31  ;;  %v782_v36 = vsel %vm776_vm0, %v4341_v28, %v608_v20  ;;  %v4501_v32 = vld [vmem:[%s4498_s26 + $0x54] sm:$0xff]  ;;  %v1085_v20 = vld [vmem:[%s5857_s6 + $0x8] sm:$0xff] }
 0x10b   : > { %v967_v35 = vsel %vm959_vm8, %v956_v34, 0 }
 0x10c   : > { %981 = vmatpush.bf16.xpose.msra.mxu0 %v967_v35  ;;  %v606_v37 = vpop.permute.xlu0 %605  ;;  %v4509_v35 = vld [vmem:[%s4498_s26 + $0x60] sm:$0xff] }
 0x10d   : > { %v779_v47 = vsel %vm776_vm0, %v489_v44, %v606_v37  ;;  %v1159_v37 = vld [vmem:[%s4498_s26 + $0x68] sm:$0x1]  ;;  %v1413_v24 = vshrl.u32 %v4509_v35, 16  ;;  %v1415_v44 = vshll.u32 %v4509_v35, 16  ;;  %vm2020_vm0 = vcmask 392192  }
 0x10e   : > { %v803_v49 = vsel %vm801_vm1, %v779_v47, %v630_v33  ;;  %v761_v59 = vpop.permute.xlu2 %760  ;;  %v1156_v33 = vld [vmem:[%s4498_s26 + $0x5c] sm:$0x1] }
 0x10f   : > { %v1290_v34 = vunpack.c.l.b16 %v1156_v33  ;;  %v1017_v33 = vld [vmem:[%s5859_s8] sm:$0xff] }
 0x110   : > { %v656_v39 = vpop.permute.xlu1 %655 }
 0x111   : > { %v820_v50 = vsel %vm818_vm2, %v803_v49, %v656_v39  ;;  %v1401_v39 = vshrl.u32 %v4501_v32, 16  ;;  %v1306_v43 = vpack.c.b16 %v1290_v34, %v1290_v34  ;;  %v1417_v49 = vrot.slane %v1415_v44, 1 }
 0x114   : > { %v632_v17 = vpop.permute.xlu0 %631 }
 0x115   : > { %v805_v51 = vsel %vm801_vm1, %v782_v36, %v632_v17  ;;  %v1403_v17 = vshll.u32 %v4501_v32, 16  ;;  %v1408_v36 = vshll.u32 %v1306_v43, 16 }
 0x116   : > { %v822_v54 = vsel %vm818_vm2, %v805_v51, %v658_v13  ;;  %v4513_v13 = vld [vmem:[%s4498_s26 + $0x6c] sm:$0xff]  ;;  %vm2053_vm2 = vcmask 457728  }
 0x117   : > { %v1405_v47 = vrot.slane %v1403_v17, 1 }
 0x118   : > { %v684_v42 = vpop.permute.xlu1 %683 }
 0x119   : > { %v839_v56 = vsel %vm835_vm3, %v822_v54, %v684_v42  ;;  %v1162_v42 = vld [vmem:[%s4498_s26 + $0x74] sm:$0x1]  ;;  %v1406_v51 = vor.u32 %v1405_v47, %v1401_v39  ;;  %v1418_v54 = vor.u32 %v1417_v49, %v1413_v24  ;;  %v1568_v47 = vrot.slane %v4513_v13, 1 }
 0x11c   : > { %v682_v40 = vpop.permute.xlu0 %681 }
 0x11d   : > { %v837_v52 = vsel %vm835_vm3, %v820_v50, %v682_v40  ;;  %v1291_v40 = vunpack.c.l.b16 %v1159_v37 }
 0x11e   : > { %v854_v55 = vsel %vm852_vm4, %v837_v52, %v699_v41  ;;  %v1084_v41 = vld [vmem:[%s5857_s6] sm:$0xff] }
 0x120   : > { %v718_v48 = vpop.permute.xlu1 %717 }
 0x121   : > { %v871_v57 = vsel %vm869_vm5, %v854_v55, %v718_v48  ;;  %v1427_v48 = vshll.u32 %v4513_v13, 16  ;;  %v1425_v55 = vshrl.u32 %v4513_v13, 16 }
 0x124   : > { %v701_v46 = vpop.permute.xlu0 %700 }
 0x125   : > { %v856_v58 = vsel %vm852_vm4, %v839_v56, %v701_v46  ;;  %v1292_v46 = vunpack.c.l.b16 %v1162_v42  ;;  %v1429_v56 = vrot.slane %v1427_v48, 1  ;;  %v1018_v42 = vld [vmem:[%s5859_s8 + $0x8] sm:$0xff]  ;;  %vm2371_vm4 = vcmask 588800  }
 0x126   : > { %v873_v61 = vsel %vm869_vm5, %v856_v58, %v720_v38  ;;  %v1307_v38 = vpack.c.b16 %v1291_v40, %v1291_v40 }
 0x127   : > { %v4525_v50 = vpack.c.b16 %v1292_v46, %v1292_v46 }
 0x128   : > { %v746_v60 = vpop.permute.xlu1 %745  ;;  %v1420_v52 = vshll.u32 %v1307_v38, 16 }
 0x129   : > { %v890_v63 = vsel %vm886_vm6, %v873_v61, %v746_v60 }
 0x12a   : > { %v1422_v58 = vrot.slane %v1420_v52, 1 }
 0x12c   : > { %v744_v53 = vpop.permute.xlu0 %743 }
 0x12d   : > { %v888_v28 = vsel %vm886_vm6, %v871_v57, %v744_v53  ;;  %v1410_v53 = vrot.slane %v1408_v36, 1  ;;  %v1180_v57 = vld [vmem:[%s4498_s26 + $0xbc] sm:$0x1] }
 0x12e   : > { %v905_v62 = vsel %vm903_vm7, %v888_v28, %v761_v59  ;;  %v1432_v28 = vshll.u32 %v4525_v50, 16  ;;  %v4531_v59 = vld [vmem:[%s4498_s26 + $0xb4] sm:$0xff] }
 0x12f   : > { %v947_v6 = vunpack.c.l.b16 %v905_v62  ;;  %v4534_v61 = vsel %vm1315_vm12, %v1406_v51, %v1410_v53  ;;  %v1562_v62 = vrot.slane %v4501_v32, 1  ;;  %v1586_v24 = vrot.slane %v4531_v59, 1 }
 0x130   : > { %v927_v9 = vpop.permute.xlu2 %926 }
 0x134   : > { %v763_v1 = vpop.permute.xlu0 %762 }
 0x135   : > { %v907_v5 = vsel %vm903_vm7, %v890_v63, %v763_v1  ;;  %v932_v14 = vpop.permute.xlu1 %931  ;;  %v4540_v63 = vsel %vm1315_vm12, %v1418_v54, %v1422_v58  ;;  %v1563_v1 = vrot.slane %v1306_v43, 1 }
 0x136   : > { %v948_v0 = vunpack.c.l.b16 %v907_v5  ;;  %v1298_v5 = vunpack.c.l.b16 %v1180_v57 }
 0x138   : > { %v955_v7 = vpack.c.b16 %v948_v0, %v947_v6  ;;  %v1430_v6 = vor.u32 %v1429_v56, %v1425_v55  ;;  %v1434_v0 = vrot.slane %v1432_v28, 1  ;;  %v3934_v55 = vld [vmem:[%s4498_s26 + $0xcc] sm:$0xff] }
 0x13a   : > { %v964_v2 = vsel %vm959_vm8, %v955_v7, 0  ;;  %v1153_v7 = vld [vmem:[%s4498_s26 + $0x50] sm:$0x1] }
 0x13b   : > { %982 = vmatpush.bf16.xpose.msra.mxu0 %v964_v2  ;;  %v4546_v2 = vsel %vm1540_vm13, %v1562_v62, %v1563_v1 }
 0x142   : > { %3408 = vmatmul.msk.bf16.vlgmr.msra.gmra.mxu0 %vm959_vm8, %v3916_v8  ;;  %v1314_v8 = vpack.c.b16 %v1298_v5, %v1298_v5  ;;  %v3556_v5 = vld [vmem:[%s5864_s13 + $0x30] sm:$0xf] }
 0x144   : > { %v1587_v44 = vrot.slane %v1314_v8, 1 }
 0x146   : > { %v4594_v46 = vsel %vm1540_vm13, %v1586_v24, %v1587_v44  ;;  %v1824_v44 = vrot.slane %v3934_v55, 1 }
 0x1bf   : > { %v984_v10 = vpop.f32.mrf.mxu0 }
 0x1c0   : > { %v985_v11 = vadd.f32 %v984_v10, %v927_v9  ;;  %v1499_v9 = vshll.u32 %v4531_v59, 16  ;;  %v1565_v10 = vrot.slane %v4509_v35, 1 }
 0x1c2   : > { %v991_v12 = vmul.f32 1.442695, %v985_v11  ;;  %vm989_vm10 = vcmp.gt.f32.partialorder %v985_v11, 0.0 }
 0x1c4   : > { %4056 = vpow2.f32 %v991_v12  ;;  %v4553_v12 = vld [vmem:[%s4498_s26 + $0x48] sm:$0xff] }
 0x1c5   : > { %v1389_v34 = vshrl.u32 %v4553_v12, 16  ;;  %v1559_v36 = vrot.slane %v4553_v12, 1 }
 0x1c7   : > { %v986_v16 = vpop.f32.mrf.mxu0 }
 0x1c8   : > { %v987_v18 = vadd.f32 %v986_v16, %v932_v14  ;;  %v1289_v14 = vunpack.c.l.b16 %v1153_v7  ;;  %v4556_v16 = vsel %vm1315_vm12, %v1430_v6, %v1434_v0  ;;  %v3952_v6 = vld [vmem:[%s5864_s13 + $0x34] sm:$0xf0] }
 0x1ca   : > { %v4057_v19 = vpop.eup %4056  ;;  %v993_v21 = vmul.f32 1.442695, %v987_v18  ;;  %vm990_vm11 = vcmp.gt.f32.partialorder %v987_v18, 0.0 }
 0x1cb   : > { %v3409_v4 = vadd.f32 -1.0, %v4057_v19  ;;  %v1501_v19 = vrot.slane %v1499_v9, 1  ;;  %v3548_v9 = vld [vmem:[%s5864_s13 + $0x20] sm:$0xf] }
 0x1cc   : > { %4058 = vpow2.f32 %v993_v21  ;;  %v1504_v21 = vshll.u32 %v1314_v8, 16  ;;  %v3557_v8 = vor.u32 %v3952_v6, %v3556_v5 }
 0x1cd   : > { %v4480_v22 = vsel %vm989_vm10, %v985_v11, %v3409_v4  ;;  %v1566_v11 = vrot.slane %v1307_v38, 1  ;;  %v1569_v38 = vrot.slane %v4525_v50, 1  ;;  %v1183_v50 = vld [vmem:[%s4498_s26 + $0xc8] sm:$0x1] }
 0x1ce   : > { %v1000_v23 = vsel %vm999_vm9, %v4480_v22, 0.0  ;;  %v1006_v3 = vmul.f32 %v4480_v22, %v4480_v22  ;;  %v1659_v53 = vunpack.c.l.b16 %v1183_v50  ;;  %2342 = vmatpush.bf16.msra.mxu3 %v3557_v8  ;;  %v1150_v50 = vld [vmem:[%s4498_s26 + $0x44] sm:$0x1] }
 0x1cf   : > { %1001 = vadd.xlane.f32.xlu2 %v1000_v23  ;;  %v4562_v23 = vsel %vm1540_vm13, %v1565_v10, %v1566_v11  ;;  %v4601_v48 = vsel %vm1540_vm13, %v1568_v47, %v1569_v38  ;;  %v3950_v10 = vld [vmem:[%s5864_s13 + $0x24] sm:$0xf0]  ;;  %v1186_v11 = vld [vmem:[%s4498_s26 + $0xd4] sm:$0x1] }
 0x1d0   : > { %v1008_v29 = vsel %vm999_vm9, %v1006_v3, 0.0  ;;  %v1660_v56 = vpack.c.b16 %v1659_v53, %v1659_v53  ;;  %v1288_v53 = vunpack.c.l.b16 %v1150_v50 }
 0x1d2   : > { %v4059_v15 = vpop.eup %4058  ;;  %v1669_v62 = vshll.u32 %v1660_v56, 16 }
 0x1d3   : > { %v3410_v25 = vadd.f32 -1.0, %v4059_v15 }
 0x1d4   : > { %v1671_v7 = vrot.slane %v1669_v62, 1 }
 0x1d5   : > { %v4486_v26 = vsel %vm990_vm11, %v987_v18, %v3410_v25  ;;  %v1497_v18 = vshrl.u32 %v4531_v59, 16  ;;  %v1305_v25 = vpack.c.b16 %v1289_v14, %v1289_v14  ;;  %v3549_v14 = vor.u32 %v3950_v10, %v3548_v9 }
 0x1d6   : > { %v1003_v27 = vsel %vm999_vm9, %v4486_v26, 0.0  ;;  %v1007_v30 = vmul.f32 %v4486_v26, %v4486_v26 }
 0x1d7   : > { %1004 = vadd.xlane.f32.xlu0 %v1003_v27  ;;  %1009 = vadd.xlane.f32.xlu2 %v1008_v29  ;;  %v1391_v27 = vshll.u32 %v4553_v12, 16  ;;  %v1396_v39 = vshll.u32 %v1305_v25, 16  ;;  %v1560_v49 = vrot.slane %v1305_v25, 1  ;;  %v1706_v25 = vrot.slane %v1660_v56, 1 }
 0x1d8   : > { %v1011_v31 = vsel %vm999_vm9, %v1007_v30, 0.0  ;;  %v1502_v30 = vor.u32 %v1501_v19, %v1497_v18  ;;  %v3540_v18 = vld [vmem:[%s5864_s13 + $0x10] sm:$0xf]  ;;  %v3948_v19 = vld [vmem:[%s5864_s13 + $0x14] sm:$0xf0]  ;;  %2343 = vmatpush.bf16.msra.mxu3 %v3549_v14 }
 0x1d9   : > { %1012 = vadd.xlane.f32.xlu1 %v1011_v31  ;;  %v1506_v31 = vrot.slane %v1504_v21, 1  ;;  %v1393_v37 = vrot.slane %v1391_v27, 1  ;;  %v4607_v51 = vsel %vm1540_vm13, %v1559_v36, %v1560_v49  ;;  %v4687_v49 = vld [vmem:[%s4498_s26 + $0x3c] sm:$0xff]  ;;  %v1177_v14 = vld [vmem:[%s4498_s26 + $0xb0] sm:$0x1] }
 0x1da   : > { %v1379_v56 = vshll.u32 %v4687_v49, 16  ;;  %v1556_v62 = vrot.slane %v4687_v49, 1 }
 0x1db   : > { %v4577_v17 = vsel %vm1315_vm12, %v1502_v30, %v1506_v31  ;;  %v1394_v40 = vor.u32 %v1393_v37, %v1389_v34  ;;  %v1781_v31 = vshrl.u32 %v3934_v55, 16 }
 0x1eb   : > { %1090 = vrot.lane.b32.xlu0 %v1085_v20, %s5874_s15 }
 0x1ef   : > { %1088 = vrot.lane.b32.xlu2 %v1084_v41, %s5874_s15  ;;  %v1398_v41 = vrot.slane %v1396_v39, 1  ;;  %v3532_v39 = vld [vmem:[%s5864_s13] sm:$0xf] }
 0x1f1   : > { %v4587_v43 = vsel %vm1315_vm12, %v1394_v40, %v1398_v41  ;;  %v3946_v40 = vld [vmem:[%s5864_s13 + $0x4] sm:$0xf0] }
 0x1f2   : > { %1522 = vrot.lane.b32.xlu1 %v4534_v61, %s5868_s20 }
 0x1f3   : > { %1687 = vrot.lane.b32.xlu0 %v4540_v63, %s5876_s25 }
 0x1f7   : > { %1603 = vrot.lane.b32.xlu2 %v4546_v2, %s5866_s23 }
 0x1fa   : > { %1640 = vrot.lane.b32.xlu1 %v4509_v35, %s5878_s24 }
 0x1fb   : > { %1806 = vrot.lane.b32.xlu0 %v4556_v16, %s5870_s18  ;;  %s5886_s18 = smov 64  }
 0x1ff   : > { %1722 = vrot.lane.b32.xlu2 %v4562_v23, %s5872_s22 }
 0x202   : > { %1759 = vrot.lane.b32.xlu1 %v4513_v13, %s4098_s27  ;;  %v4612_v13 = vld [vmem:[%s4498_s26 + $0xc0] sm:$0xff] }
 0x203   : > { %1538 = vrot.lane.b32.xlu0 %v4577_v17, %s5868_s20  ;;  %v1664_v57 = vshll.u32 %v4612_v13, 16  ;;  %v1662_v28 = vshrl.u32 %v4612_v13, 16 }
 0x207   : > { %1841 = vrot.lane.b32.xlu2 %v4601_v48, %s5880_s17 }
 0x20a   : > { %1520 = vrot.lane.b32.xlu1 %v4587_v43, %s5868_s20  ;;  %s5882_s20 = smov 40  }
 0x20f   : > { %1601 = vrot.lane.b32.xlu2 %v4607_v51, %s5866_s23 }
 0x212   : > { %1619 = vrot.lane.b32.xlu1 %v4594_v46, %s5866_s23  ;;  %s4101_s23 = smov 127  }
 0x217   : > { %1656 = vrot.lane.b32.xlu2 %v4612_v13, %s5878_s24 }
 0x21f   : > { %1720 = vrot.lane.b32.xlu2 %v4546_v2, %s5872_s22  ;;  %s5887_s22 = smov 24  }
 0x227   : > { %1775 = vrot.lane.b32.xlu2 %v3934_v55, %s4098_s27 }
 0x22f   : > { %1839 = vrot.lane.b32.xlu2 %v4562_v23, %s5880_s17 }
 0x242   : > { %v1002_v60 = vpop.xlane.xlu2 %1001 }
 0x24a   : > { %v1005_v4 = vpop.xlane.xlu0 %1004  ;;  %v1010_v15 = vpop.xlane.xlu2 %1009 }
 0x24b   : > { %v1015_v20 = vsel %vm1014_vm14, %v1002_v60, %v1010_v15  ;;  %v1666_v60 = vrot.slane %v1664_v57, 1  ;;  %v3541_v15 = vor.u32 %v3948_v19, %v3540_v18 }
 0x24c   : > { %v1013_v3 = vpop.xlane.xlu1 %1012 }
 0x24d   : > { %v1016_v29 = vsel %vm1014_vm14, %v1005_v4, %v1013_v3  ;;  %v1667_v0 = vor.u32 %v1666_v60, %v1662_v28  ;;  %v1778_v4 = vunpack.c.l.b16 %v1186_v11  ;;  %v1705_v3 = vrot.slane %v4612_v13, 1  ;;  %2344 = vmatpush.bf16.msra.mxu3 %v3541_v15  ;;  %v4701_v11 = vld [vmem:[%s4498_s26 + $0xa8] sm:$0xff] }
 0x24e   : > { %1039 = vmatpush.msra.mxu1 %v1016_v29  ;;  %v1783_v29 = vshll.u32 %v3934_v55, 16  ;;  %v1304_v28 = vpack.c.b16 %v1288_v53, %v1288_v53  ;;  %v1381_v60 = vrot.slane %v1379_v56, 1  ;;  %v1485_v15 = vshrl.u32 %v4701_v11, 16 }
 0x24f   : > { %v4657_v21 = vsel %vm1315_vm12, %v1667_v0, %v1671_v7  ;;  %v1779_v27 = vpack.c.b16 %v1778_v4, %v1778_v4  ;;  %v4665_v30 = vsel %vm1540_vm13, %v1705_v3, %v1706_v25  ;;  %v1297_v4 = vunpack.c.l.b16 %v1177_v14 }
 0x250   : > { %1040 = vmatpush.msra.mxu1 %v1015_v20  ;;  %v1384_v5 = vshll.u32 %v1304_v28, 16  ;;  %v1557_v6 = vrot.slane %v1304_v28, 1  ;;  %v1487_v3 = vshll.u32 %v4701_v11, 16  ;;  %v4100_v28 = vmov 1  }
 0x251   : > { %3411 = vmatmul.msk.f32.vlgmr.msra.gmra.mxu1 %vm835_vm3, %v1017_v33  ;;  %v1785_v33 = vrot.slane %v1783_v29, 1  ;;  %v1788_v20 = vshll.u32 %v1779_v27, 16  ;;  %v1825_v47 = vrot.slane %v1779_v27, 1  ;;  %v1313_v25 = vpack.c.b16 %v1297_v4, %v1297_v4  ;;  %4047 = vset.pattern.permute.xlu2 %v4100_v28  ;;  %v3542_v4 = vld [vmem:[%s5864_s13 + $0x18] sm:$0xf0] }
 0x252   : > { %v4678_v24 = vpop.permute.xlu2 %1088  ;;  %v1386_v8 = vrot.slane %v1384_v5, 1  ;;  %v4698_v10 = vsel %vm1540_vm13, %v1556_v62, %v1557_v6  ;;  %v1583_v27 = vrot.slane %v4701_v11, 1  ;;  %4048 = vset.pattern.permute.xlu1 %v4100_v28  ;;  %v3558_v62 = vld [vmem:[%s5864_s13 + $0x38] sm:$0xf0]  ;;  %v3550_v5 = vld [vmem:[%s5864_s13 + $0x28] sm:$0xf0] }
 0x253   : > { %v1786_v34 = vor.u32 %v1785_v33, %v1781_v31  ;;  %v1790_v37 = vrot.slane %v1788_v20, 1  ;;  %v1826_v36 = vsel %vm1540_vm13, %v1824_v44, %v1825_v47  ;;  %v1489_v31 = vrot.slane %v1487_v3, 1 }
 0x254   : > { %v1492_v20 = vshll.u32 %v1313_v25, 16 }
 0x255   : > { %v1791_v41 = vsel %vm1315_vm12, %v1786_v34, %v1790_v37  ;;  %v1584_v34 = vrot.slane %v1313_v25, 1  ;;  %v1490_v37 = vor.u32 %v1489_v31, %v1485_v15  ;;  %v3945_v25 = vld [vmem:[%s5864_s13 + $0x4] sm:$0xf] }
 0x259   : > { %3412 = vmatmul.msk.f32.gmra.mxu1 %vm835_vm3, %v1018_v42  ;;  %v3533_v42 = vor.u32 %v3946_v40, %v3532_v39 }
 0x25a   : > { %v1604_v57 = vpop.permute.xlu2 %1603 }
 0x25b   : > { %2345 = vmatpush.bf16.msra.mxu3 %v3533_v42  ;;  %v4718_v42 = vsel %vm1540_vm13, %v1583_v27, %v1584_v34  ;;  %v3534_v27 = vld [vmem:[%s5864_s13 + $0x8] sm:$0xf0] }
 0x25d   : > { %v4683_v38 = vpop.permute.xlu0 %1090 }
 0x262   : > { %v1723_v33 = vpop.permute.xlu2 %1722 }
 0x265   : > { %v1688_v9 = vpop.permute.xlu0 %1687 }
 0x26a   : > { %v1842_v50 = vpop.permute.xlu2 %1841 }
 0x26d   : > { %v1807_v47 = vpop.permute.xlu0 %1806 }
 0x2ce   : > { %v4619_v52 = vpop.f32.mrf.mxu1 }
 0x2cf   : > { %v1048_v54 = vmul.f32 %v4619_v52, %v4619_v52 }
 0x2d1   : > { %1052 = vrot.lane.b32.xlu0 %v1048_v54, %s5874_s15  ;;  %v1377_v54 = vshrl.u32 %v4687_v49, 16 }
 0x2d3   : > { %v1382_v7 = vor.u32 %v1381_v60, %v1377_v54  ;;  %v3951_v60 = vld [vmem:[%s5864_s13 + $0x34] sm:$0xf] }
 0x2d5   : > { %v4706_v19 = vsel %vm1315_vm12, %v1382_v7, %v1386_v8 }
 0x2d6   : > { %v4627_v58 = vpop.f32.mrf.mxu1 }
 0x2d7   : > { %v1049_v1 = vmul.f32 %v4627_v58, %v4627_v58 }
 0x2d9   : > { %1638 = vrot.lane.b32.xlu0 %v4501_v32, %s5878_s24  ;;  %1054 = vrot.lane.b32.xlu1 %v1049_v1, %s5874_s15 }
 0x2e1   : > { %1703 = vrot.lane.b32.xlu0 %v4657_v21, %s5876_s25  ;;  %1685 = vrot.lane.b32.xlu1 %v4534_v61, %s5876_s25 }
 0x2e9   : > { %1757 = vrot.lane.b32.xlu0 %v4509_v35, %s4098_s27  ;;  %1738 = vrot.lane.b32.xlu1 %v4665_v30, %s5882_s20  ;;  %v1523_v35 = vpop.permute.xlu1 %1522 }
 0x2ea   : > { %v1874_v55 = vsel %vm801_vm1, %v4501_v32, %v1523_v35 }
 0x2eb   : > { %v1906_v0 = vsel %vm835_vm3, %v1874_v55, %v1604_v57  ;;  %v1539_v55 = vpop.permute.xlu0 %1538  ;;  %v1602_v57 = vpop.permute.xlu2 %1601 }
 0x2f1   : > { %1822 = vrot.lane.b32.xlu0 %v1791_v41, %s5883_s21  ;;  %1804 = vrot.lane.b32.xlu1 %v4540_v63, %s5883_s21  ;;  %v1641_v1 = vpop.permute.xlu1 %1640  ;;  %v1494_v41 = vrot.slane %v1492_v20, 1 }
 0x2f2   : > { %v1938_v18 = vsel %vm869_vm5, %v1906_v0, %v1641_v1  ;;  %v3561_v1 = vor.u32 %v3951_v60, %v3558_v62 }
 0x2f3   : > { %v1970_v29 = vsel %vm903_vm7, %v1938_v18, %v1688_v9  ;;  %v4721_v35 = vsel %vm1315_vm12, %v1490_v37, %v1494_v41  ;;  %v4760_v9 = vpop.permute.xlu2 %1656  ;;  %v3947_v18 = vld [vmem:[%s5864_s13 + $0x14] sm:$0xf] }
 0x2f4   : > { %v2003_v40 = vsel %vm1987_vm15, %v1970_v29, %v1723_v33  ;;  %1536 = vrot.lane.b32.xlu2 %v4721_v35, %s5884_s28  ;;  %2356 = vmatpush.bf16.msrb.mxu1 %v3561_v1  ;;  %v3545_v15 = vor.u32 %v3947_v18, %v3542_v4  ;;  %v3537_v33 = vor.u32 %v3945_v25, %v3534_v27  ;;  %v1174_v25 = vld [vmem:[%s4498_s26 + $0xa4] sm:$0x1] }
 0x2f9   : > { %1857 = vrot.lane.b32.xlu1 %v1826_v36, %s5880_s17  ;;  %1518 = vrot.lane.b32.xlu0 %v4706_v19, %s5884_s28  ;;  %v1760_v39 = vpop.permute.xlu1 %1759 }
 0x2fa   : > { %v2036_v44 = vsel %vm2020_vm0, %v2003_v40, %v1760_v39 }
 0x2fb   : > { %v2069_v36 = vsel %vm2053_vm2, %v2036_v44, %v1807_v47  ;;  %v1721_v37 = vpop.permute.xlu2 %1720 }
 0x2fc   : > { %v2101_v53 = vsel %vm999_vm9, %v2069_v36, %v1842_v50  ;;  %1636 = vrot.lane.b32.xlu2 %v4553_v12, %s5878_s24 }
 0x2fd   : > { %v2389_v54 = vsel %vm2371_vm4, %v2101_v53, 0 }
 0x2fe   : > { %2407 = vmatpush.bf16.xpose.msrb.mxu3 %v2389_v54 }
 0x301   : > { %1599 = vrot.lane.b32.xlu1 %v4698_v10, %s5885_s16  ;;  %1617 = vrot.lane.b32.xlu0 %v4718_v42, %s5885_s16  ;;  %v1521_v56 = vpop.permute.xlu1 %1520 }
 0x302   : > { %v1872_v60 = vsel %vm801_vm1, %v4553_v12, %v1521_v56  ;;  %v1890_v56 = vsel %vm801_vm1, %v4531_v59, %v1539_v55  ;;  %v1296_v55 = vunpack.c.l.b16 %v1174_v25 }
 0x303   : > { %v1776_v62 = vpop.permute.xlu2 %1775 }
 0x304   : > { %1701 = vrot.lane.b32.xlu2 %v4577_v17, %s5876_s25 }
 0x309   : > { %1654 = vrot.lane.b32.xlu1 %v4531_v59, %s5878_s24  ;;  %1683 = vrot.lane.b32.xlu0 %v4587_v43, %s5876_s25  ;;  %v1620_v6 = vpop.permute.xlu1 %1619  ;;  %s5888_s25 = smov 32  }
 0x30c   : > { %1755 = vrot.lane.b32.xlu2 %v4501_v32, %s4098_s27  ;;  %v3949_v32 = vld [vmem:[%s5864_s13 + $0x24] sm:$0xf] }
 0x30d   : > { %v3553_v7 = vor.u32 %v3949_v32, %v3550_v5  ;;  %v1904_v5 = vsel %vm835_vm3, %v1872_v60, %v1602_v57 }
 0x30f   : > { %2357 = vmatpush.bf16.msrb.mxu1 %v3553_v7 }
 0x311   : > { %1718 = vrot.lane.b32.xlu1 %v4607_v51, %s5882_s20  ;;  %1736 = vrot.lane.b32.xlu0 %v4594_v46, %s5882_s20 }
 0x313   : > { %2358 = vmatpush.bf16.msrb.mxu1 %v3545_v15 }
 0x317   : > { %2359 = vmatpush.bf16.msrb.mxu1 %v3537_v33 }
 0x343   : > { %v1053_v0 = vpop.permute.xlu0 %1052 }
 0x344   : > { %v1058_v8 = vsub.f32 %v4619_v52, %v1053_v0 }
 0x346   : > { %v1060_v14 = vmax.f32 %v1058_v8, 0.0 }
 0x348   : > { %v1062_v3 = vadd.f32 1e-05, %v1060_v14 }
 0x34a   : > { %4060 = vrsqrt.f32 %v1062_v3  ;;  %vm1070_vm8 = vweird.f32 %v1062_v3 }
 0x34b   : > { %v1639_v29 = vpop.permute.xlu0 %1638  ;;  %v1055_v31 = vpop.permute.xlu1 %1054 }
 0x34c   : > { %v1059_v20 = vsub.f32 %v4627_v58, %v1055_v31  ;;  %v1936_v4 = vsel %vm869_vm5, %v1904_v5, %v1639_v29  ;;  %v1840_v31 = vpop.permute.xlu2 %1839 }
 0x34e   : > { %v1061_v34 = vmax.f32 %v1059_v20, 0.0 }
 0x350   : > { %v4061_v39 = vpop.eup %4060  ;;  %v1063_v40 = vadd.f32 1e-05, %v1061_v34 }
 0x351   : > { %v1065_v41 = vmul.f32 %v4061_v39, %v1062_v3  ;;  %vm1071_vm6 = vweird.f32 %v4061_v39 }
 0x352   : > { %4062 = vrsqrt.f32 %v1063_v40  ;;  %vm1072_vm10 = vmor %vm1070_vm8, %vm1071_vm6  ;;  %vm1080_vm6 = vweird.f32 %v1063_v40 }
 0x353   : > { %v1066_v44 = vmul.f32 %v4061_v39, %v1065_v41  ;;  %v1686_v47 = vpop.permute.xlu1 %1685  ;;  %v1704_v36 = vpop.permute.xlu0 %1703 }
 0x354   : > { %v1968_v57 = vsel %vm903_vm7, %v1936_v4, %v1686_v47 }
 0x355   : > { %v1067_v50 = vmul.f32 0.5, %v1066_v44  ;;  %v2001_v29 = vsel %vm1987_vm15, %v1968_v57, %v1721_v37 }
 0x357   : > { %v1068_v53 = vsub.f32 1.5, %v1067_v50 }
 0x358   : > { %v4063_v54 = vpop.eup %4062 }
 0x359   : > { %v1075_v1 = vmul.f32 %v4063_v54, %v1063_v40  ;;  %v1069_v32 = vmul.f32 %v4061_v39, %v1068_v53  ;;  %vm1081_vm11 = vweird.f32 %v4063_v54  ;;  %v1312_v53 = vpack.c.b16 %v1296_v55, %v1296_v55 }
 0x35a   : > { %vm1082_vm8 = vmor %vm1080_vm6, %vm1081_vm11 }
 0x35b   : > { %v1076_v0 = vmul.f32 %v4063_v54, %v1075_v1  ;;  %v1739_v7 = vpop.permute.xlu1 %1738  ;;  %v1073_v8 = vsel %vm1072_vm10, %v4061_v39, %v1069_v32  ;;  %v1758_v15 = vpop.permute.xlu0 %1757  ;;  %v4789_v39 = vld [vmem:[%s4498_s26 + $0x9c] sm:$0xff]  ;;  %v1480_v32 = vshll.u32 %v1312_v53, 16 }
 0x35c   : > { %v1094_v14 = vmul.f32 %v4678_v24, %v1073_v8  ;;  %v1922_v24 = vsel %vm835_vm3, %v1890_v56, %v1620_v6  ;;  %v2034_v33 = vsel %vm2020_vm0, %v2001_v29, %v1758_v15  ;;  %v4831_v8 = vld [vmem:[%s4498_s26 + $0x30] sm:$0xff]  ;;  %v1581_v29 = vrot.slane %v1312_v53, 1 }
 0x35d   : > { %v1077_v18 = vmul.f32 0.5, %v1076_v0  ;;  %v1954_v40 = vsel %vm869_vm5, %v1922_v24, %v4760_v9  ;;  %v1367_v4 = vshll.u32 %v4831_v8, 16  ;;  %v1580_v24 = vrot.slane %v4789_v39, 1 }
 0x35e   : > { %1111 = vperm.xlu2 %4047, %v1094_v14   ;;  %1100 = vrot.lane.b32.xlu1 %v1094_v14, %s4101_s23  ;;  %v1986_v47 = vsel %vm903_vm7, %v1954_v40, %v1704_v36  ;;  %v1553_v14 = vrot.slane %v4831_v8, 1 }
 0x35f   : > { %v1078_v3 = vsub.f32 1.5, %v1077_v18  ;;  %v2019_v50 = vsel %vm1987_vm15, %v1986_v47, %v1739_v7  ;;  %v1365_v18 = vshrl.u32 %v4831_v8, 16 }
 0x360   : > { %v2052_v36 = vsel %vm2020_vm0, %v2019_v50, %v1776_v62  ;;  %v1482_v62 = vrot.slane %v1480_v32, 1 }
 0x361   : > { %v1079_v27 = vmul.f32 %v4063_v54, %v1078_v3  ;;  %v1369_v3 = vrot.slane %v1367_v4, 1 }
 0x363   : > { %v1805_v20 = vpop.permute.xlu1 %1804  ;;  %v1083_v34 = vsel %vm1082_vm8, %v4063_v54, %v1079_v27  ;;  %v1823_v9 = vpop.permute.xlu0 %1822 }
 0x364   : > { %v2067_v41 = vsel %vm2053_vm2, %v2034_v33, %v1805_v20  ;;  %v1095_v44 = vmul.f32 %v4683_v38, %v1083_v34  ;;  %v1475_v38 = vshll.u32 %v4789_v39, 16  ;;  %v2085_v54 = vsel %vm2053_vm2, %v2052_v36, %v1823_v9  ;;  %v1537_v20 = vpop.permute.xlu2 %1536 }
 0x365   : > { %v2099_v6 = vsel %vm999_vm9, %v2067_v41, %v1840_v31 }
 0x366   : > { %1102 = vrot.lane.b32.xlu0 %v1095_v44, %s4101_s23  ;;  %1773 = vrot.lane.b32.xlu1 %v4612_v13, %s4098_s27  ;;  %v2387_v37 = vsel %vm2371_vm4, %v2099_v6, 0  ;;  %v1473_v13 = vshrl.u32 %v4789_v39, 16  ;;  %v1477_v1 = vrot.slane %v1475_v38, 1  ;;  %v4860_v6 = vld [vmem:[%s4498_s26 + $0x24] sm:$0xff] }
 0x367   : > { %2408 = vmatpush.bf16.xpose.msrb.mxu3 %v2387_v37  ;;  %1820 = vrot.lane.b32.xlu2 %v4657_v21, %s5883_s21  ;;  %v1355_v53 = vshll.u32 %v4860_v6, 16  ;;  %v1353_v9 = vshrl.u32 %v4860_v6, 16 }
 0x368   : > { %4050 = vset.pattern.permute.xlu2 %v4094_v45  ;;  %v1478_v21 = vor.u32 %v1477_v1, %v1473_v13  ;;  %v1171_v1 = vld [vmem:[%s4498_s26 + $0x98] sm:$0x1] }
 0x369   : > { %v1357_v36 = vrot.slane %v1355_v53, 1 }
 0x36a   : > { %v4816_v7 = vsel %vm1315_vm12, %v1478_v21, %v1482_v62  ;;  %v1096_v21 = vld [vmem:[%s5858_s7] sm:$0xff] }
 0x36b   : > { %v1858_v60 = vpop.permute.xlu1 %1857  ;;  %v1519_v31 = vpop.permute.xlu0 %1518 }
 0x36c   : > { %v2117_v5 = vsel %vm999_vm9, %v2085_v54, %v1858_v60  ;;  %v1637_v41 = vpop.permute.xlu2 %1636  ;;  %v1358_v60 = vor.u32 %v1357_v36, %v1353_v9 }
 0x36d   : > { %v2405_v0 = vsel %vm2371_vm4, %v2117_v5, 0  ;;  %v1295_v5 = vunpack.c.l.b16 %v1171_v1 }
 0x36e   : > { %1802 = vrot.lane.b32.xlu0 %v4534_v61, %s5883_s21  ;;  %1837 = vrot.lane.b32.xlu1 %v4546_v2, %s5886_s18  ;;  %v1147_v61 = vld [vmem:[%s4498_s26 + $0x38] sm:$0x1] }
 0x36f   : > { %2421 = vmatpush.bf16.xpose.msra.mxu1 %v2405_v0  ;;  %v1287_v2 = vunpack.c.l.b16 %v1147_v61  ;;  %v1870_v61 = vsel %vm801_vm1, %v4687_v49, %v1519_v31 }
 0x373   : > { %v1600_v33 = vpop.permute.xlu1 %1599  ;;  %v1618_v34 = vpop.permute.xlu0 %1617 }
 0x374   : > { %v1702_v38 = vpop.permute.xlu2 %1701 }
 0x376   : > { %1855 = vrot.lane.b32.xlu0 %v4665_v30, %s5886_s18  ;;  %1534 = vrot.lane.b32.xlu1 %v4816_v7, %s5884_s28  ;;  %v1303_v30 = vpack.c.b16 %v1287_v2, %v1287_v2 }
 0x378   : > { %v1554_v15 = vrot.slane %v1303_v30, 1  ;;  %v1372_v56 = vshll.u32 %v1303_v30, 16  ;;  %v4880_v30 = vld [vmem:[%s4498_s26 + $0x90] sm:$0xff] }
 0x37a   : > { %v4837_v57 = vsel %vm1540_vm13, %v1553_v14, %v1554_v15  ;;  %v1374_v25 = vrot.slane %v1372_v56, 1  ;;  %v1311_v14 = vpack.c.b16 %v1295_v5, %v1295_v5  ;;  %v1902_v15 = vsel %vm835_vm3, %v1870_v61, %v1600_v33 }
 0x37b   : > { %v1655_v55 = vpop.permute.xlu1 %1654  ;;  %v1684_v40 = vpop.permute.xlu0 %1683  ;;  %v1577_v56 = vrot.slane %v4880_v30, 1  ;;  %v1461_v61 = vshrl.u32 %v4880_v30, 16 }
 0x37e   : > { %1634 = vrot.lane.b32.xlu1 %v4687_v49, %s5887_s22  ;;  %1597 = vrot.lane.b32.xlu0 %v4837_v57, %s5885_s16 }
 0x383   : > { %v1719_v37 = vpop.permute.xlu1 %1718  ;;  %v1737_v0 = vpop.permute.xlu0 %1736 }
 0x386   : > { %1115 = vperm.xlu1 %4048, %v1095_v44   ;;  %1652 = vrot.lane.b32.xlu0 %v4701_v11, %s5887_s22  ;;  %v1144_v44 = vld [vmem:[%s4498_s26 + $0x2c] sm:$0x1] }
 0x387   : > { %v1286_v47 = vunpack.c.l.b16 %v1144_v44 }
 0x389   : > { %v4862_v50 = vpack.c.b16 %v1286_v47, %v1286_v47 }
 0x38b   : > { %v1360_v54 = vshll.u32 %v4862_v50, 16 }
 0x38d   : > { %v1362_v13 = vrot.slane %v1360_v54, 1 }
 0x38e   : > { %1699 = vrot.lane.b32.xlu1 %v4721_v35, %s5888_s25 }
 0x38f   : > { %4051 = vset.pattern.permute.xlu1 %v4094_v45  ;;  %v4869_v32 = vsel %vm1315_vm12, %v1358_v60, %v1362_v13 }
 0x396   : > { %1753 = vrot.lane.b32.xlu1 %v4553_v12, %s4098_s27  ;;  %v1370_v12 = vor.u32 %v1369_v3, %v1365_v18  ;;  %v1756_v18 = vpop.permute.xlu2 %1755  ;;  %v1578_v3 = vrot.slane %v1311_v14, 1 }
 0x398   : > { %v4844_v27 = vsel %vm1315_vm12, %v1370_v12, %v1374_v25  ;;  %v4885_v25 = vsel %vm1540_vm13, %v1577_v56, %v1578_v3  ;;  %v1934_v12 = vsel %vm869_vm5, %v1902_v15, %v1637_v41  ;;  %v1141_v56 = vld [vmem:[%s4498_s26 + $0x20] sm:$0x1]  ;;  %v4946_v3 = vld [vmem:[%s4498_s26 + $0x18] sm:$0xff] }
 0x399   : > { %1516 = vrot.lane.b32.xlu2 %v4844_v27, %s5884_s28  ;;  %v1966_v44 = vsel %vm903_vm7, %v1934_v12, %v1684_v40 }
 0x39a   : > { %v1999_v9 = vsel %vm1987_vm15, %v1966_v44, %v1719_v37 }
 0x39e   : > { %1818 = vrot.lane.b32.xlu1 %v4577_v17, %s5883_s21  ;;  %v4852_v17 = vsel %vm1540_vm13, %v1580_v24, %v1581_v29  ;;  %v1097_v24 = vld [vmem:[%s5858_s7 + $0x8] sm:$0xff] }
 0x3a1   : > { %1615 = vrot.lane.b32.xlu2 %v4852_v17, %s5885_s16 }
 0x3a6   : > { %1514 = vrot.lane.b32.xlu1 %v4869_v32, %s5884_s28 }
 0x3a9   : > { %1681 = vrot.lane.b32.xlu2 %v4706_v19, %s5888_s25 }
 0x3ae   : > { %1613 = vrot.lane.b32.xlu1 %v4885_v25, %s5885_s16 }
 0x3b6   : > { %1679 = vrot.lane.b32.xlu1 %v4844_v27, %s5888_s25 }
 0x3b8   : > { %v4898_v41 = vpop.permute.xlu2 %1111 }
 0x3be   : > { %1732 = vrot.lane.b32.xlu1 %v4852_v17, %s5882_s20 }
 0x3c1   : > { %v1821_v1 = vpop.permute.xlu2 %1820 }
 0x3c6   : > { %1798 = vrot.lane.b32.xlu1 %v4706_v19, %s5883_s21 }
 0x3ce   : > { %1851 = vrot.lane.b32.xlu1 %v4718_v42, %s5886_s18 }
 0x3d0   : > { %v1101_v62 = vpop.permute.xlu1 %1100 }
 0x3d1   : > { %v1106_v2 = vmul.f32 %v1101_v62, %v4619_v52  ;;  %v1888_v52 = vsel %vm801_vm1, %v4701_v11, %v1537_v20 }
 0x3d2   : > { %v1920_v47 = vsel %vm835_vm3, %v1888_v52, %v1618_v34  ;;  %v1547_v52 = vrot.slane %v4946_v3, 1 }
 0x3d3   : > { %v1108_v4 = vsub.f32 %v1096_v21, %v1106_v2  ;;  %v1952_v20 = vsel %vm869_vm5, %v1920_v47, %v1655_v55  ;;  %v4976_v47 = vld [vmem:[%s4498_s26 + $0x84] sm:$0xff] }
 0x3d4   : > { %v1984_v34 = vsel %vm903_vm7, %v1952_v20, %v1702_v38  ;;  %v1463_v38 = vshll.u32 %v4880_v30, 16 }
 0x3d5   : > { %1122 = vperm.xlu0 %4049, %v1108_v4   ;;  %v2017_v13 = vsel %vm1987_vm15, %v1984_v34, %v1737_v0 }
 0x3d6   : > { %v1465_v2 = vrot.slane %v1463_v38, 1  ;;  %v5000_v38 = vld [vmem:[%s4498_s26 + $0x78] sm:$0xff] }
 0x3d8   : > { %v1103_v29 = vpop.permute.xlu0 %1102  ;;  %v1774_v31 = vpop.permute.xlu1 %1773 }
 0x3d9   : > { %v1107_v33 = vmul.f32 %v1103_v29, %v4627_v58  ;;  %v2032_v58 = vsel %vm2020_vm0, %v1999_v9, %v1756_v18  ;;  %v2050_v55 = vsel %vm2020_vm0, %v2017_v13, %v1774_v31  ;;  %v1468_v18 = vshll.u32 %v1311_v14, 16  ;;  %v1168_v29 = vld [vmem:[%s4498_s26 + $0x8c] sm:$0x1]  ;;  %v1165_v13 = vld [vmem:[%s4498_s26 + $0x80] sm:$0x1] }
 0x3da   : > { %v2083_v5 = vsel %vm2053_vm2, %v2050_v55, %v1821_v1  ;;  %v1551_v14 = vrot.slane %v4862_v50, 1  ;;  %v1343_v50 = vshll.u32 %v4946_v3, 16  ;;  %v1341_v31 = vshrl.u32 %v4946_v3, 16 }
 0x3db   : > { %v1109_v53 = vsub.f32 %v1097_v24, %v1107_v33  ;;  %v1470_v4 = vrot.slane %v1468_v18, 1 }
 0x3dc   : > { %v1345_v33 = vrot.slane %v1343_v50, 1  ;;  %v1138_v50 = vld [vmem:[%s4498_s26 + $0x14] sm:$0x1] }
 0x3dd   : > { %1127 = vperm.xlu2 %4050, %v1109_v53   ;;  %1716 = vrot.lane.b32.xlu0 %v4698_v10, %s5882_s20  ;;  %v1294_v53 = vunpack.c.l.b16 %v1168_v29 }
 0x3de   : > { %v1346_v9 = vor.u32 %v1345_v33, %v1341_v31  ;;  %v5050_v31 = vld [vmem:[%s4498_s26 + $0xc] sm:$0xff]  ;;  %v1284_v33 = vunpack.c.l.b16 %v1138_v50 }
 0x3e0   : > { %v1803_v36 = vpop.permute.xlu0 %1802  ;;  %v1838_v40 = vpop.permute.xlu1 %1837 }
 0x3e1   : > { %v2065_v54 = vsel %vm2053_vm2, %v2032_v58, %v1803_v36  ;;  %v1451_v36 = vshll.u32 %v4976_v47, 16  ;;  %v1310_v58 = vpack.c.b16 %v1294_v53, %v1294_v53 }
 0x3e2   : > { %v2097_v60 = vsel %vm999_vm9, %v2065_v54, %v1838_v40 }
 0x3e3   : > { %v2385_v37 = vsel %vm2371_vm4, %v2097_v60, 0  ;;  %v1456_v54 = vshll.u32 %v1310_v58, 16  ;;  %v1574_v60 = vrot.slane %v4976_v47, 1 }
 0x3e4   : > { %2409 = vmatpush.bf16.xpose.msrb.mxu3 %v2385_v37  ;;  %v1575_v37 = vrot.slane %v1310_v58, 1 }
 0x3e5   : > { %1734 = vrot.lane.b32.xlu2 %v4718_v42, %s5882_s20  ;;  %1771 = vrot.lane.b32.xlu0 %v4531_v59, %s4098_s27  ;;  %v1466_v59 = vor.u32 %v1465_v2, %v1461_v61  ;;  %v1458_v1 = vrot.slane %v1456_v54, 1 }
 0x3e6   : > { %v5008_v61 = vsel %vm1540_vm13, %v1574_v60, %v1575_v37 }
 0x3e7   : > { %v4931_v15 = vsel %vm1315_vm12, %v1466_v59, %v1470_v4 }
 0x3e8   : > { %v1856_v21 = vpop.permute.xlu0 %1855  ;;  %v4964_v42 = vpop.permute.xlu1 %1534 }
 0x3e9   : > { %v2115_v0 = vsel %vm999_vm9, %v2083_v5, %v1856_v21  ;;  %v1293_v5 = vunpack.c.l.b16 %v1165_v13  ;;  %v1135_v13 = vld [vmem:[%s4498_s26 + $0x8] sm:$0x1] }
 0x3ea   : > { %v2403_v62 = vsel %vm2371_vm4, %v2115_v0, 0 }
 0x3eb   : > { %2422 = vmatpush.bf16.xpose.msra.mxu1 %v2403_v62  ;;  %v5004_v0 = vpack.c.b16 %v1293_v5, %v1293_v5  ;;  %v1439_v62 = vshll.u32 %v5000_v38, 16  ;;  %v5072_v5 = vld [vmem:[%s4498_s26] sm:$0xff] }
 0x3ed   : > { %1835 = vrot.lane.b32.xlu0 %v4607_v51, %s5886_s18  ;;  %1800 = vrot.lane.b32.xlu2 %v4587_v43, %s5883_s21  ;;  %v1550_v51 = vrot.slane %v4860_v6, 1  ;;  %v1285_v43 = vunpack.c.l.b16 %v1141_v56  ;;  %v1441_v18 = vrot.slane %v1439_v62, 1  ;;  %v1444_v59 = vshll.u32 %v5004_v0, 16 }
 0x3ee   : > { %v1283_v62 = vunpack.c.l.b16 %v1135_v13 }
 0x3ef   : > { %v4943_v19 = vsel %vm1540_vm13, %v1550_v51, %v1551_v14  ;;  %v1301_v12 = vpack.c.b16 %v1285_v43, %v1285_v43 }
 0x3f1   : > { %v1548_v24 = vrot.slane %v1301_v12, 1  ;;  %v1348_v44 = vshll.u32 %v1301_v12, 16 }
 0x3f3   : > { %v1350_v20 = vrot.slane %v1348_v44, 1  ;;  %v4987_v40 = vpop.permute.xlu2 %1516  ;;  %v1331_v44 = vshll.u32 %v5050_v31, 16 }
 0x3f5   : > { %1532 = vrot.lane.b32.xlu0 %v4931_v15, %s5884_s28  ;;  %1853 = vrot.lane.b32.xlu2 %v4594_v46, %s5886_s18  ;;  %v4954_v46 = vsel %vm1540_vm13, %v1547_v52, %v1548_v24  ;;  %v4990_v34 = vsel %vm1315_vm12, %v1346_v9, %v1350_v20  ;;  %v5038_v52 = vpop.permute.xlu0 %1597  ;;  %v1300_v20 = vpack.c.b16 %v1284_v33, %v1284_v33  ;;  %v1333_v58 = vrot.slane %v1331_v44, 1 }
 0x3f6   : > { %1593 = vrot.lane.b32.xlu1 %v4954_v46, %s5885_s16 }
 0x3f7   : > { %v1545_v54 = vrot.slane %v1300_v20, 1 }
 0x3fb   : > { %v5015_v4 = vpop.permute.xlu2 %1615 }
 0x3fd   : > { %1632 = vrot.lane.b32.xlu0 %v4831_v8, %s5887_s22  ;;  %1595 = vrot.lane.b32.xlu2 %v4943_v19, %s5885_s16  ;;  %v1653_v53 = vpop.permute.xlu0 %1652 }
 0x3fe   : > { %1648 = vrot.lane.b32.xlu1 %v4880_v30, %s5887_s22 }
 0x403   : > { %v5030_v43 = vpop.permute.xlu2 %1681 }
 0x405   : > { %1697 = vrot.lane.b32.xlu0 %v4816_v7, %s5888_s25  ;;  %1650 = vrot.lane.b32.xlu2 %v4789_v39, %s5887_s22 }
 0x406   : > { %1712 = vrot.lane.b32.xlu1 %v4943_v19, %s5882_s20 }
 0x40d   : > { %1751 = vrot.lane.b32.xlu0 %v4687_v49, %s4098_s27  ;;  %1714 = vrot.lane.b32.xlu2 %v4837_v57, %s5882_s20  ;;  %v4982_v49 = vpop.permute.xlu1 %1634 }
 0x40e   : > { %1767 = vrot.lane.b32.xlu1 %v4789_v39, %s4098_s27 }
 0x415   : > { %1816 = vrot.lane.b32.xlu0 %v4721_v35, %s5883_s21  ;;  %1769 = vrot.lane.b32.xlu2 %v4701_v11, %s4098_s27  ;;  %v1449_v35 = vshrl.u32 %v4976_v47, 16  ;;  %v1453_v11 = vrot.slane %v1451_v36, 1  ;;  %v1116_v21 = vpop.permute.xlu1 %1115  ;;  %v1329_v36 = vshrl.u32 %v5050_v31, 16 }
 0x416   : > { %1831 = vrot.lane.b32.xlu1 %v4837_v57, %s5886_s18  ;;  %v1446_v57 = vrot.slane %v1444_v59, 1 }
 0x417   : > { %v1454_v55 = vor.u32 %v1453_v11, %v1449_v35  ;;  %v1336_v35 = vshll.u32 %v1300_v20, 16  ;;  %v1334_v60 = vor.u32 %v1333_v58, %v1329_v36  ;;  %v1886_v20 = vsel %vm801_vm1, %v4789_v39, %v4964_v42 }
 0x418   : > { %v1571_v36 = vrot.slane %v5000_v38, 1  ;;  %v1572_v58 = vrot.slane %v5004_v0, 1  ;;  %v1918_v39 = vsel %vm835_vm3, %v1886_v20, %v5015_v4 }
 0x419   : > { %v5011_v2 = vsel %vm1315_vm12, %v1454_v55, %v1458_v1  ;;  %v1338_v37 = vrot.slane %v1336_v35, 1  ;;  %v1118_v55 = vmul.f32 %v4898_v41, %v4480_v22  ;;  %v1119_v1 = vmul.f32 %v1116_v21, %v4486_v26 }
 0x41a   : > { %v1317_v21 = vshrl.u32 %v5072_v5, 16  ;;  %v5109_v0 = vsel %vm1540_vm13, %v1571_v36, %v1572_v58  ;;  %v1950_v13 = vsel %vm869_vm5, %v1918_v39, %v1653_v53  ;;  %v5193_v39 = vld [vmem:[%s4498_s26 + $0x6c] sm:$0xff] }
 0x41b   : > { %v1339_v22 = vsel %vm1315_vm12, %v1334_v60, %v1338_v37 }
 0x41d   : > { %1512 = vrot.lane.b32.xlu0 %v4990_v34, %s5884_s28  ;;  %1833 = vrot.lane.b32.xlu2 %v4698_v10, %s5886_s18  ;;  %v1437_v10 = vshrl.u32 %v5000_v38, 16  ;;  %v5026_v14 = vpop.permute.xlu1 %1699 }
 0x41f   : > { %v1442_v56 = vor.u32 %v1441_v18, %v1437_v10 }
 0x421   : > { %v5022_v51 = vsel %vm1315_vm12, %v1442_v56, %v1446_v57  ;;  %v5076_v56 = vpack.c.b16 %v1283_v62, %v1283_v62 }
 0x422   : > { %1528 = vrot.lane.b32.xlu1 %v5022_v51, %s5884_s28 }
 0x423   : > { %v1324_v33 = vshll.u32 %v5076_v56, 16 }
 0x425   : > { %1611 = vrot.lane.b32.xlu0 %v5008_v61, %s5885_s16  ;;  %1530 = vrot.lane.b32.xlu2 %v5011_v2, %s5884_s28  ;;  %v5036_v12 = vpop.permute.xlu1 %1753  ;;  %v1326_v44 = vrot.slane %v1324_v33, 1 }
 0x42a   : > { %1628 = vrot.lane.b32.xlu1 %v4946_v3, %s5887_s22 }
 0x42d   : > { %1677 = vrot.lane.b32.xlu0 %v4869_v32, %s5888_s25  ;;  %1630 = vrot.lane.b32.xlu2 %v4860_v6, %s5887_s22  ;;  %v5047_v29 = vpop.permute.xlu1 %1818 }
 0x432   : > { %1693 = vrot.lane.b32.xlu1 %v5011_v2, %s5888_s25 }
 0x435   : > { %1730 = vrot.lane.b32.xlu0 %v4885_v25, %s5882_s20  ;;  %1695 = vrot.lane.b32.xlu2 %v4931_v15, %s5888_s25  ;;  %v5060_v11 = vpop.permute.xlu1 %1514 }
 0x436   : > { %v1866_v20 = vsel %vm801_vm1, %v4860_v6, %v5060_v11 }
 0x437   : > { %v1128_v24 = vpop.permute.xlu2 %1127 }
 0x43a   : > { %1747 = vrot.lane.b32.xlu1 %v4860_v6, %s4098_s27 }
 0x43d   : > { %1796 = vrot.lane.b32.xlu0 %v4844_v27, %s5883_s21  ;;  %1749 = vrot.lane.b32.xlu2 %v4831_v8, %s4098_s27  ;;  %v1544_v27 = vrot.slane %v5050_v31, 1  ;;  %v5083_v26 = vpop.permute.xlu1 %1613 }
 0x43f   : > { %v1735_v9 = vpop.permute.xlu2 %1734  ;;  %v5080_v57 = vsel %vm1540_vm13, %v1544_v27, %v1545_v54  ;;  %v1868_v27 = vsel %vm801_vm1, %v4831_v8, %v4987_v40  ;;  %v1982_v40 = vsel %vm903_vm7, %v1950_v13, %v5026_v14 }
 0x440   : > { %v1900_v37 = vsel %vm835_vm3, %v1868_v27, %v5038_v52  ;;  %v2015_v4 = vsel %vm1987_vm15, %v1982_v40, %v1735_v9 }
 0x441   : > { %v1932_v8 = vsel %vm869_vm5, %v1900_v37, %v4982_v49 }
 0x442   : > { %1812 = vrot.lane.b32.xlu1 %v4931_v15, %s5883_s21  ;;  %v3936_v15 = vld [vmem:[%s5855_s4] sm:$0xff]  ;;  %v1964_v53 = vsel %vm903_vm7, %v1932_v8, %v5030_v43 }
 0x445   : > { %1849 = vrot.lane.b32.xlu0 %v4852_v17, %s5886_s18  ;;  %1814 = vrot.lane.b32.xlu2 %v4816_v7, %s5883_s21  ;;  %v1131_v17 = vadd.f32 %v1128_v24, %v1119_v1  ;;  %v1319_v7 = vshll.u32 %v5072_v5, 16  ;;  %v1680_v42 = vpop.permute.xlu1 %1679 }
 0x447   : > { %v1123_v10 = vpop.permute.xlu0 %1122  ;;  %v1801_v18 = vpop.permute.xlu2 %1800  ;;  %v1321_v50 = vrot.slane %v1319_v7, 1 }
 0x448   : > { %v1130_v59 = vadd.f32 %v1123_v10, %v1118_v55 }
 0x449   : > { %v1322_v24 = vor.u32 %v1321_v50, %v1317_v21 }
 0x44a   : > { %v1132_v41 = vpack.c.bf16 %v1131_v17, %v1130_v59  ;;  %v3937_v17 = vld [vmem:[%s5855_s4 + $0x8] sm:$0xff] }
 0x44b   : > { %v1327_v35 = vsel %vm1315_vm12, %v1322_v24, %v1326_v44 }
 0x44c   : > { %2217 = vmatpush.bf16.msra.mxu2 %v1132_v41  ;;  %1508 = vrot.lane.b32.xlu1 %v1327_v35, %s5884_s28 }
 0x44d   : > { %1591 = vrot.lane.b32.xlu0 %v5080_v57, %s5885_s16  ;;  %1510 = vrot.lane.b32.xlu2 %v1339_v22, %s5884_s28  ;;  %v1733_v10 = vpop.permute.xlu1 %1732 }
 0x44f   : > { %v1717_v54 = vpop.permute.xlu0 %1716  ;;  %3521 = vmatmul.msk.bf16.vlgmr.msra.gmra.mxu2 %vm835_vm3, %v3936_v15  ;;  %v1854_v60 = vpop.permute.xlu2 %1853 }
 0x450   : > { %v1997_v1 = vsel %vm1987_vm15, %v1964_v53, %v1717_v54 }
 0x451   : > { %v2030_v59 = vsel %vm2020_vm0, %v1997_v1, %v5036_v12 }
 0x452   : > { %v2063_v43 = vsel %vm2053_vm2, %v2030_v59, %v1801_v18 }
 0x454   : > { %1607 = vrot.lane.b32.xlu1 %v4601_v48, %s5885_s16 }
 0x455   : > { %1646 = vrot.lane.b32.xlu0 %v4976_v47, %s5887_s22  ;;  %1609 = vrot.lane.b32.xlu2 %v5109_v0, %s5885_s16  ;;  %v1799_v12 = vpop.permute.xlu1 %1798 }
 0x457   : > { %v1772_v52 = vpop.permute.xlu0 %1771  ;;  %v1596_v55 = vpop.permute.xlu2 %1595 }
 0x458   : > { %v2048_v49 = vsel %vm2020_vm0, %v2015_v4, %v1772_v52 }
 0x459   : > { %v2081_v62 = vsel %vm2053_vm2, %v2048_v49, %v5047_v29 }
 0x45a   : > { %v2113_v14 = vsel %vm999_vm9, %v2081_v62, %v1854_v60 }
 0x45b   : > { %v2401_v9 = vsel %vm2371_vm4, %v2113_v14, 0  ;;  %v3940_v14 = vld [vmem:[%s5855_s4 + $0x20] sm:$0xff] }
 0x45c   : > { %2423 = vmatpush.bf16.xpose.msra.mxu1 %v2401_v9  ;;  %1673 = vrot.lane.b32.xlu1 %v1339_v22, %s5888_s25  ;;  %v3938_v22 = vld [vmem:[%s5855_s4 + $0x10] sm:$0xff] }
 0x45d   : > { %1710 = vrot.lane.b32.xlu0 %v4954_v46, %s5882_s20  ;;  %1675 = vrot.lane.b32.xlu2 %v4990_v34, %s5888_s25  ;;  %v1852_v33 = vpop.permute.xlu1 %1851 }
 0x45f   : > { %v1836_v29 = vpop.permute.xlu0 %1835  ;;  %3522 = vmatmul.msk.bf16.gmra.mxu2 %vm835_vm3, %v3937_v17  ;;  %v1651_v7 = vpop.permute.xlu2 %1650 }
 0x460   : > { %v2095_v41 = vsel %vm999_vm9, %v2063_v43, %v1836_v29 }
 0x461   : > { %v2383_v21 = vsel %vm2371_vm4, %v2095_v41, 0  ;;  %v3941_v41 = vld [vmem:[%s5855_s4 + $0x28] sm:$0xff] }
 0x462   : > { %2410 = vmatpush.bf16.xpose.msrb.mxu3 %v2383_v21 }
 0x464   : > { %1726 = vrot.lane.b32.xlu1 %v5109_v0, %s5882_s20 }
 0x465   : > { %1765 = vrot.lane.b32.xlu0 %v4880_v30, %s4098_s27  ;;  %1728 = vrot.lane.b32.xlu2 %v5008_v61, %s5882_s20 }
 0x467   : > { %v1533_v50 = vpop.permute.xlu0 %1532  ;;  %v1715_v18 = vpop.permute.xlu2 %1714 }
 0x468   : > { %v5161_v44 = vpop.permute.xlu1 %1593  ;;  %v1884_v11 = vsel %vm801_vm1, %v4880_v30, %v1533_v50 }
 0x46c   : > { %1792 = vrot.lane.b32.xlu1 %v4990_v34, %s5883_s21  ;;  %v1898_v34 = vsel %vm835_vm3, %v1866_v20, %v1596_v55 }
 0x46d   : > { %1829 = vrot.lane.b32.xlu0 %v4943_v19, %s5886_s18  ;;  %1794 = vrot.lane.b32.xlu2 %v4869_v32, %s5883_s21  ;;  %v1541_v32 = vrot.slane %v5072_v5, 1  ;;  %v1542_v19 = vrot.slane %v5076_v56, 1  ;;  %v3939_v56 = vld [vmem:[%s5855_s4 + $0x18] sm:$0xff] }
 0x46f   : > { %v1633_v15 = vpop.permute.xlu0 %1632  ;;  %3523 = vmatmul.msk.bf16.gmra.mxu2 %vm835_vm3, %v3938_v22  ;;  %v1770_v24 = vpop.permute.xlu2 %1769  ;;  %v1543_v35 = vsel %vm1540_vm13, %v1541_v32, %v1542_v19 }
 0x470   : > { %v1930_v6 = vsel %vm869_vm5, %v1898_v34, %v1633_v15  ;;  %v3942_v15 = vld [vmem:[%s5855_s4 + $0x30] sm:$0xff] }
 0x471   : > { %v1962_v27 = vsel %vm903_vm7, %v1930_v6, %v1680_v42 }
 0x472   : > { %v1995_v30 = vsel %vm1987_vm15, %v1962_v27, %v1715_v18 }
 0x474   : > { %1845 = vrot.lane.b32.xlu1 %v5008_v61, %s5886_s18  ;;  %v1916_v61 = vsel %vm835_vm3, %v1884_v11, %v5083_v26 }
 0x475   : > { %1526 = vrot.lane.b32.xlu0 %v4556_v16, %s5884_s28  ;;  %1847 = vrot.lane.b32.xlu2 %v4885_v25, %s5886_s18  ;;  %v5179_v25 = vpop.permute.xlu1 %1648  ;;  %v1948_v42 = vsel %vm869_vm5, %v1916_v61, %v1651_v7  ;;  %v3943_v61 = vld [vmem:[%s5855_s4 + $0x38] sm:$0xff] }
 0x477   : > { %v1698_v36 = vpop.permute.xlu0 %1697  ;;  %v1834_v58 = vpop.permute.xlu2 %1833 }
 0x478   : > { %v1980_v37 = vsel %vm903_vm7, %v1948_v42, %v1698_v36 }
 0x479   : > { %v2013_v4 = vsel %vm1987_vm15, %v1980_v37, %v1733_v10  ;;  %v3604_v37 = vld [vmem:[%s5864_s13 + $0x70] sm:$0xf] }
 0x47a   : > { %v2046_v55 = vsel %vm2020_vm0, %v2013_v4, %v1770_v24  ;;  %v3958_v4 = vld [vmem:[%s5864_s13 + $0x64] sm:$0xf0] }
 0x47c   : > { %1642 = vrot.lane.b32.xlu1 %v5193_v39, %s5887_s22 }
 0x47d   : > { %1626 = vrot.lane.b32.xlu0 %v5050_v31, %s5887_s22  ;;  %1589 = vrot.lane.b32.xlu2 %v1543_v35, %s5885_s16  ;;  %v1713_v52 = vpop.permute.xlu1 %1712 }
 0x47f   : > { %v1752_v54 = vpop.permute.xlu0 %1751  ;;  %3524 = vmatmul.msk.bf16.gmra.mxu2 %vm835_vm3, %v3939_v56  ;;  %v1531_v60 = vpop.permute.xlu2 %1530 }
 0x480   : > { %v2028_v26 = vsel %vm2020_vm0, %v1995_v30, %v1752_v54  ;;  %v4015_v54 = vld [vmem:[%s5864_s13 + $0x234] sm:$0xf] }
 0x481   : > { %v2061_v13 = vsel %vm2053_vm2, %v2028_v26, %v1799_v12 }
 0x482   : > { %v2093_v8 = vsel %vm999_vm9, %v2061_v13, %v1834_v58  ;;  %v3960_v13 = vld [vmem:[%s5864_s13 + $0x74] sm:$0xf0] }
 0x483   : > { %v2381_v40 = vsel %vm2371_vm4, %v2093_v8, 0  ;;  %v3605_v8 = vor.u32 %v3960_v13, %v3604_v37  ;;  %v4013_v13 = vld [vmem:[%s5864_s13 + $0x224] sm:$0xf] }
 0x484   : > { %2411 = vmatpush.bf16.xpose.msrb.mxu3 %v2381_v40  ;;  %1761 = vrot.lane.b32.xlu1 %v5000_v38, %s4098_s27  ;;  %v3596_v40 = vld [vmem:[%s5864_s13 + $0x60] sm:$0xf] }
 0x485   : > { %1691 = vrot.lane.b32.xlu0 %v5022_v51, %s5888_s25  ;;  %1644 = vrot.lane.b32.xlu2 %v5000_v38, %s5887_s22  ;;  %v1768_v9 = vpop.permute.xlu1 %1767  ;;  %s5889_s22 = smov 1  }
 0x486   : > { %2496 = vmatpush.bf16.msrb.mxu0 %v3605_v8  ;;  %v3892_v8 = vld [vmem:[%s5864_s13 + $0x228] sm:$0xf0] }
 0x487   : > { %v1817_v53 = vpop.permute.xlu0 %1816  ;;  %v1631_v49 = vpop.permute.xlu2 %1630 }
 0x488   : > { %v2079_v1 = vsel %vm2053_vm2, %v2046_v55, %v1817_v53 }
 0x489   : > { %v2111_v62 = vsel %vm999_vm9, %v2079_v1, %v1852_v33  ;;  %v1882_v33 = vsel %vm801_vm1, %v4976_v47, %v1531_v60  ;;  %v3900_v60 = vld [vmem:[%s5864_s13 + $0x238] sm:$0xf0]  ;;  %v3956_v1 = vld [vmem:[%s5864_s13 + $0x54] sm:$0xf0] }
 0x48a   : > { %v2399_v10 = vsel %vm2371_vm4, %v2111_v62, 0  ;;  %v3903_v26 = vor.u32 %v4015_v54, %v3900_v60 }
 0x48b   : > { %2424 = vmatpush.bf16.xpose.msra.mxu1 %v2399_v10 }
 0x48c   : > { %3133 = vmatpush.bf16.msrb.mxu2 %v3903_v26 }
 0x48d   : > { %1745 = vrot.lane.b32.xlu0 %v4946_v3, %s4098_s27  ;;  %1708 = vrot.lane.b32.xlu2 %v5080_v57, %s5882_s20  ;;  %v1832_v7 = vpop.permute.xlu1 %1831 }
 0x48f   : > { %v1513_v17 = vpop.permute.xlu0 %1512  ;;  %3525 = vmatmul.msk.bf16.gmra.mxu2 %vm835_vm3, %v3940_v14  ;;  %v1696_v59 = vpop.permute.xlu2 %1695  ;;  %v3944_v14 = vld [vmem:[%s5855_s4 + $0x40] sm:$0xff] }
 0x490   : > { %v1864_v21 = vsel %vm801_vm1, %v4946_v3, %v1513_v17  ;;  %v3954_v17 = vld [vmem:[%s5864_s13 + $0x44] sm:$0xf0] }
 0x491   : > { %v1896_v50 = vsel %vm835_vm3, %v1864_v21, %v5161_v44 }
 0x492   : > { %v1928_v18 = vsel %vm869_vm5, %v1896_v50, %v1631_v49  ;;  %v3588_v49 = vld [vmem:[%s5864_s13 + $0x50] sm:$0xf] }
 0x493   : > { %v3589_v62 = vor.u32 %v3956_v1, %v3588_v49 }
 0x495   : > { %1810 = vrot.lane.b32.xlu0 %v5011_v2, %s5883_s21  ;;  %1763 = vrot.lane.b32.xlu2 %v4976_v47, %s4098_s27  ;;  %v5236_v12 = vpop.permute.xlu1 %1528 }
 0x497   : > { %v1612_v43 = vpop.permute.xlu0 %1611  ;;  %v1750_v29 = vpop.permute.xlu2 %1749 }
 0x498   : > { %v1914_v22 = vsel %vm835_vm3, %v1882_v33, %v1612_v43 }
 0x49d   : > { %1524 = vrot.lane.b32.xlu0 %v4540_v63, %s5884_s28  ;;  %1827 = vrot.lane.b32.xlu2 %v4954_v46, %s5886_s18  ;;  %v5255_v24 = vpop.permute.xlu1 %1628 }
 0x49f   : > { %v1678_v57 = vpop.permute.xlu0 %1677  ;;  %3526 = vmatmul.msk.bf16.gmra.mxu2 %vm835_vm3, %v3941_v41  ;;  %v1815_v2 = vpop.permute.xlu2 %1814 }
 0x4a0   : > { %v1960_v3 = vsel %vm903_vm7, %v1928_v18, %v1678_v57  ;;  %v3959_v57 = vld [vmem:[%s5864_s13 + $0x74] sm:$0xf] }
 0x4a5   : > { %1689 = vrot.lane.b32.xlu0 %v4556_v16, %s5888_s25  ;;  %1605 = vrot.lane.b32.xlu2 %v4562_v23, %s5885_s16  ;;  %v1993_v16 = vsel %vm1987_vm15, %v1960_v3, %v1713_v52  ;;  %v1946_v23 = vsel %vm869_vm5, %v1914_v22, %v5179_v25  ;;  %v1694_v6 = vpop.permute.xlu1 %1693  ;;  %v3597_v52 = vor.u32 %v3958_v4, %v3596_v40  ;;  %v3957_v3 = vld [vmem:[%s5864_s13 + $0x64] sm:$0xf]  ;;  %v3598_v22 = vld [vmem:[%s5864_s13 + $0x68] sm:$0xf0] }
 0x4a6   : > { %v2026_v47 = vsel %vm2020_vm0, %v1993_v16, %v1750_v29  ;;  %v1978_v32 = vsel %vm903_vm7, %v1946_v23, %v1696_v59  ;;  %v1880_v59 = vsel %vm801_vm1, %v5000_v38, %v5236_v12  ;;  %v3895_v4 = vor.u32 %v4013_v13, %v3892_v8  ;;  %v4011_v8 = vld [vmem:[%s5864_s13 + $0x214] sm:$0xf] }
 0x4a7   : > { %v1731_v63 = vpop.permute.xlu0 %1730  ;;  %v5244_v46 = vpop.permute.xlu2 %1510  ;;  %2497 = vmatpush.bf16.msrb.mxu0 %v3597_v52 }
 0x4a8   : > { %v2011_v36 = vsel %vm1987_vm15, %v1978_v32, %v1731_v63  ;;  %v1862_v38 = vsel %vm801_vm1, %v5050_v31, %v5244_v46  ;;  %v3601_v46 = vor.u32 %v3957_v3, %v3598_v22  ;;  %v3590_v32 = vld [vmem:[%s5864_s13 + $0x58] sm:$0xf0]  ;;  %3134 = vmatpush.bf16.msrb.mxu2 %v3895_v4  ;;  %v3622_v22 = vld [vmem:[%s5864_s13 + $0x80] sm:$0xf] }
 0x4ab   : > { %2498 = vmatpush.bf16.msrb.mxu0 %v3589_v62 }
 0x4ad   : > { %1808 = vrot.lane.b32.xlu0 %v5022_v51, %s5883_s21  ;;  %1724 = vrot.lane.b32.xlu2 %v4601_v48, %s5882_s20  ;;  %v3147_v48 = vld [vmem:[%s5860_s9] sm:$0xff]  ;;  %v2044_v51 = vsel %vm2020_vm0, %v2011_v36, %v1768_v9  ;;  %v1748_v42 = vpop.permute.xlu1 %1747 }
 0x4ae   : > { %v2077_v11 = vsel %vm2053_vm2, %v2044_v51, %v1815_v2  ;;  %v3580_v9 = vld [vmem:[%s5864_s13 + $0x40] sm:$0xf]  ;;  %v3606_v2 = vld [vmem:[%s5864_s13 + $0x78] sm:$0xf0] }
 0x4af   : > { %v1797_v44 = vpop.permute.xlu0 %1796  ;;  %3527 = vmatmul.msk.bf16.gmra.mxu2 %vm835_vm3, %v3942_v15  ;;  %v1610_v20 = vpop.permute.xlu2 %1609  ;;  %v3581_v43 = vor.u32 %v3954_v17, %v3580_v9  ;;  %v3609_v12 = vor.u32 %v3959_v57, %v3606_v2 }
 0x4b0   : > { %v2059_v19 = vsel %vm2053_vm2, %v2026_v47, %v1797_v44  ;;  %v1912_v41 = vsel %vm835_vm3, %v1880_v59, %v1610_v20  ;;  %v3955_v20 = vld [vmem:[%s5864_s13 + $0x54] sm:$0xf] }
 0x4b1   : > { %v2091_v58 = vsel %vm999_vm9, %v2059_v19, %v1832_v7  ;;  %2499 = vmatpush.bf16.msrb.mxu0 %v3581_v43 }
 0x4b2   : > { %v2379_v34 = vsel %vm2371_vm4, %v2091_v58, 0  ;;  %v3593_v58 = vor.u32 %v3955_v20, %v3590_v32 }
 0x4b3   : > { %2412 = vmatpush.bf16.xpose.msrb.mxu3 %v2379_v34 }
 0x4b5   : > { %3151 = vperm.xlu0 %4049, %v3147_v48   ;;  %1843 = vrot.lane.b32.xlu2 %v5109_v0, %s5886_s18  ;;  %v1813_v10 = vpop.permute.xlu1 %1812 }
 0x4b6   : > { %2510 = vmatpush.bf16.msra.mxu0 %v3609_v12  ;;  %v3964_v12 = vld [vmem:[%s5864_s13 + $0x94] sm:$0xf0] }
 0x4b7   : > { %v1850_v35 = vpop.permute.xlu0 %1849  ;;  %v1676_v25 = vpop.permute.xlu2 %1675 }
 0x4b8   : > { %v2109_v56 = vsel %vm999_vm9, %v2077_v11, %v1850_v35  ;;  %v3953_v35 = vld [vmem:[%s5864_s13 + $0x44] sm:$0xf] }
 0x4b9   : > { %v2397_v27 = vsel %vm2371_vm4, %v2109_v56, 0 }
 0x4ba   : > { %2425 = vmatpush.bf16.xpose.msra.mxu1 %v2397_v27  ;;  %2511 = vmatpush.bf16.msra.mxu0 %v3601_v46 }
 0x4bd   : > { %4052 = vset.pattern.permute.xlu0 %v4100_v28 }
 0x4be   : > { %v5334_v33 = vpop.permute.xlu1 %1508  ;;  %2512 = vmatpush.bf16.msra.mxu0 %v3593_v58 }
 0x4bf   : > { %v1592_v30 = vpop.permute.xlu0 %1591  ;;  %3528 = vmatmul.msk.bf16.gmra.mxu2 %vm835_vm3, %v3943_v61  ;;  %v1729_v0 = vpop.permute.xlu2 %1728 }
 0x4c0   : > { %v1894_v50 = vsel %vm835_vm3, %v1862_v38, %v1592_v30 }
 0x4c1   : > { %v1926_v31 = vsel %vm869_vm5, %v1894_v50, %v5255_v24  ;;  %v1860_v50 = vsel %vm801_vm1, %v5072_v5, %v5334_v33 }
 0x4c2   : > { %v1958_v47 = vsel %vm903_vm7, %v1926_v31, %v1676_v25  ;;  %v3582_v25 = vld [vmem:[%s5864_s13 + $0x48] sm:$0xf0]  ;;  %v3962_v31 = vld [vmem:[%s5864_s13 + $0x84] sm:$0xf0] }
 0x4c3   : > { %v3585_v61 = vor.u32 %v3953_v35, %v3582_v25 }
 0x4c5   : > { %2513 = vmatpush.bf16.msra.mxu0 %v3585_v61 }
 0x4c6   : > { %v1608_v30 = vpop.permute.xlu1 %1607 }
 0x4c7   : > { %v1647_v55 = vpop.permute.xlu0 %1646  ;;  %v1795_v53 = vpop.permute.xlu2 %1794 }
 0x4c8   : > { %v1944_v21 = vsel %vm869_vm5, %v1912_v41, %v1647_v55  ;;  %v3966_v41 = vld [vmem:[%s5864_s13 + $0xa4] sm:$0xf0] }
 0x4c9   : > { %v1976_v18 = vsel %vm903_vm7, %v1944_v21, %v1694_v6  ;;  %v3630_v21 = vld [vmem:[%s5864_s13 + $0x90] sm:$0xf] }
 0x4ca   : > { %v2009_v15 = vsel %vm1987_vm15, %v1976_v18, %v1729_v0  ;;  %v3631_v18 = vor.u32 %v3964_v12, %v3630_v21  ;;  %v3970_v12 = vld [vmem:[%s5864_s13 + $0xc4] sm:$0xf0] }
 0x4ce   : > { %v1674_v55 = vpop.permute.xlu1 %1673 }
 0x4cf   : > { %v1711_v29 = vpop.permute.xlu0 %1710  ;;  %3529 = vmatmul.msk.bf16.gmra.mxu2 %vm835_vm3, %v3944_v14  ;;  %v1848_v7 = vpop.permute.xlu2 %1847  ;;  %v3968_v14 = vld [vmem:[%s5864_s13 + $0xb4] sm:$0xf0] }
 0x4d0   : > { %v1991_v24 = vsel %vm1987_vm15, %v1958_v47, %v1711_v29  ;;  %v3967_v47 = vld [vmem:[%s5864_s13 + $0xb4] sm:$0xf] }
 0x4d1   : > { %v2024_v11 = vsel %vm2020_vm0, %v1991_v24, %v1748_v42  ;;  %v3976_v24 = vld [vmem:[%s5864_s13 + $0xf4] sm:$0xf0] }
 0x4d2   : > { %v2219_v63 = vpop.f32.mrf.mxu2  ;;  %v2057_v0 = vsel %vm2053_vm2, %v2024_v11, %v1795_v53 }
 0x4d3   : > { %v2264_v19 = vpack.c.bf16 %v2219_v63, %v2219_v63 }
 0x4d5   : > { %v2292_v56 = vunpack.c.l.b16 %v2264_v19 }
 0x4d6   : > { %v1727_v2 = vpop.permute.xlu1 %1726 }
 0x4d7   : > { %v1766_v16 = vpop.permute.xlu0 %1765  ;;  %v5345_v23 = vpop.permute.xlu2 %1589 }
 0x4d8   : > { %v2042_v44 = vsel %vm2020_vm0, %v2009_v15, %v1766_v16  ;;  %v1892_v46 = vsel %vm835_vm3, %v1860_v50, %v5345_v23  ;;  %v3623_v16 = vor.u32 %v3962_v31, %v3622_v22  ;;  %v3984_v22 = vld [vmem:[%s5864_s13 + $0x134] sm:$0xf0] }
 0x4d9   : > { %v2075_v36 = vsel %vm2053_vm2, %v2042_v44, %v1813_v10  ;;  %v3646_v10 = vld [vmem:[%s5864_s13 + $0xb0] sm:$0xf]  ;;  %v3648_v44 = vld [vmem:[%s5864_s13 + $0xb8] sm:$0xf0] }
 0x4da   : > { %v2107_v34 = vsel %vm999_vm9, %v2075_v36, %v1848_v7  ;;  %v2221_v48 = vpop.f32.mrf.mxu2  ;;  %v3647_v59 = vor.u32 %v3968_v14, %v3646_v10  ;;  %v3638_v7 = vld [vmem:[%s5864_s13 + $0xa0] sm:$0xf]  ;;  %v3651_v19 = vor.u32 %v3967_v47, %v3648_v44  ;;  %v3724_v44 = vld [vmem:[%s5864_s13 + $0x128] sm:$0xf0] }
 0x4db   : > { %v2265_v51 = vpack.c.bf16 %v2221_v48, %v2221_v48  ;;  %v2395_v6 = vsel %vm2371_vm4, %v2107_v34, 0  ;;  %v3639_v38 = vor.u32 %v3966_v41, %v3638_v7  ;;  %v3965_v48 = vld [vmem:[%s5864_s13 + $0xa4] sm:$0xf]  ;;  %v3664_v41 = vld [vmem:[%s5864_s13 + $0xc0] sm:$0xf] }
 0x4dc   : > { %2426 = vmatpush.bf16.xpose.msra.mxu1 %v2395_v6  ;;  %v5475_v14 = vld [vmem:[%s5854_s3] sm:$0xff] }
 0x4dd   : > { %v2293_v27 = vunpack.c.l.b16 %v2265_v51  ;;  %v3640_v51 = vld [vmem:[%s5864_s13 + $0xa8] sm:$0xf0] }
 0x4de   : > { %v1793_v23 = vpop.permute.xlu1 %1792 }
 0x4df   : > { %v2294_v54 = vpack.c.b16 %v2293_v27, %v2292_v56  ;;  %v1830_v60 = vpop.permute.xlu0 %1829  ;;  %v1645_v37 = vpop.permute.xlu2 %1644 }
 0x4e0   : > { %v2089_v42 = vsel %vm999_vm9, %v2057_v0, %v1830_v60  ;;  %v3974_v0 = vld [vmem:[%s5864_s13 + $0xe4] sm:$0xf0] }
 0x4e1   : > { %3562 = vmatmul.msk.bf16.vlgmr.msra.gmra.mxu3 %vm999_vm9, %v2294_v54  ;;  %3563 = vmatmul.msk.bf16.vlgmr.msrb.gmra.mxu1 %vm999_vm9, %v2294_v54  ;;  %v2377_v26 = vsel %vm2371_vm4, %v2089_v42, 0  ;;  %v3643_v54 = vor.u32 %v3965_v48, %v3640_v51  ;;  %v3963_v42 = vld [vmem:[%s5864_s13 + $0x94] sm:$0xf] }
 0x4e2   : > { %v2224_v40 = vpop.f32.mrf.mxu2  ;;  %2413 = vmatpush.bf16.xpose.msrb.mxu3 %v2377_v26  ;;  %v3632_v26 = vld [vmem:[%s5864_s13 + $0x98] sm:$0xf0] }
 0x4e3   : > { %v2266_v53 = vpack.c.bf16 %v2224_v40, %v2224_v40  ;;  %v3884_v40 = vld [vmem:[%s5864_s13 + $0x218] sm:$0xf0] }
 0x4e5   : > { %v2446_v9 = vunpack.c.l.b16 %v2266_v53  ;;  %v3635_v53 = vor.u32 %v3963_v42, %v3632_v26  ;;  %v3708_v42 = vld [vmem:[%s5864_s13 + $0x108] sm:$0xf0]  ;;  %v3706_v26 = vld [vmem:[%s5864_s13 + $0x100] sm:$0xf] }
 0x4e6   : > { %v1846_v4 = vpop.permute.xlu1 %1845 }
 0x4e7   : > { %v1527_v52 = vpop.permute.xlu0 %1526  ;;  %v1709_v62 = vpop.permute.xlu2 %1708 }
 0x4e8   : > { %v1878_v5 = vsel %vm801_vm1, %v5193_v39, %v1527_v52  ;;  %v3688_v39 = vld [vmem:[%s5864_s13 + $0xf0] sm:$0xf] }
 0x4e9   : > { %v1910_v32 = vsel %vm835_vm3, %v1878_v5, %v1608_v30  ;;  %v3689_v56 = vor.u32 %v3976_v24, %v3688_v39  ;;  %v3680_v30 = vld [vmem:[%s5864_s13 + $0xe0] sm:$0xf]  ;;  %v3672_v52 = vld [vmem:[%s5864_s13 + $0xd0] sm:$0xf]  ;;  %v3981_v5 = vld [vmem:[%s5864_s13 + $0x124] sm:$0xf] }
 0x4ea   : > { %v2226_v49 = vpop.f32.mrf.mxu2  ;;  %v1942_v6 = vsel %vm869_vm5, %v1910_v32, %v1645_v37  ;;  %v3681_v13 = vor.u32 %v3974_v0, %v3680_v30  ;;  %v4077_v39 = vld [vmem:[%s4498_s26 + $0x60] sm:$0xff] }
 0x4eb   : > { %v2267_v1 = vpack.c.bf16 %v2226_v49, %v2226_v49  ;;  %v3887_v49 = vor.u32 %v4011_v8, %v3884_v40  ;;  %v3814_v8 = vld [vmem:[%s5864_s13 + $0x1b0] sm:$0xf]  ;;  %v4000_v40 = vld [vmem:[%s5864_s13 + $0x1b4] sm:$0xf0] }
 0x4ed   : > { %v2447_v17 = vunpack.c.l.b16 %v2267_v1  ;;  %3135 = vmatpush.bf16.msrb.mxu2 %v3887_v49 }
 0x4ef   : > { %v2448_v43 = vpack.c.b16 %v2447_v17, %v2446_v9  ;;  %v1627_v29 = vpop.permute.xlu0 %1626  ;;  %v1764_v63 = vpop.permute.xlu2 %1763  ;;  %v3961_v9 = vld [vmem:[%s5864_s13 + $0x84] sm:$0xf]  ;;  %v3624_v17 = vld [vmem:[%s5864_s13 + $0x88] sm:$0xf0] }
 0x4f0   : > { %v1924_v15 = vsel %vm869_vm5, %v1892_v46, %v1627_v29  ;;  %v3627_v50 = vor.u32 %v3961_v9, %v3624_v17  ;;  %v3665_v46 = vor.u32 %v3970_v12, %v3664_v41  ;;  %v3989_v12 = vld [vmem:[%s5864_s13 + $0x164] sm:$0xf] }
 0x4f1   : > { %3610 = vmatmul.msk.bf16.vlgmr.msrb.gmra.mxu0 %vm999_vm9, %v2448_v43  ;;  %v1956_v20 = vsel %vm903_vm7, %v1924_v15, %v1674_v55  ;;  %v3972_v55 = vld [vmem:[%s5864_s13 + $0xd4] sm:$0xf0] }
 0x4f2   : > { %v5390_v57 = vpop.f32.mrf.mxu2  ;;  %2585 = vmatpush.bf16.msrb.mxu0 %v3647_v59  ;;  %v1989_v36 = vsel %vm1987_vm15, %v1956_v20, %v1709_v62  ;;  %v3673_v7 = vor.u32 %v3972_v55, %v3672_v52  ;;  %v3722_v20 = vld [vmem:[%s5864_s13 + $0x120] sm:$0xf] }
 0x4f6   : > { %2586 = vmatpush.bf16.msrb.mxu0 %v3639_v38 }
 0x4f7   : > { %v1692_v3 = vpop.permute.xlu0 %1691  ;;  %v1828_v34 = vpop.permute.xlu2 %1827 }
 0x4f8   : > { %v1974_v35 = vsel %vm903_vm7, %v1942_v6, %v1692_v3  ;;  %v3730_v3 = vld [vmem:[%s5864_s13 + $0x130] sm:$0xf]  ;;  %v3716_v6 = vld [vmem:[%s5864_s13 + $0x118] sm:$0xf0] }
 0x4f9   : > { %v2007_v37 = vsel %vm1987_vm15, %v1974_v35, %v1727_v2  ;;  %v3980_v35 = vld [vmem:[%s5864_s13 + $0x114] sm:$0xf0] }
 0x4fa   : > { %v5412_v33 = vpop.f32.mrf.mxu2  ;;  %2587 = vmatpush.bf16.msrb.mxu0 %v3631_v18  ;;  %v2040_v1 = vsel %vm2020_vm0, %v2007_v37, %v1764_v63  ;;  %v3732_v18 = vld [vmem:[%s5864_s13 + $0x138] sm:$0xf0]  ;;  %v3978_v37 = vld [vmem:[%s5864_s13 + $0x104] sm:$0xf0] }
 0x4fb   : > { %v2269_v62 = vpack.c.bf16 %v5412_v33, %v5412_v33  ;;  %v3731_v33 = vor.u32 %v3984_v22, %v3730_v3  ;;  %v3707_v49 = vor.u32 %v3978_v37, %v3706_v26  ;;  %v3798_v3 = vld [vmem:[%s5864_s13 + $0x190] sm:$0xf]  ;;  %v3996_v22 = vld [vmem:[%s5864_s13 + $0x194] sm:$0xf0] }
 0x4fd   : > { %v2536_v63 = vunpack.c.l.b16 %v2269_v62  ;;  %v3774_v62 = vld [vmem:[%s5864_s13 + $0x178] sm:$0xf0] }
 0x4fe   : > { %2588 = vmatpush.bf16.msrb.mxu0 %v3623_v16 }
 0x4ff   : > { %v1746_v58 = vpop.permute.xlu0 %1745  ;;  %v1606_v21 = vpop.permute.xlu2 %1605 }
 0x500   : > { %v2022_v11 = vsel %vm2020_vm0, %v1989_v36, %v1746_v58  ;;  %v3727_v58 = vor.u32 %v3981_v5, %v3724_v44  ;;  %v3682_v5 = vld [vmem:[%s5864_s13 + $0xe8] sm:$0xf0] }
 0x501   : > { %v2055_v25 = vsel %vm2053_vm2, %v2022_v11, %v1793_v23  ;;  %3611 = vmatmul.msk.bf16.vlgmr.msra.gmra.mxu0 %vm999_vm9, %v2448_v43  ;;  %v2268_v43 = vpack.c.bf16 %v5390_v57, %v5390_v57  ;;  %v3983_v57 = vld [vmem:[%s5864_s13 + $0x134] sm:$0xf]  ;;  %v3982_v23 = vld [vmem:[%s5864_s13 + $0x124] sm:$0xf0]  ;;  %v3714_v11 = vld [vmem:[%s5864_s13 + $0x110] sm:$0xf] }
 0x502   : > { %v5440_v27 = vpop.f32.mrf.mxu2  ;;  %v2087_v61 = vsel %vm999_vm9, %v2055_v25, %v1828_v34  ;;  %2599 = vmatpush.bf16.msra.mxu0 %v3651_v19  ;;  %v3735_v15 = vor.u32 %v3983_v57, %v3732_v18  ;;  %v1643_v19 = vpop.permute.xlu1 %1642  ;;  %v3979_v34 = vld [vmem:[%s5864_s13 + $0x114] sm:$0xf]  ;;  %v3723_v48 = vor.u32 %v3982_v23, %v3722_v20  ;;  %v3715_v0 = vor.u32 %v3980_v35, %v3714_v11  ;;  %v3766_v57 = vld [vmem:[%s5864_s13 + $0x168] sm:$0xf0]  ;;  %v3758_v23 = vld [vmem:[%s5864_s13 + $0x158] sm:$0xf0] }
 0x503   : > { %v2375_v60 = vsel %vm2371_vm4, %v2087_v61, 0  ;;  %v2535_v31 = vunpack.c.l.b16 %v2268_v43  ;;  %v2270_v51 = vpack.c.bf16 %v5440_v27, %v5440_v27  ;;  %v3719_v30 = vor.u32 %v3979_v34, %v3716_v6  ;;  %v3977_v27 = vld [vmem:[%s5864_s13 + $0x104] sm:$0xf]  ;;  %v3998_v43 = vld [vmem:[%s5864_s13 + $0x1a4] sm:$0xf0] }
 0x504   : > { %2414 = vmatpush.bf16.xpose.msrb.mxu3 %v2375_v60  ;;  %v3769_v44 = vor.u32 %v3989_v12, %v3766_v57  ;;  %v3994_v34 = vld [vmem:[%s5864_s13 + $0x184] sm:$0xf0]  ;;  %v3858_v6 = vld [vmem:[%s5864_s13 + $0x1f8] sm:$0xf0]  ;;  %v4009_v11 = vld [vmem:[%s5864_s13 + $0x204] sm:$0xf] }
 0x505   : > { %v5511_v16 = vpack.c.b16 %v2536_v63, %v2535_v31  ;;  %v3876_v35 = vld [vmem:[%s5864_s13 + $0x208] sm:$0xf0] }
 0x506   : > { %2600 = vmatpush.bf16.msra.mxu0 %v3643_v54  ;;  %v2624_v54 = vunpack.c.l.b16 %v2270_v51 }
 0x507   : > { %v1811_v10 = vpop.permute.xlu0 %1810  ;;  %v1725_v25 = vpop.permute.xlu2 %1724 }
 0x508   : > { %v2073_v59 = vsel %vm2053_vm2, %v2040_v1, %v1811_v10  ;;  %v3991_v1 = vld [vmem:[%s5864_s13 + $0x174] sm:$0xf]  ;;  %v3815_v10 = vor.u32 %v4000_v40, %v3814_v8  ;;  %v3992_v8 = vld [vmem:[%s5864_s13 + $0x174] sm:$0xf0] }
 0x509   : > { %v2105_v29 = vsel %vm999_vm9, %v2073_v59, %v1846_v4  ;;  %v3806_v59 = vld [vmem:[%s5864_s13 + $0x1a0] sm:$0xf] }
 0x50a   : > { %v2236_v2 = vpop.f32.mrf.mxu2  ;;  %v2393_v38 = vsel %vm2371_vm4, %v2105_v29, 0  ;;  %2601 = vmatpush.bf16.msra.mxu0 %v3635_v53  ;;  %v3711_v53 = vor.u32 %v3977_v27, %v3708_v42  ;;  %v1762_v17 = vpop.permute.xlu1 %1761  ;;  %v3975_v29 = vld [vmem:[%s5864_s13 + $0xf4] sm:$0xf]  ;;  %v3666_v42 = vld [vmem:[%s5864_s13 + $0xc8] sm:$0xf0] }
 0x50b   : > { %3568 = vmatmul.msk.bf16.vlgmr.msrb.gmra.mxu3 %vm2371_vm4, %v5475_v14  ;;  %2427 = vmatpush.bf16.xpose.msra.mxu1 %v2393_v38  ;;  %v2271_v32 = vpack.c.bf16 %v2236_v2, %v2236_v2  ;;  %v3777_v2 = vor.u32 %v3991_v1, %v3774_v62  ;;  %v3764_v62 = vld [vmem:[%s5864_s13 + $0x160] sm:$0xf] }
 0x50c   : > { %2674 = vmatpush.bf16.msra.mxu3 %v3689_v56 }
 0x50d   : > { %v2625_v56 = vunpack.c.l.b16 %v2271_v32  ;;  %v3799_v32 = vor.u32 %v3996_v22, %v3798_v3  ;;  %v3834_v3 = vld [vmem:[%s5864_s13 + $0x1c8] sm:$0xf0] }
 0x50e   : > { %2602 = vmatpush.bf16.msra.mxu0 %v3627_v50  ;;  %v3807_v50 = vor.u32 %v3998_v43, %v3806_v59  ;;  %v4006_v43 = vld [vmem:[%s5864_s13 + $0x1e4] sm:$0xf0] }
 0x50f   : > { %v1525_v47 = vpop.permute.xlu0 %1524  ;;  %v5562_v4 = vpack.c.b16 %v2625_v56, %v2624_v54  ;;  %v1844_v41 = vpop.permute.xlu2 %1843  ;;  %v3985_v56 = vld [vmem:[%s5864_s13 + $0x144] sm:$0xf] }
 0x510   : > { %2675 = vmatpush.bf16.msra.mxu3 %v3681_v13  ;;  %v1876_v24 = vsel %vm801_vm1, %v4077_v39, %v1525_v47 }
 0x511   : > { %3652 = vmatmul.msk.bf16.vlgmr.msrb.gmra.mxu0 %vm999_vm9, %v5511_v16  ;;  %v1908_v61 = vsel %vm835_vm3, %v1876_v24, %v1606_v21  ;;  %v3971_v24 = vld [vmem:[%s5864_s13 + $0xd4] sm:$0xf] }
 0x512   : > { %v5526_v36 = vpop.f32.mrf.mxu2  ;;  %2763 = vmatpush.bf16.msrb.mxu0 %v3731_v33  ;;  %v1940_v13 = vsel %vm869_vm5, %v1908_v61, %v1643_v19  ;;  %v3674_v19 = vld [vmem:[%s5864_s13 + $0xd8] sm:$0xf0]  ;;  %v3750_v61 = vld [vmem:[%s5864_s13 + $0x148] sm:$0xf0] }
 0x513   : > { %v2272_v20 = vpack.c.bf16 %v5526_v36, %v5526_v36  ;;  %v3677_v27 = vor.u32 %v3971_v24, %v3674_v19  ;;  %v3753_v40 = vor.u32 %v3985_v56, %v3750_v61  ;;  %v3995_v61 = vld [vmem:[%s5864_s13 + $0x194] sm:$0xf] }
 0x514   : > { %2676 = vmatpush.bf16.msra.mxu3 %v3673_v7  ;;  %v3690_v7 = vld [vmem:[%s5864_s13 + $0xf8] sm:$0xf0] }
 0x515   : > { %v3693_v18 = vor.u32 %v3975_v29, %v3690_v7  ;;  %v4003_v29 = vld [vmem:[%s5864_s13 + $0x1d4] sm:$0xf]  ;;  %v3842_v7 = vld [vmem:[%s5864_s13 + $0x1d8] sm:$0xf0] }
 0x516   : > { %2764 = vmatpush.bf16.msrb.mxu0 %v3723_v48  ;;  %v4007_v48 = vld [vmem:[%s5864_s13 + $0x1f4] sm:$0xf]  ;;  %v3845_v57 = vor.u32 %v4003_v29, %v3842_v7 }
 0x517   : > { %v1690_v60 = vpop.permute.xlu0 %1689  ;;  %v3861_v26 = vor.u32 %v4007_v48, %v3858_v6 }
 0x518   : > { %2677 = vmatpush.bf16.msra.mxu3 %v3665_v46  ;;  %v1972_v52 = vsel %vm903_vm7, %v1940_v13, %v1690_v60  ;;  %v3969_v60 = vld [vmem:[%s5864_s13 + $0xc4] sm:$0xf]  ;;  %v3772_v13 = vld [vmem:[%s5864_s13 + $0x170] sm:$0xf] }
 0x519   : > { %v2005_v9 = vsel %vm1987_vm15, %v1972_v52, %v1725_v25  ;;  %v2713_v25 = vunpack.c.l.b16 %v2272_v20  ;;  %v3856_v52 = vld [vmem:[%s5864_s13 + $0x1f0] sm:$0xf]  ;;  %v3773_v1 = vor.u32 %v3992_v8, %v3772_v13  ;;  %v3832_v20 = vld [vmem:[%s5864_s13 + $0x1c0] sm:$0xf] }
 0x51a   : > { %v2241_v55 = vpop.f32.mrf.mxu2  ;;  %2765 = vmatpush.bf16.msrb.mxu0 %v3715_v0  ;;  %v2038_v38 = vsel %vm2020_vm0, %v2005_v9, %v1762_v17  ;;  %v3848_v17 = vld [vmem:[%s5864_s13 + $0x1e0] sm:$0xf] }
 0x51b   : > { %3694 = vmatmul.msk.bf16.vlgmr.msra.gmra.mxu3 %vm999_vm9, %v5562_v4  ;;  %v2273_v31 = vpack.c.bf16 %v2241_v55, %v2241_v55  ;;  %v4005_v55 = vld [vmem:[%s5864_s13 + $0x1e4] sm:$0xf]  ;;  %v3849_v12 = vor.u32 %v4006_v43, %v3848_v17  ;;  %v4010_v43 = vld [vmem:[%s5864_s13 + $0x204] sm:$0xf0] }
 0x51c   : > { %2777 = vmatpush.bf16.msrb.mxu3 %v3735_v15  ;;  %v3973_v15 = vld [vmem:[%s5864_s13 + $0xe4] sm:$0xf] }
 0x51d   : > { %v3685_v39 = vor.u32 %v3973_v15, %v3682_v5  ;;  %v2714_v36 = vunpack.c.l.b16 %v2273_v31  ;;  %v3748_v31 = vld [vmem:[%s5864_s13 + $0x140] sm:$0xf]  ;;  %v3999_v5 = vld [vmem:[%s5864_s13 + $0x1b4] sm:$0xf] }
 0x51e   : > { %2766 = vmatpush.bf16.msrb.mxu0 %v3707_v49  ;;  %v3669_v49 = vor.u32 %v3969_v60, %v3666_v42  ;;  %v3792_v60 = vld [vmem:[%s5864_s13 + $0x188] sm:$0xf0]  ;;  %v3898_v42 = vld [vmem:[%s5864_s13 + $0x230] sm:$0xf] }
 0x51f   : > { %v1809_v21 = vpop.permute.xlu0 %1808  ;;  %v2715_v54 = vpack.c.b16 %v2714_v36, %v2713_v25 }
 0x520   : > { %2778 = vmatpush.bf16.msrb.mxu3 %v3727_v58  ;;  %v2071_v63 = vsel %vm2053_vm2, %v2038_v38, %v1809_v21  ;;  %v3790_v58 = vld [vmem:[%s5864_s13 + $0x180] sm:$0xf]  ;;  %v3756_v38 = vld [vmem:[%s5864_s13 + $0x150] sm:$0xf]  ;;  %v3988_v21 = vld [vmem:[%s5864_s13 + $0x154] sm:$0xf0] }
 0x521   : > { %v2103_v46 = vsel %vm999_vm9, %v2071_v63, %v1844_v41  ;;  %3653 = vmatmul.msk.bf16.vlgmr.msra.gmra.mxu0 %vm999_vm9, %v5511_v16  ;;  %v3987_v16 = vld [vmem:[%s5864_s13 + $0x154] sm:$0xf]  ;;  %v3791_v0 = vor.u32 %v3994_v34, %v3790_v58  ;;  %v4004_v63 = vld [vmem:[%s5864_s13 + $0x1d4] sm:$0xf0]  ;;  %v3757_v22 = vor.u32 %v3988_v21, %v3756_v38 }
 0x522   : > { %v5609_v33 = vpop.f32.mrf.mxu2  ;;  %v2391_v47 = vsel %vm2371_vm4, %v2103_v46, 0  ;;  %2866 = vmatpush.bf16.msra.mxu0 %v3777_v2  ;;  %v3761_v51 = vor.u32 %v3987_v16, %v3758_v23  ;;  %v3986_v46 = vld [vmem:[%s5864_s13 + $0x144] sm:$0xf0] }
 0x523   : > { %2428 = vmatpush.bf16.xpose.msra.mxu1 %v2391_v47  ;;  %v4002_v16 = vld [vmem:[%s5864_s13 + $0x1c4] sm:$0xf0]  ;;  %v3749_v24 = vor.u32 %v3986_v46, %v3748_v31 }
 0x524   : > { %2779 = vmatpush.bf16.msrb.mxu3 %v3719_v30  ;;  %v3879_v30 = vor.u32 %v4009_v11, %v3876_v35  ;;  %v3833_v58 = vor.u32 %v4002_v16, %v3832_v20 }
 0x526   : > { %2867 = vmatpush.bf16.msra.mxu0 %v3769_v44  ;;  %3136 = vmatpush.bf16.msrb.mxu2 %v3879_v30  ;;  %v3816_v44 = vld [vmem:[%s5864_s13 + $0x1b8] sm:$0xf0] }
 0x527   : > { %v3819_v36 = vor.u32 %v3999_v5, %v3816_v44  ;;  %v3800_v30 = vld [vmem:[%s5864_s13 + $0x198] sm:$0xf0] }
 0x528   : > { %2780 = vmatpush.bf16.msrb.mxu3 %v3711_v53  ;;  %v3850_v53 = vld [vmem:[%s5864_s13 + $0x1e8] sm:$0xf0] }
 0x529   : > { %v3853_v59 = vor.u32 %v4005_v55, %v3850_v53 }
 0x52a   : > { %v2246_v37 = vpop.f32.mrf.mxu2  ;;  %3569 = vmatmul.msk.bf16.vlgmr.msra.gmra.mxu1 %vm2371_vm4, %v5475_v14  ;;  %2868 = vmatpush.bf16.msra.mxu0 %v3761_v51  ;;  %v4008_v14 = vld [vmem:[%s5864_s13 + $0x1f4] sm:$0xf0]  ;;  %v3997_v51 = vld [vmem:[%s5864_s13 + $0x1a4] sm:$0xf] }
 0x52b   : > { %2688 = vmatpush.bf16.msrb.mxu1 %v3693_v18  ;;  %3737 = vmatmul.msk.bf16.vlgmr.msrb.gmra.mxu3 %vm999_vm9, %v2715_v54  ;;  %v3857_v9 = vor.u32 %v4008_v14, %v3856_v52  ;;  %v4001_v18 = vld [vmem:[%s5864_s13 + $0x1c4] sm:$0xf]  ;;  %v2275_v47 = vpack.c.bf16 %v2246_v37, %v2246_v37  ;;  %v4014_v52 = vld [vmem:[%s5864_s13 + $0x224] sm:$0xf0] }
 0x52c   : > { %2941 = vmatpush.bf16.msra.mxu3 %v3815_v10  ;;  %v3990_v10 = vld [vmem:[%s5864_s13 + $0x164] sm:$0xf0]  ;;  %v3837_v23 = vor.u32 %v4001_v18, %v3834_v3 }
 0x52d   : > { %v3765_v41 = vor.u32 %v3990_v10, %v3764_v62  ;;  %v2803_v34 = vunpack.c.l.b16 %v2275_v47  ;;  %v3882_v62 = vld [vmem:[%s5864_s13 + $0x210] sm:$0xf]  ;;  %v4012_v10 = vld [vmem:[%s5864_s13 + $0x214] sm:$0xf0] }
 0x52e   : > { %2869 = vmatpush.bf16.msra.mxu0 %v3753_v40  ;;  %v3890_v40 = vld [vmem:[%s5864_s13 + $0x220] sm:$0xf]  ;;  %v3883_v17 = vor.u32 %v4012_v10, %v3882_v62 }
 0x52f   : > { %2689 = vmatpush.bf16.msrb.mxu1 %v3685_v39  ;;  %v3891_v53 = vor.u32 %v4014_v52, %v3890_v40 }
 0x530   : > { %2942 = vmatpush.bf16.msra.mxu3 %v3807_v50  ;;  %v3840_v50 = vld [vmem:[%s5864_s13 + $0x1d0] sm:$0xf] }
 0x531   : > { %3736 = vmatmul.msk.bf16.vlgmr.msrb.gmra.mxu0 %vm999_vm9, %v2715_v54  ;;  %v3841_v15 = vor.u32 %v4004_v63, %v3840_v50  ;;  %v3993_v54 = vld [vmem:[%s5864_s13 + $0x184] sm:$0xf] }
 0x532   : > { %v2249_v2 = vpop.f32.mrf.mxu2  ;;  %3030 = vmatpush.bf16.msrb.mxu0 %v3857_v9  ;;  %v3795_v37 = vor.u32 %v3993_v54, %v3792_v60 }
 0x533   : > { %2690 = vmatpush.bf16.msrb.mxu1 %v3677_v27  ;;  %v2276_v39 = vpack.c.bf16 %v2249_v2, %v2249_v2 }
 0x534   : > { %2943 = vmatpush.bf16.msra.mxu3 %v3799_v32  ;;  %v2274_v32 = vpack.c.bf16 %v5609_v33, %v5609_v33  ;;  %v3808_v33 = vld [vmem:[%s5864_s13 + $0x1a8] sm:$0xf0] }
 0x535   : > { %v2891_v11 = vunpack.c.l.b16 %v2276_v39 }
 0x536   : > { %3031 = vmatpush.bf16.msrb.mxu0 %v3849_v12  ;;  %v2802_v6 = vunpack.c.l.b16 %v2274_v32 }
 0x537   : > { %2691 = vmatpush.bf16.msrb.mxu1 %v3669_v49 }
 0x538   : > { %2944 = vmatpush.bf16.msra.mxu3 %v3791_v0  ;;  %v2804_v25 = vpack.c.b16 %v2803_v34, %v2802_v6  ;;  %v3803_v0 = vor.u32 %v3995_v61, %v3800_v30 }
 0x53a   : > { %v2251_v19 = vpop.f32.mrf.mxu2  ;;  %3695 = vmatmul.msk.bf16.vlgmr.msrb.gmra.mxu1 %vm999_vm9, %v5562_v4  ;;  %3032 = vmatpush.bf16.msrb.mxu0 %v3841_v15  ;;  %v3811_v4 = vor.u32 %v3997_v51, %v3808_v33 }
 0x53b   : > { %2852 = vmatpush.bf16.msra.mxu1 %v3773_v1  ;;  %v2277_v48 = vpack.c.bf16 %v2251_v19, %v2251_v19 }
 0x53c   : > { %3044 = vmatpush.bf16.msrb.mxu3 %v3861_v26  ;;  %v4016_v26 = vld [vmem:[%s5864_s13 + $0x234] sm:$0xf0] }
 0x53d   : > { %v2892_v35 = vunpack.c.l.b16 %v2277_v48  ;;  %v3899_v13 = vor.u32 %v4016_v26, %v3898_v42 }
 0x53e   : > { %3033 = vmatpush.bf16.msrb.mxu0 %v3833_v58 }
 0x53f   : > { %2853 = vmatpush.bf16.msra.mxu1 %v3765_v41  ;;  %v2893_v56 = vpack.c.b16 %v2892_v35, %v2891_v11  ;;  %v3148_v41 = vld [vmem:[%s5860_s9 + $0x8] sm:$0xff] }
 0x540   : > { %3045 = vmatpush.bf16.msrb.mxu3 %v3853_v59  ;;  %v3874_v59 = vld [vmem:[%s5864_s13 + $0x200] sm:$0xf]  ;;  %3156 = vperm.xlu1 %4051, %v3148_v41  }
 0x541   : > { %3779 = vmatmul.msk.bf16.vlgmr.msra.gmra.mxu0 %vm999_vm9, %v2804_v25  ;;  %3820 = vmatmul.msk.bf16.vlgmr.msra.gmra.mxu3 %vm999_vm9, %v2893_v56  ;;  %v3875_v7 = vor.u32 %v4010_v43, %v3874_v59 }
 0x542   : > { %v2254_v27 = vpop.f32.mrf.mxu2 }
 0x543   : > { %2854 = vmatpush.bf16.msra.mxu1 %v3757_v22  ;;  %v2278_v8 = vpack.c.bf16 %v2254_v27, %v2254_v27 }
 0x544   : > { %3046 = vmatpush.bf16.msrb.mxu3 %v3845_v57 }
 0x545   : > { %v2980_v49 = vunpack.c.l.b16 %v2278_v8 }
 0x547   : > { %2855 = vmatpush.bf16.msra.mxu1 %v3749_v24 }
 0x548   : > { %3047 = vmatpush.bf16.msrb.mxu3 %v3837_v23  ;;  %4053 = vset.pattern.permute.xlu1 %v4100_v28 }
 0x54a   : > { %v2256_v14 = vpop.f32.mrf.mxu2  ;;  %3778 = vmatmul.msk.bf16.vlgmr.msra.gmra.mxu1 %vm999_vm9, %v2804_v25 }
 0x54b   : > { %2955 = vmatpush.bf16.msrb.mxu1 %v3819_v36  ;;  %v2279_v55 = vpack.c.bf16 %v2256_v14, %v2256_v14 }
 0x54d   : > { %v2981_v1 = vunpack.c.l.b16 %v2279_v55 }
 0x54f   : > { %2956 = vmatpush.bf16.msrb.mxu1 %v3811_v4  ;;  %v2982_v9 = vpack.c.b16 %v2981_v1, %v2980_v49 }
 0x551   : > { %3862 = vmatmul.msk.bf16.vlgmr.msrb.gmra.mxu0 %vm999_vm9, %v2982_v9  ;;  %3863 = vmatmul.msk.bf16.vlgmr.msrb.gmra.mxu3 %vm999_vm9, %v2982_v9 }
 0x552   : > { %v2259_v29 = vpop.f32.mrf.mxu2 }
 0x553   : > { %2957 = vmatpush.bf16.msrb.mxu1 %v3803_v0  ;;  %v2280_v2 = vpack.c.bf16 %v2259_v29, %v2259_v29 }
 0x555   : > { %v3069_v12 = vunpack.c.l.b16 %v2280_v2 }
 0x557   : > { %2958 = vmatpush.bf16.msrb.mxu1 %v3795_v37 }
 0x55a   : > { %v2261_v38 = vpop.f32.mrf.mxu2  ;;  %3821 = vmatmul.msk.bf16.vlgmr.msrb.gmra.mxu1 %vm999_vm9, %v2893_v56 }
 0x55b   : > { %3119 = vmatpush.bf16.msra.mxu1 %v3899_v13  ;;  %v2281_v21 = vpack.c.bf16 %v2261_v38, %v2261_v38 }
 0x55d   : > { %v3070_v57 = vunpack.c.l.b16 %v2281_v21 }
 0x55e   : > { %v2361_v20 = vpop.f32.mrf.mxu1 }
 0x55f   : > { %3120 = vmatpush.bf16.msra.mxu1 %v3891_v53  ;;  %v3071_v50 = vpack.c.b16 %v3070_v57, %v3069_v12  ;;  %v3152_v57 = vpop.permute.xlu0 %3151 }
 0x561   : > { %3905 = vmatmul.msk.bf16.vlgmr.msrb.gmra.mxu2 %vm999_vm9, %v3071_v50 }
 0x563   : > { %3121 = vmatpush.bf16.msra.mxu1 %v3883_v17 }
 0x564   : > { %v2347_v3 = vpop.f32.mrf.mxu3 }
 0x566   : > { %v2363_v28 = vpop.f32.mrf.mxu1 }
 0x567   : > { %3122 = vmatpush.bf16.msra.mxu1 %v3875_v7 }
 0x56a   : > { %3904 = vmatmul.msk.bf16.vlgmr.msra.gmra.mxu1 %vm999_vm9, %v3071_v50 }
 0x56c   : > { %v2349_v31 = vpop.f32.mrf.mxu3 }
 0x56e   : > { %v2501_v63 = vpop.f32.mrf.mxu0 }
 0x576   : > { %v2503_v18 = vpop.f32.mrf.mxu0 }
 0x57e   : > { %v2515_v22 = vpop.f32.mrf.mxu0 }
 0x586   : > { %v2517_v46 = vpop.f32.mrf.mxu0 }
 0x58e   : > { %v2416_v15 = vpop.f32.mrf.mxu3  ;;  %v2590_v44 = vpop.f32.mrf.mxu0 }
 0x58f   : > { %v2417_v5 = vadd.f32 %v2416_v15, %v2347_v3 }
 0x591   : > { %v2520_v47 = vadd.f32 %v2501_v63, %v2417_v5 }
 0x593   : > { %v2609_v40 = vadd.f32 %v2590_v44, %v2520_v47 }
 0x596   : > { %v2418_v16 = vpop.f32.mrf.mxu3  ;;  %v2592_v39 = vpop.f32.mrf.mxu0 }
 0x597   : > { %v2419_v23 = vadd.f32 %v2418_v16, %v2349_v31 }
 0x599   : > { %v2522_v32 = vadd.f32 %v2503_v18, %v2419_v23 }
 0x59b   : > { %v2611_v43 = vadd.f32 %v2592_v39, %v2522_v32 }
 0x59e   : > { %v2604_v24 = vpop.f32.mrf.mxu0  ;;  %v2679_v19 = vpop.f32.mrf.mxu3 }
 0x59f   : > { %v2698_v14 = vadd.f32 %v2679_v19, %v2609_v40 }
 0x5a6   : > { %v2606_v48 = vpop.f32.mrf.mxu0  ;;  %v2681_v33 = vpop.f32.mrf.mxu3 }
 0x5a7   : > { %v2430_v36 = vpop.f32.mrf.mxu1  ;;  %v2700_v41 = vadd.f32 %v2681_v33, %v2611_v43 }
 0x5a8   : > { %v2431_v58 = vadd.f32 %v2430_v36, %v2361_v20 }
 0x5aa   : > { %v2521_v34 = vadd.f32 %v2515_v22, %v2431_v58 }
 0x5ac   : > { %v2610_v42 = vadd.f32 %v2604_v24, %v2521_v34 }
 0x5ae   : > { %v2768_v4 = vpop.f32.mrf.mxu0  ;;  %v2782_v25 = vpop.f32.mrf.mxu3 }
 0x5af   : > { %v2432_v51 = vpop.f32.mrf.mxu1  ;;  %v2787_v49 = vadd.f32 %v2768_v4, %v2698_v14 }
 0x5b0   : > { %v2433_v6 = vadd.f32 %v2432_v51, %v2363_v28 }
 0x5b2   : > { %v2523_v11 = vadd.f32 %v2517_v46, %v2433_v6  ;;  %v3157_v39 = vpop.permute.xlu1 %3156 }
 0x5b4   : > { %v2612_v53 = vadd.f32 %v2606_v48, %v2523_v11 }
 0x5b6   : > { %v2770_v61 = vpop.f32.mrf.mxu0  ;;  %v2784_v30 = vpop.f32.mrf.mxu3 }
 0x5b7   : > { %v2693_v35 = vpop.f32.mrf.mxu1  ;;  %v2789_v50 = vadd.f32 %v2770_v61, %v2700_v41  ;;  %v3269_v41 = vld [vmem:[%s5861_s10 + $0x8] sm:$0xff] }
 0x5b8   : > { %v2699_v37 = vadd.f32 %v2693_v35, %v2610_v42 }
 0x5ba   : > { %v2788_v52 = vadd.f32 %v2782_v25, %v2699_v37 }
 0x5be   : > { %v2871_v54 = vpop.f32.mrf.mxu0 }
 0x5bf   : > { %v2695_v56 = vpop.f32.mrf.mxu1  ;;  %v2877_v55 = vadd.f32 %v2871_v54, %v2788_v52 }
 0x5c0   : > { %v2701_v1 = vadd.f32 %v2695_v56, %v2612_v53 }
 0x5c2   : > { %v2790_v29 = vadd.f32 %v2784_v30, %v2701_v1 }
 0x5c4   : > { %v2946_v0 = vpop.f32.mrf.mxu3 }
 0x5c6   : > { %v2873_v13 = vpop.f32.mrf.mxu0 }
 0x5c7   : > { %v2857_v27 = vpop.f32.mrf.mxu1  ;;  %v2879_v21 = vadd.f32 %v2873_v13, %v2790_v29 }
 0x5c8   : > { %v2876_v9 = vadd.f32 %v2857_v27, %v2787_v49 }
 0x5ca   : > { %v2965_v2 = vadd.f32 %v2946_v0, %v2876_v9 }
 0x5cc   : > { %v2948_v26 = vpop.f32.mrf.mxu3 }
 0x5ce   : > { %v3035_v59 = vpop.f32.mrf.mxu0 }
 0x5cf   : > { %v2859_v60 = vpop.f32.mrf.mxu1  ;;  %v3054_v63 = vadd.f32 %v3035_v59, %v2965_v2 }
 0x5d0   : > { %v2878_v31 = vadd.f32 %v2859_v60, %v2789_v50 }
 0x5d2   : > { %v2967_v16 = vadd.f32 %v2948_v26, %v2878_v31 }
 0x5d4   : > { %v3049_v17 = vpop.f32.mrf.mxu3 }
 0x5d6   : > { %v3037_v44 = vpop.f32.mrf.mxu0 }
 0x5d7   : > { %v2960_v8 = vpop.f32.mrf.mxu1  ;;  %v3056_v24 = vadd.f32 %v3037_v44, %v2967_v16 }
 0x5d8   : > { %v2966_v62 = vadd.f32 %v2960_v8, %v2877_v55 }
 0x5da   : > { %v3055_v7 = vadd.f32 %v3049_v17, %v2966_v62  ;;  %v3201_v62 = vld [vmem:[%s5863_s12] sm:$0xff] }
 0x5db   : > { %v3268_v17 = vld [vmem:[%s5861_s10] sm:$0xff] }
 0x5dc   : > { %v3051_v5 = vpop.f32.mrf.mxu3 }
 0x5df   : > { %v2962_v10 = vpop.f32.mrf.mxu1 }
 0x5e0   : > { %v2968_v18 = vadd.f32 %v2962_v10, %v2879_v21  ;;  %v3202_v10 = vld [vmem:[%s5863_s12 + $0x8] sm:$0xff] }
 0x5e2   : > { %v3057_v20 = vadd.f32 %v3051_v5, %v2968_v18 }
 0x5e4   : > { %v3138_v38 = vpop.f32.mrf.mxu2 }
 0x5e5   : > { %v3144_v12 = vadd.f32 %v3138_v38, %v3055_v7 }
 0x5e7   : > { %v3160_v3 = vadd.f32 %v3152_v57, %v3144_v12  ;;  %v3124_v22 = vpop.f32.mrf.mxu1 }
 0x5e8   : > { %v3143_v46 = vadd.f32 %v3124_v22, %v3054_v63 }
 0x5e9   : > { %v3169_v15 = vmul.f32 1.442695, %v3160_v3  ;;  %vm3164_vm1 = vcmp.gt.f32.partialorder %v3160_v3, 0.0 }
 0x5ea   : > { %v3159_v47 = vadd.f32 %v3152_v57, %v3143_v46 }
 0x5eb   : > { %4064 = vpow2.f32 %v3169_v15 }
 0x5ec   : > { %v3167_v23 = vmul.f32 1.442695, %v3159_v47  ;;  %v3140_v32 = vpop.f32.mrf.mxu2  ;;  %vm3163_vm5 = vcmp.gt.f32.partialorder %v3159_v47, 0.0 }
 0x5ed   : > { %v3146_v28 = vadd.f32 %v3140_v32, %v3057_v20 }
 0x5ee   : > { %4066 = vpow2.f32 %v3167_v23 }
 0x5ef   : > { %v3162_v19 = vadd.f32 %v3157_v39, %v3146_v28  ;;  %v3126_v36 = vpop.f32.mrf.mxu1 }
 0x5f0   : > { %v3145_v58 = vadd.f32 %v3126_v36, %v3056_v24 }
 0x5f1   : > { %v4065_v34 = vpop.eup %4064  ;;  %v3173_v48 = vmul.f32 1.442695, %v3162_v19  ;;  %vm3166_vm7 = vcmp.gt.f32.partialorder %v3162_v19, 0.0 }
 0x5f2   : > { %v3161_v51 = vadd.f32 %v3157_v39, %v3145_v58  ;;  %v3907_v33 = vadd.f32 -1.0, %v4065_v34  ;;  %v3281_v34 = vld [vmem:[%s5862_s11 + $0x8] sm:$0xff] }
 0x5f3   : > { %4068 = vpow2.f32 %v3173_v48 }
 0x5f4   : > { %v4067_v6 = vpop.eup %4066  ;;  %v3171_v11 = vmul.f32 1.442695, %v3161_v51  ;;  %v5792_v25 = vsel %vm3164_vm1, %v3160_v3, %v3907_v33  ;;  %vm3165_vm9 = vcmp.gt.f32.partialorder %v3161_v51, 0.0 }
 0x5f5   : > { %v3906_v35 = vadd.f32 -1.0, %v4067_v6  ;;  %v3190_v40 = vmul.f32 %v5792_v25, %v5792_v25  ;;  %v3280_v6 = vld [vmem:[%s5862_s11] sm:$0xff] }
 0x5f6   : > { %4070 = vpow2.f32 %v3171_v11 }
 0x5f7   : > { %v5790_v4 = vsel %vm3163_vm5, %v3159_v47, %v3906_v35 }
 0x5f8   : > { %v3183_v56 = vadd.f32 %v5792_v25, %v5790_v4  ;;  %v3189_v8 = vmul.f32 %v5790_v4, %v5790_v4 }
 0x5f9   : > { %v4069_v61 = vpop.eup %4068 }
 0x5fa   : > { %v3909_v30 = vadd.f32 -1.0, %v4069_v61  ;;  %3184 = vadd.xlane.f32.xlu0 %v3183_v56  ;;  %v3193_v52 = vadd.f32 %v3190_v40, %v3189_v8 }
 0x5fc   : > { %v4071_v27 = vpop.eup %4070  ;;  %v5796_v54 = vsel %vm3166_vm7, %v3162_v19, %v3909_v30 }
 0x5fd   : > { %v3908_v0 = vadd.f32 -1.0, %v4071_v27  ;;  %v3192_v37 = vmul.f32 %v5796_v54, %v5796_v54 }
 0x5ff   : > { %v5798_v60 = vsel %vm3165_vm9, %v3161_v51, %v3908_v0 }
 0x600   : > { %v3186_v42 = vadd.f32 %v5796_v54, %v5798_v60  ;;  %v3191_v26 = vmul.f32 %v5798_v60, %v5798_v60 }
 0x602   : > { %3187 = vadd.xlane.f32.xlu2 %v3186_v42  ;;  %v3196_v13 = vadd.f32 %v3192_v37, %v3191_v26 }
 0x604   : > { %3197 = vadd.xlane.f32.xlu1 %v3196_v13 }
 0x60a   : > { %3194 = vadd.xlane.f32.xlu2 %v3193_v52 }
 0x622   : > { %3272 = vrot.lane.b32.xlu2 %v3268_v17, %s5889_s22 }
 0x66d   : > { %v3185_v49 = vpop.xlane.xlu0 %3184 }
 0x675   : > { %v3188_v14 = vpop.xlane.xlu2 %3187 }
 0x677   : > { %v3198_v55 = vpop.xlane.xlu1 %3197 }
 0x678   : > { %v3200_v53 = vsel %vm1014_vm14, %v3188_v14, %v3198_v55 }
 0x679   : > { %3223 = vmatpush.msra.mxu0 %v3200_v53  ;;  %4017 = vmatpush.msra.mxu3 %v3200_v53 }
 0x67d   : > { %v3195_v1 = vpop.xlane.xlu2 %3194 }
 0x67e   : > { %v3199_v9 = vsel %vm1014_vm14, %v3185_v49, %v3195_v1 }
 0x67f   : > { %3224 = vmatpush.msra.mxu0 %v3199_v9  ;;  %4018 = vmatpush.msra.mxu3 %v3199_v9 }
 0x680   : > { %3910 = vmatmul.msk.f32.vlgmr.msra.gmra.mxu0 %vm835_vm3, %v3201_v62  ;;  %3911 = vmatmul.msk.f32.vlgmr.msra.gmra.mxu3 %vm835_vm3, %v3202_v10 }
 0x685   : > { %v3273_v20 = vpop.permute.xlu2 %3272 }
 0x6fd   : > { %v3226_v59 = vpop.f32.mrf.mxu0 }
 0x6fe   : > { %v3232_v43 = vmul.f32 %v3226_v59, %v3226_v59 }
 0x700   : > { %3236 = vrot.lane.b32.xlu1 %v3232_v43, %s5889_s22 }
 0x703   : > { %v3229_v29 = vpop.f32.mrf.mxu3 }
 0x704   : > { %v3233_v7 = vmul.f32 %v3229_v29, %v3229_v29 }
 0x706   : > { %3238 = vrot.lane.b32.xlu0 %v3233_v7, %s5889_s22 }
 0x70e   : > { %3274 = vrot.lane.b32.xlu0 %v3269_v41, %s5889_s22 }
 0x772   : > { %v3237_v2 = vpop.permute.xlu1 %3236 }
 0x773   : > { %v3242_v38 = vsub.f32 %v3226_v59, %v3237_v2 }
 0x775   : > { %v3244_v21 = vmax.f32 %v3242_v38, 0.0 }
 0x777   : > { %v3246_v12 = vadd.f32 1e-05, %v3244_v21 }
 0x778   : > { %v3239_v57 = vpop.permute.xlu0 %3238 }
 0x779   : > { %4072 = vrsqrt.f32 %v3246_v12  ;;  %v3243_v50 = vsub.f32 %v3229_v29, %v3239_v57  ;;  %vm3254_vm12 = vweird.f32 %v3246_v12 }
 0x77b   : > { %v3245_v63 = vmax.f32 %v3243_v50, 0.0 }
 0x77d   : > { %v3247_v18 = vadd.f32 1e-05, %v3245_v63 }
 0x77f   : > { %v4073_v3 = vpop.eup %4072  ;;  %4074 = vrsqrt.f32 %v3247_v18  ;;  %vm3264_vm15 = vweird.f32 %v3247_v18 }
 0x780   : > { %v3249_v22 = vmul.f32 %v4073_v3, %v3246_v12  ;;  %vm3255_vm3 = vweird.f32 %v4073_v3  ;;  %v3275_v19 = vpop.permute.xlu0 %3274 }
 0x781   : > { %vm3256_vm13 = vmor %vm3254_vm12, %vm3255_vm3 }
 0x782   : > { %v3250_v31 = vmul.f32 %v4073_v3, %v3249_v22 }
 0x784   : > { %v3251_v46 = vmul.f32 0.5, %v3250_v31 }
 0x785   : > { %v4075_v15 = vpop.eup %4074 }
 0x786   : > { %v3259_v5 = vmul.f32 %v4075_v15, %v3247_v18  ;;  %v3252_v47 = vsub.f32 1.5, %v3251_v46  ;;  %vm3265_vm14 = vweird.f32 %v4075_v15 }
 0x787   : > { %vm3266_vm0 = vmor %vm3264_vm15, %vm3265_vm14 }
 0x788   : > { %v3260_v44 = vmul.f32 %v4075_v15, %v3259_v5  ;;  %v3253_v16 = vmul.f32 %v4073_v3, %v3252_v47 }
 0x78a   : > { %v3257_v23 = vsel %vm3256_vm13, %v4073_v3, %v3253_v16  ;;  %v3261_v32 = vmul.f32 0.5, %v3260_v44 }
 0x78b   : > { %v3278_v39 = vmul.f32 %v3273_v20, %v3257_v23 }
 0x78c   : > { %v3262_v28 = vsub.f32 1.5, %v3261_v32 }
 0x78d   : > { %3295 = vperm.xlu0 %4052, %v3278_v39   ;;  %3284 = vrot.lane.b32.xlu1 %v3278_v39, %s4101_s23 }
 0x78e   : > { %v3263_v24 = vmul.f32 %v4075_v15, %v3262_v28 }
 0x790   : > { %v3267_v36 = vsel %vm3266_vm0, %v4075_v15, %v3263_v24 }
 0x791   : > { %v3279_v58 = vmul.f32 %v3275_v19, %v3267_v36 }
 0x793   : > { %3286 = vrot.lane.b32.xlu2 %v3279_v58, %s4101_s23  ;;  %s3914_s23 = sshll.u32 %s5891_s30, 5 }
 0x794   : > { %s487_s18 = scalar_lea.vmem %s5865_s14, %s3914_s23 }
 0x795   : > { %3299 = vperm.xlu1 %4053, %v3279_v58   ;;  %4055 = vset.pattern.permute.xlu0 %v4094_v45 }
 0x79d   : > { %4054 = vset.pattern.permute.xlu1 %v4094_v45 }
 0x7ed   : > { %v3287_v48 = vpop.permute.xlu2 %3286 }
 0x7ee   : > { %v3291_v51 = vmul.f32 %v3287_v48, %v3229_v29 }
 0x7f0   : > { %v3293_v33 = vsub.f32 %v3281_v34, %v3291_v51 }
 0x7f2   : > { %3313 = vperm.xlu1 %4054, %v3293_v33  }
 0x7ff   : > { %v3285_v11 = vpop.permute.xlu1 %3284  ;;  %v3296_v61 = vpop.permute.xlu0 %3295 }
 0x800   : > { %v3290_v35 = vmul.f32 %v3285_v11, %v3226_v59  ;;  %v3302_v45 = vmul.f32 %v3296_v61, %v5790_v4  ;;  %v3303_v27 = vmul.f32 %v3296_v61, %v5792_v25 }
 0x802   : > { %v3292_v56 = vsub.f32 %v3280_v6, %v3290_v35 }
 0x804   : > { %3308 = vperm.xlu2 %4050, %v3292_v56  }
 0x807   : > { %v3300_v30 = vpop.permute.xlu1 %3299 }
 0x808   : > { %v3304_v37 = vmul.f32 %v3300_v30, %v5798_v60  ;;  %v3305_v13 = vmul.f32 %v3300_v30, %v5796_v54 }
 0x85e   : > { %v3309_v0 = vpop.permute.xlu2 %3308 }
 0x85f   : > { %v3316_v42 = vadd.f32 %v3309_v0, %v3302_v45  ;;  %v3317_v26 = vadd.f32 %v3309_v0, %v3303_v27 }
 0x861   : > { %3320 = vst [vmem:[%s487_s18] sm:$0xff] %v3316_v42 }
 0x862   : > { %3321 = vst [vmem:[%s487_s18 + $0x8] sm:$0xff] %v3317_v26 }
 0x864   : > { %v3314_v8 = vpop.permute.xlu1 %3313 }
 0x865   : > { %v3318_v40 = vadd.f32 %v3314_v8, %v3304_v37  ;;  %v3319_v52 = vadd.f32 %v3314_v8, %v3305_v13 }
 0x867   : > { %3322 = vst [vmem:[%s487_s18 + $0x10] sm:$0xff] %v3318_v40 }
 0x868   : > { %3323 = vst [vmem:[%s487_s18 + $0x18] sm:$0xff] %v3319_v52 }
 0x869 PF: > { %s24_s29 = sadd.s32 1, %s4084_s29  }
 0x86a   : > { %p21_p4 = scmp.ge.s32.totalorder %s24_s29, 4  }
 0x86c   :  { %23 = sbr.rel (!%p21_p4) target bundleno = 1 (0x1), region = 117 }

</bundles_post_ra>
